<compile_context>
chip_gen: v5e
topology: v5e:2x2
jax: 0.10.0
libtpu: 0.0.40
codegen_flags: <defaults>
</compile_context>

<pallas_src>
import jax
import jax.numpy as jnp
from jax import lax
from jax.experimental import pallas as pl
from jax.experimental.pallas import tpu as pltpu


def _round_up(n, m):
    return (n + m - 1) // m * m


def _mish_kernel(x):
    # mish(x) = x * tanh(softplus(x)) = x * (e^2 + 2e) / (e^2 + 2e + 2), e=exp(x)
    e = jnp.exp(jnp.minimum(x, 20.0))
    n = e * e + 2.0 * e
    r = n * pl.reciprocal(n + 2.0, approx=True)
    return jnp.where(x > 20.0, x, x * r)


def resunit_kernel(x_ref, w1_ref, b1_ref, w2_ref, b2_ref, o_ref,
                   hbuf_ref, acc_ref):
    # x_ref:    (1, H, W, Cp)      f32   one image, channels zero-padded to 128k
    # w1_ref:   (Cp, Chp)          bf16  1x1 conv weight, BN1 scale folded in
    # b1_ref:   (1, Chp)           f32   folded BN1 bias
    # w2_ref:   (3, 3, Chp, Cp)    bf16  3x3 conv weight (HWIO), BN2 scale folded
    # b2_ref:   (1, Cp)            f32   folded BN2 bias
    # o_ref:    (1, H, W, Cp)      f32
    # hbuf_ref: (3, H+2, W, Chp)   bf16  3 kw-shifted hidden maps + 1-row H halo
    # acc_ref:  (H*W, Cp)          f32   conv2 accumulator
    _, H, W, Cp = x_ref.shape
    Chp = w1_ref.shape[1]
    HW = H * W

    # ---- conv1: 1x1 conv as one bf16 MXU matmul + bias + Mish ----
    x = x_ref[...].reshape(HW, Cp)
    h = jnp.dot(x.astype(jnp.bfloat16), w1_ref[...],
                preferred_element_type=jnp.float32)
    h = _mish_kernel(h + b1_ref[...])

    # ---- build the three kw-shifted hidden maps ONCE (pixel axis is h*W+w,
    #      so a w-shift of +-1 is a row shift of -+1, masked at the W edges) ----
    col = lax.broadcasted_iota(jnp.int32, (HW, 1), 0) % W
    zrow = jnp.zeros((1, Chp), jnp.float32)
    h_m1 = jnp.where(col == 0, 0.0,
                     jnp.concatenate([zrow, h[:HW - 1]], axis=0))   # samples w-1
    h_p1 = jnp.where(col == W - 1, 0.0,
                     jnp.concatenate([h[1:], zrow], axis=0))        # samples w+1

    # ---- stage into bf16 VMEM with a 1-row zero halo along H; all later reads
    #      are leading-dim (tile-aligned) slices. Only 2 halo rows are zeroed.
    hbuf_ref[0, 1:H + 1] = h_m1.reshape(H, W, Chp).astype(jnp.bfloat16)
    hbuf_ref[1, 1:H + 1] = h.reshape(H, W, Chp).astype(jnp.bfloat16)
    hbuf_ref[2, 1:H + 1] = h_p1.reshape(H, W, Chp).astype(jnp.bfloat16)
    zr = jnp.zeros((W, Chp), jnp.bfloat16)
    for v in range(3):
        hbuf_ref[v, 0] = zr
        hbuf_ref[v, H + 1] = zr

    # ---- conv2: 3x3 conv (pad=1) = 9 aligned bf16 matmuls, VMEM f32 accum ----
    for kh in range(3):
        for kw in range(3):
            patch = hbuf_ref[kw, kh:kh + H].reshape(HW, Chp)
            contrib = jnp.dot(patch, w2_ref[kh, kw],
                              preferred_element_type=jnp.float32)
            if kh == 0 and kw == 0:
                acc_ref[...] = contrib
            else:
                acc_ref[...] += contrib

    # ---- bias + Mish + residual add; single lane-dense f32 store ----
    out = _mish_kernel(acc_ref[...] + b2_ref[...])
    out = out + x_ref[...].reshape(HW, Cp)
    o_ref[...] = out.reshape(1, H, W, Cp)


def res_unit(x_nchw, w1, s1, b1, w2, s2, b2):
    """x_nchw: (B, Cin, H, W). Returns (B, Cout, H, W)."""
    B, Cin, H, W = x_nchw.shape
    Ch = w1.shape[1]
    Cout = w2.shape[-1]
    assert Cin == Cout, "ResUnit residual requires Cin == Cout"

    Cp = _round_up(Cout, 128)
    Chp = _round_up(Ch, 128)

    # NCHW -> NHWC (channels on the lane axis), zero-pad channels to 128.
    x = jnp.transpose(x_nchw, (0, 2, 3, 1)).astype(jnp.float32)
    x_p = jnp.pad(x, ((0, 0), (0, 0), (0, 0), (0, Cp - Cin)))

    # Fold BN scale into the conv weights, pad channels, bf16 matmul operands.
    w1f = w1 * s1.reshape(1, Ch)
    w2f = w2 * s2.reshape(1, 1, 1, Cout)
    w1p = jnp.pad(w1f, ((0, Cp - Cin), (0, Chp - Ch))).astype(jnp.bfloat16)
    w2p = jnp.pad(w2f, ((0, 0), (0, 0), (0, Chp - Ch),
                        (0, Cp - Cout))).astype(jnp.bfloat16)
    b1p = jnp.pad(b1.reshape(1, Ch), ((0, 0), (0, Chp - Ch))).astype(jnp.float32)
    b2p = jnp.pad(b2.reshape(1, Cout),
                  ((0, 0), (0, Cp - Cout))).astype(jnp.float32)

    flops = 2 * B * H * W * (Cp * Chp + 9 * Chp * Cp)
    transcendentals = B * H * W * (Chp + Cp)
    bytes_accessed = (2 * B * H * W * Cp * 4            # x in + out (f32)
                      + (Cp * Chp + 9 * Chp * Cp) * 2   # bf16 weights
                      + (Chp + Cp) * 4)                 # biases

    out_nhwc = pl.pallas_call(
        resunit_kernel,
        out_shape=jax.ShapeDtypeStruct((B, H, W, Cp), jnp.float32),
        grid=(B,),
        in_specs=[
            pl.BlockSpec((1, H, W, Cp), lambda b: (b, 0, 0, 0)),
            pl.BlockSpec((Cp, Chp), lambda b: (0, 0)),            # VMEM-resident
            pl.BlockSpec((1, Chp), lambda b: (0, 0)),
            pl.BlockSpec((3, 3, Chp, Cp), lambda b: (0, 0, 0, 0)),
            pl.BlockSpec((1, Cp), lambda b: (0, 0)),
        ],
        out_specs=pl.BlockSpec((1, H, W, Cp), lambda b: (b, 0, 0, 0)),
        scratch_shapes=[
            pltpu.VMEM((3, H + 2, W, Chp), jnp.bfloat16),
            pltpu.VMEM((H * W, Cp), jnp.float32),
        ],
        compiler_params=pltpu.CompilerParams(
            dimension_semantics=("parallel",),
            vmem_limit_bytes=32 * 1024 * 1024),
        cost_estimate=pl.CostEstimate(flops=flops,
                                      transcendentals=transcendentals,
                                      bytes_accessed=bytes_accessed),
    )(x_p, w1p, b1p, w2p, b2p)

    return jnp.transpose(out_nhwc[..., :Cout], (0, 3, 1, 2))  # back to NCHW


def _fold_bn(gamma, beta, mean, var, eps=1e-5):
    scale = gamma / jnp.sqrt(var + eps)
    bias = beta - mean * scale
    return scale.reshape(1, -1), bias.reshape(1, -1)


def _mish_ref(x):
    sp = jnp.where(x > 20.0, x, jnp.log1p(jnp.exp(jnp.minimum(x, 20.0))))
    return x * jnp.tanh(sp)


def _reference(x_nchw, w1, s1, b1, w2, s2, b2):
    # Pure-JAX reference with the same bf16 matmul-operand casts as the kernel.
    x = jnp.transpose(x_nchw, (0, 2, 3, 1)).astype(jnp.float32)
    w1f = (w1 * s1.reshape(1, -1)).astype(jnp.bfloat16)
    w2f = (w2 * s2.reshape(1, 1, 1, -1)).astype(jnp.bfloat16)
    h = jnp.einsum('bhwc,cd->bhwd', x.astype(jnp.bfloat16), w1f,
                   preferred_element_type=jnp.float32)
    h = _mish_ref(h + b1.reshape(1, 1, 1, -1))
    y = lax.conv_general_dilated(
        h.astype(jnp.bfloat16), w2f, window_strides=(1, 1), padding='SAME',
        dimension_numbers=('NHWC', 'HWIO', 'NHWC'),
        preferred_element_type=jnp.float32)
    y = _mish_ref(y + b2.reshape(1, 1, 1, -1)) + x
    return jnp.transpose(y, (0, 3, 1, 2))


if __name__ == "__main__":
    # Small shapes consistent with ResUnit(in=4, out=4) -> hidden=4
    B, Cin, H, W = 2, 4, 16, 16
    Ch, Cout = Cin, Cin

    key = jax.random.PRNGKey(0)
    ks = jax.random.split(key, 11)

    x = jax.random.normal(ks[0], (B, Cin, H, W), jnp.float32)

    # conv1 (1x1): weight (Cin, Ch); conv2 (3x3): weight (3, 3, Ch, Cout) HWIO
    w1 = jax.random.normal(ks[1], (Cin, Ch), jnp.float32) * 0.3
    w2 = jax.random.normal(ks[2], (3, 3, Ch, Cout), jnp.float32) * 0.1

    # synthetic BatchNorm parameters (deterministic), folded to scale/bias
    g1 = 1.0 + 0.1 * jax.random.normal(ks[3], (Ch,), jnp.float32)
    be1 = 0.1 * jax.random.normal(ks[4], (Ch,), jnp.float32)
    m1 = 0.05 * jax.random.normal(ks[5], (Ch,), jnp.float32)
    v1 = 1.0 + 0.1 * jax.random.uniform(ks[6], (Ch,), jnp.float32)
    g2 = 1.0 + 0.1 * jax.random.normal(ks[7], (Cout,), jnp.float32)
    be2 = 0.1 * jax.random.normal(ks[8], (Cout,), jnp.float32)
    m2 = 0.05 * jax.random.normal(ks[9], (Cout,), jnp.float32)
    v2 = 1.0 + 0.1 * jax.random.uniform(ks[10], (Cout,), jnp.float32)

    s1, b1 = _fold_bn(g1, be1, m1, v1)
    s2, b2 = _fold_bn(g2, be2, m2, v2)

    out = res_unit(x, w1, s1, b1, w2, s2, b2)
    out = jax.block_until_ready(out)

    ref = _reference(x, w1, s1, b1, w2, s2, b2)
    assert out.shape == (B, Cout, H, W)
    max_err = float(jnp.max(jnp.abs(out - ref)))
    assert jnp.allclose(out, ref, rtol=2e-2, atol=2e-2), \
        f"mismatch vs reference (max abs err {max_err})"

    print("KERNEL_OK")
</pallas_src>

<mosaic_0001>
module attributes {stable_mosaic.version = 11 : i64} {
  func.func @resunit_kernel(%arg0: i32, %arg1: memref<1x16x16x128xf32, #tpu.memory_space<vmem>>, %arg2: memref<128x128xbf16, #tpu.memory_space<vmem>>, %arg3: memref<1x128xf32, #tpu.memory_space<vmem>>, %arg4: memref<3x3x128x128xbf16, #tpu.memory_space<vmem>>, %arg5: memref<1x128xf32, #tpu.memory_space<vmem>>, %arg6: memref<1x16x16x128xf32, #tpu.memory_space<vmem>>, %arg7: memref<3x18x16x128xbf16, #tpu.memory_space<vmem>>, %arg8: memref<256x128xf32, #tpu.memory_space<vmem>>) attributes {dimension_semantics = [#tpu.dimension_semantics<parallel>], iteration_bounds = array<i64: 2>, scalar_prefetch = 0 : i64, scratch_operands = 2 : i64, tpu.core_type = #tpu.core_type<tc>, window_params = [{transform_indices = @transform_0, window_bounds = array<i64: 1, 16, 16, 128>}, {pipeline_mode = #tpu.pipeline_mode<synchronous>, transform_indices = @transform_1, window_bounds = array<i64: 128, 128>}, {pipeline_mode = #tpu.pipeline_mode<synchronous>, transform_indices = @transform_2, window_bounds = array<i64: 1, 128>}, {pipeline_mode = #tpu.pipeline_mode<synchronous>, transform_indices = @transform_3, window_bounds = array<i64: 3, 3, 128, 128>}, {pipeline_mode = #tpu.pipeline_mode<synchronous>, transform_indices = @transform_4, window_bounds = array<i64: 1, 128>}, {transform_indices = @transform_5, window_bounds = array<i64: 1, 16, 16, 128>}]} {
    %c0 = arith.constant 0 : index
    %c0_0 = arith.constant 0 : index
    %c0_1 = arith.constant 0 : index
    %c0_2 = arith.constant 0 : index
    %0 = vector.load %arg1[%c0, %c0_0, %c0_1, %c0_2] : memref<1x16x16x128xf32, #tpu.memory_space<vmem>>, vector<1x16x16x128xf32>
    %1 = vector.shape_cast %0 : vector<1x16x16x128xf32> to vector<256x128xf32>
    %2 = arith.truncf %1 : vector<256x128xf32> to vector<256x128xbf16>
    %c0_3 = arith.constant 0 : index
    %c0_4 = arith.constant 0 : index
    %3 = vector.load %arg2[%c0_3, %c0_4] : memref<128x128xbf16, #tpu.memory_space<vmem>>, vector<128x128xbf16>
    %cst = arith.constant dense<0.000000e+00> : vector<256x128xf32>
    %4 = tpu.matmul %2, %3, %cst {dimension_numbers = #tpu.dot_dimension_numbers<[1], [0], [0], [1], [0, 0, 1, 1], [], []>} : vector<256x128xbf16>, vector<128x128xbf16>, vector<256x128xf32> -> vector<256x128xf32>
    %c0_5 = arith.constant 0 : index
    %c0_6 = arith.constant 0 : index
    %5 = vector.load %arg3[%c0_5, %c0_6] : memref<1x128xf32, #tpu.memory_space<vmem>>, vector<1x128xf32>
    %6 = vector.broadcast %5 : vector<1x128xf32> to vector<256x128xf32>
    %7 = arith.addf %4, %6 : vector<256x128xf32>
    %cst_7 = arith.constant 2.000000e+01 : f32
    %8 = vector.broadcast %cst_7 : f32 to vector<256x128xf32>
    %9 = arith.minimumf %7, %8 : vector<256x128xf32>
    %10 = math.exp %9 : vector<256x128xf32>
    %11 = arith.mulf %10, %10 : vector<256x128xf32>
    %cst_8 = arith.constant 2.000000e+00 : f32
    %12 = vector.broadcast %cst_8 : f32 to vector<256x128xf32>
    %13 = arith.mulf %12, %10 : vector<256x128xf32>
    %14 = arith.addf %11, %13 : vector<256x128xf32>
    %cst_9 = arith.constant 2.000000e+00 : f32
    %15 = vector.broadcast %cst_9 : f32 to vector<256x128xf32>
    %16 = arith.addf %14, %15 : vector<256x128xf32>
    %17 = tpu.reciprocal %16 {approx = true} : vector<256x128xf32> -> vector<256x128xf32>
    %18 = arith.mulf %14, %17 : vector<256x128xf32>
    %cst_10 = arith.constant 2.000000e+01 : f32
    %19 = vector.broadcast %cst_10 : f32 to vector<256x128xf32>
    %20 = arith.cmpf ogt, %7, %19 : vector<256x128xf32>
    %21 = arith.mulf %7, %18 : vector<256x128xf32>
    %22 = arith.select %20, %7, %21 : vector<256x128xi1>, vector<256x128xf32>
    %23 = tpu.iota {dimensions = array<i32: 0>} : vector<256x1xi32>
    %c16_i32 = arith.constant 16 : i32
    %c0_i32 = arith.constant 0 : i32
    %24 = arith.cmpi eq, %c16_i32, %c0_i32 : i32
    %c1_i32 = arith.constant 1 : i32
    %25 = arith.select %24, %c1_i32, %c16_i32 : i32
    %26 = vector.broadcast %25 : i32 to vector<256x1xi32>
    %27 = arith.remsi %23, %26 : vector<256x1xi32>
    %c0_i32_11 = arith.constant 0 : i32
    %28 = vector.broadcast %c0_i32_11 : i32 to vector<256x1xi32>
    %29 = arith.cmpi ne, %27, %28 : vector<256x1xi32>
    %c0_i32_12 = arith.constant 0 : i32
    %30 = vector.broadcast %c0_i32_12 : i32 to vector<256x1xi32>
    %31 = arith.cmpi slt, %27, %30 : vector<256x1xi32>
    %c0_i32_13 = arith.constant 0 : i32
    %32 = arith.cmpi slt, %25, %c0_i32_13 : i32
    %33 = vector.broadcast %32 : i1 to vector<256x1xi1>
    %34 = vector.broadcast %33 : vector<256x1xi1> to vector<256x1xi1>
    %35 = arith.xori %31, %34 : vector<256x1xi1>
    %36 = arith.andi %35, %29 : vector<256x1xi1>
    %37 = vector.broadcast %25 : i32 to vector<256x1xi32>
    %38 = arith.addi %27, %37 : vector<256x1xi32>
    %39 = arith.select %36, %38, %27 : vector<256x1xi1>, vector<256x1xi32>
    %cst_14 = arith.constant 0.000000e+00 : f32
    %40 = vector.broadcast %cst_14 : f32 to vector<1x128xf32>
    %c0_i32_15 = arith.constant 0 : i32
    %41 = vector.broadcast %c0_i32_15 : i32 to vector<256x1xi32>
    %42 = arith.cmpi eq, %39, %41 : vector<256x1xi32>
    %43 = vector.extract_strided_slice %22 {offsets = [0, 0], sizes = [255, 128], strides = [1, 1]} : vector<256x128xf32> to vector<255x128xf32>
    %44 = tpu.concatenate %40, %43 in 0 : vector<1x128xf32>, vector<255x128xf32> -> vector<256x128xf32>
    %cst_16 = arith.constant 0.000000e+00 : f32
    %45 = vector.shape_cast %42 : vector<256x1xi1> to vector<256x1xi1>
    %46 = vector.broadcast %45 : vector<256x1xi1> to vector<256x128xi1>
    %47 = vector.broadcast %cst_16 : f32 to vector<256x128xf32>
    %48 = arith.select %46, %47, %44 : vector<256x128xi1>, vector<256x128xf32>
    %c15_i32 = arith.constant 15 : i32
    %49 = vector.broadcast %c15_i32 : i32 to vector<256x1xi32>
    %50 = arith.cmpi eq, %39, %49 : vector<256x1xi32>
    %51 = vector.extract_strided_slice %22 {offsets = [1, 0], sizes = [255, 128], strides = [1, 1]} : vector<256x128xf32> to vector<255x128xf32>
    %52 = tpu.concatenate %51, %40 in 0 : vector<255x128xf32>, vector<1x128xf32> -> vector<256x128xf32>
    %cst_17 = arith.constant 0.000000e+00 : f32
    %53 = vector.shape_cast %50 : vector<256x1xi1> to vector<256x1xi1>
    %54 = vector.broadcast %53 : vector<256x1xi1> to vector<256x128xi1>
    %55 = vector.broadcast %cst_17 : f32 to vector<256x128xf32>
    %56 = arith.select %54, %55, %52 : vector<256x128xi1>, vector<256x128xf32>
    %57 = vector.shape_cast %48 : vector<256x128xf32> to vector<16x16x128xf32>
    %58 = arith.truncf %57 : vector<16x16x128xf32> to vector<16x16x128xbf16>
    %c0_18 = arith.constant 0 : index
    %c1 = arith.constant 1 : index
    %c0_19 = arith.constant 0 : index
    %c0_20 = arith.constant 0 : index
    %59 = vector.load %arg7[%c0_18, %c1, %c0_19, %c0_20] : memref<3x18x16x128xbf16, #tpu.memory_space<vmem>>, vector<1x16x16x128xbf16>
    %60 = vector.shape_cast %59 : vector<1x16x16x128xbf16> to vector<16x16x128xbf16>
    %61 = vector.shape_cast %58 : vector<16x16x128xbf16> to vector<1x16x16x128xbf16>
    tpu.vector_store %arg7[%c0_18, %c1, %c0_19, %c0_20], %61 {strides = array<i32>} : memref<3x18x16x128xbf16, #tpu.memory_space<vmem>>, vector<1x16x16x128xbf16>,
    %62 = vector.shape_cast %22 : vector<256x128xf32> to vector<16x16x128xf32>
    %63 = arith.truncf %62 : vector<16x16x128xf32> to vector<16x16x128xbf16>
    %c1_21 = arith.constant 1 : index
    %c1_22 = arith.constant 1 : index
    %c0_23 = arith.constant 0 : index
    %c0_24 = arith.constant 0 : index
    %64 = vector.load %arg7[%c1_21, %c1_22, %c0_23, %c0_24] : memref<3x18x16x128xbf16, #tpu.memory_space<vmem>>, vector<1x16x16x128xbf16>
    %65 = vector.shape_cast %64 : vector<1x16x16x128xbf16> to vector<16x16x128xbf16>
    %66 = vector.shape_cast %63 : vector<16x16x128xbf16> to vector<1x16x16x128xbf16>
    tpu.vector_store %arg7[%c1_21, %c1_22, %c0_23, %c0_24], %66 {strides = array<i32>} : memref<3x18x16x128xbf16, #tpu.memory_space<vmem>>, vector<1x16x16x128xbf16>,
    %67 = vector.shape_cast %56 : vector<256x128xf32> to vector<16x16x128xf32>
    %68 = arith.truncf %67 : vector<16x16x128xf32> to vector<16x16x128xbf16>
    %c2 = arith.constant 2 : index
    %c1_25 = arith.constant 1 : index
    %c0_26 = arith.constant 0 : index
    %c0_27 = arith.constant 0 : index
    %69 = vector.load %arg7[%c2, %c1_25, %c0_26, %c0_27] : memref<3x18x16x128xbf16, #tpu.memory_space<vmem>>, vector<1x16x16x128xbf16>
    %70 = vector.shape_cast %69 : vector<1x16x16x128xbf16> to vector<16x16x128xbf16>
    %71 = vector.shape_cast %68 : vector<16x16x128xbf16> to vector<1x16x16x128xbf16>
    tpu.vector_store %arg7[%c2, %c1_25, %c0_26, %c0_27], %71 {strides = array<i32>} : memref<3x18x16x128xbf16, #tpu.memory_space<vmem>>, vector<1x16x16x128xbf16>,
    %cst_28 = arith.constant 0.000000e+00 : bf16
    %72 = vector.broadcast %cst_28 : bf16 to vector<16x128xbf16>
    %c0_29 = arith.constant 0 : index
    %c0_30 = arith.constant 0 : index
    %c0_31 = arith.constant 0 : index
    %c0_32 = arith.constant 0 : index
    %73 = vector.load %arg7[%c0_29, %c0_30, %c0_31, %c0_32] : memref<3x18x16x128xbf16, #tpu.memory_space<vmem>>, vector<1x1x16x128xbf16>
    %74 = vector.shape_cast %73 : vector<1x1x16x128xbf16> to vector<16x128xbf16>
    %75 = vector.shape_cast %72 : vector<16x128xbf16> to vector<1x1x16x128xbf16>
    tpu.vector_store %arg7[%c0_29, %c0_30, %c0_31, %c0_32], %75 {strides = array<i32>} : memref<3x18x16x128xbf16, #tpu.memory_space<vmem>>, vector<1x1x16x128xbf16>,
    %c0_33 = arith.constant 0 : index
    %c17 = arith.constant 17 : index
    %c0_34 = arith.constant 0 : index
    %c0_35 = arith.constant 0 : index
    %76 = vector.load %arg7[%c0_33, %c17, %c0_34, %c0_35] : memref<3x18x16x128xbf16, #tpu.memory_space<vmem>>, vector<1x1x16x128xbf16>
    %77 = vector.shape_cast %76 : vector<1x1x16x128xbf16> to vector<16x128xbf16>
    %78 = vector.shape_cast %72 : vector<16x128xbf16> to vector<1x1x16x128xbf16>
    tpu.vector_store %arg7[%c0_33, %c17, %c0_34, %c0_35], %78 {strides = array<i32>} : memref<3x18x16x128xbf16, #tpu.memory_space<vmem>>, vector<1x1x16x128xbf16>,
    %c1_36 = arith.constant 1 : index
    %c0_37 = arith.constant 0 : index
    %c0_38 = arith.constant 0 : index
    %c0_39 = arith.constant 0 : index
    %79 = vector.load %arg7[%c1_36, %c0_37, %c0_38, %c0_39] : memref<3x18x16x128xbf16, #tpu.memory_space<vmem>>, vector<1x1x16x128xbf16>
    %80 = vector.shape_cast %79 : vector<1x1x16x128xbf16> to vector<16x128xbf16>
    %81 = vector.shape_cast %72 : vector<16x128xbf16> to vector<1x1x16x128xbf16>
    tpu.vector_store %arg7[%c1_36, %c0_37, %c0_38, %c0_39], %81 {strides = array<i32>} : memref<3x18x16x128xbf16, #tpu.memory_space<vmem>>, vector<1x1x16x128xbf16>,
    %c1_40 = arith.constant 1 : index
    %c17_41 = arith.constant 17 : index
    %c0_42 = arith.constant 0 : index
    %c0_43 = arith.constant 0 : index
    %82 = vector.load %arg7[%c1_40, %c17_41, %c0_42, %c0_43] : memref<3x18x16x128xbf16, #tpu.memory_space<vmem>>, vector<1x1x16x128xbf16>
    %83 = vector.shape_cast %82 : vector<1x1x16x128xbf16> to vector<16x128xbf16>
    %84 = vector.shape_cast %72 : vector<16x128xbf16> to vector<1x1x16x128xbf16>
    tpu.vector_store %arg7[%c1_40, %c17_41, %c0_42, %c0_43], %84 {strides = array<i32>} : memref<3x18x16x128xbf16, #tpu.memory_space<vmem>>, vector<1x1x16x128xbf16>,
    %c2_44 = arith.constant 2 : index
    %c0_45 = arith.constant 0 : index
    %c0_46 = arith.constant 0 : index
    %c0_47 = arith.constant 0 : index
    %85 = vector.load %arg7[%c2_44, %c0_45, %c0_46, %c0_47] : memref<3x18x16x128xbf16, #tpu.memory_space<vmem>>, vector<1x1x16x128xbf16>
    %86 = vector.shape_cast %85 : vector<1x1x16x128xbf16> to vector<16x128xbf16>
    %87 = vector.shape_cast %72 : vector<16x128xbf16> to vector<1x1x16x128xbf16>
    tpu.vector_store %arg7[%c2_44, %c0_45, %c0_46, %c0_47], %87 {strides = array<i32>} : memref<3x18x16x128xbf16, #tpu.memory_space<vmem>>, vector<1x1x16x128xbf16>,
    %c2_48 = arith.constant 2 : index
    %c17_49 = arith.constant 17 : index
    %c0_50 = arith.constant 0 : index
    %c0_51 = arith.constant 0 : index
    %88 = vector.load %arg7[%c2_48, %c17_49, %c0_50, %c0_51] : memref<3x18x16x128xbf16, #tpu.memory_space<vmem>>, vector<1x1x16x128xbf16>
    %89 = vector.shape_cast %88 : vector<1x1x16x128xbf16> to vector<16x128xbf16>
    %90 = vector.shape_cast %72 : vector<16x128xbf16> to vector<1x1x16x128xbf16>
    tpu.vector_store %arg7[%c2_48, %c17_49, %c0_50, %c0_51], %90 {strides = array<i32>} : memref<3x18x16x128xbf16, #tpu.memory_space<vmem>>, vector<1x1x16x128xbf16>,
    %c0_52 = arith.constant 0 : index
    %c0_53 = arith.constant 0 : index
    %c0_54 = arith.constant 0 : index
    %c0_55 = arith.constant 0 : index
    %91 = vector.load %arg7[%c0_52, %c0_53, %c0_54, %c0_55] : memref<3x18x16x128xbf16, #tpu.memory_space<vmem>>, vector<1x16x16x128xbf16>
    %92 = vector.shape_cast %91 : vector<1x16x16x128xbf16> to vector<16x16x128xbf16>
    %93 = vector.shape_cast %92 : vector<16x16x128xbf16> to vector<256x128xbf16>
    %c0_56 = arith.constant 0 : index
    %c0_57 = arith.constant 0 : index
    %c0_58 = arith.constant 0 : index
    %c0_59 = arith.constant 0 : index
    %94 = vector.load %arg4[%c0_56, %c0_57, %c0_58, %c0_59] : memref<3x3x128x128xbf16, #tpu.memory_space<vmem>>, vector<1x1x128x128xbf16>
    %95 = vector.shape_cast %94 : vector<1x1x128x128xbf16> to vector<128x128xbf16>
    %cst_60 = arith.constant dense<0.000000e+00> : vector<256x128xf32>
    %96 = tpu.matmul %93, %95, %cst_60 {dimension_numbers = #tpu.dot_dimension_numbers<[1], [0], [0], [1], [0, 0, 1, 1], [], []>} : vector<256x128xbf16>, vector<128x128xbf16>, vector<256x128xf32> -> vector<256x128xf32>
    %c0_61 = arith.constant 0 : index
    %c0_62 = arith.constant 0 : index
    %97 = vector.load %arg8[%c0_61, %c0_62] : memref<256x128xf32, #tpu.memory_space<vmem>>, vector<256x128xf32>
    tpu.vector_store %arg8[%c0_61, %c0_62], %96 {strides = array<i32>} : memref<256x128xf32, #tpu.memory_space<vmem>>, vector<256x128xf32>,
    %c1_63 = arith.constant 1 : index
    %c0_64 = arith.constant 0 : index
    %c0_65 = arith.constant 0 : index
    %c0_66 = arith.constant 0 : index
    %98 = vector.load %arg7[%c1_63, %c0_64, %c0_65, %c0_66] : memref<3x18x16x128xbf16, #tpu.memory_space<vmem>>, vector<1x16x16x128xbf16>
    %99 = vector.shape_cast %98 : vector<1x16x16x128xbf16> to vector<16x16x128xbf16>
    %100 = vector.shape_cast %99 : vector<16x16x128xbf16> to vector<256x128xbf16>
    %c0_67 = arith.constant 0 : index
    %c1_68 = arith.constant 1 : index
    %c0_69 = arith.constant 0 : index
    %c0_70 = arith.constant 0 : index
    %101 = vector.load %arg4[%c0_67, %c1_68, %c0_69, %c0_70] : memref<3x3x128x128xbf16, #tpu.memory_space<vmem>>, vector<1x1x128x128xbf16>
    %102 = vector.shape_cast %101 : vector<1x1x128x128xbf16> to vector<128x128xbf16>
    %cst_71 = arith.constant dense<0.000000e+00> : vector<256x128xf32>
    %103 = tpu.matmul %100, %102, %cst_71 {dimension_numbers = #tpu.dot_dimension_numbers<[1], [0], [0], [1], [0, 0, 1, 1], [], []>} : vector<256x128xbf16>, vector<128x128xbf16>, vector<256x128xf32> -> vector<256x128xf32>
    %c0_72 = arith.constant 0 : index
    %c0_73 = arith.constant 0 : index
    %104 = vector.load %arg8[%c0_72, %c0_73] : memref<256x128xf32, #tpu.memory_space<vmem>>, vector<256x128xf32>
    %105 = arith.addf %104, %103 : vector<256x128xf32>
    %c0_74 = arith.constant 0 : index
    %c0_75 = arith.constant 0 : index
    %106 = vector.load %arg8[%c0_74, %c0_75] : memref<256x128xf32, #tpu.memory_space<vmem>>, vector<256x128xf32>
    tpu.vector_store %arg8[%c0_74, %c0_75], %105 {strides = array<i32>} : memref<256x128xf32, #tpu.memory_space<vmem>>, vector<256x128xf32>,
    %c2_76 = arith.constant 2 : index
    %c0_77 = arith.constant 0 : index
    %c0_78 = arith.constant 0 : index
    %c0_79 = arith.constant 0 : index
    %107 = vector.load %arg7[%c2_76, %c0_77, %c0_78, %c0_79] : memref<3x18x16x128xbf16, #tpu.memory_space<vmem>>, vector<1x16x16x128xbf16>
    %108 = vector.shape_cast %107 : vector<1x16x16x128xbf16> to vector<16x16x128xbf16>
    %109 = vector.shape_cast %108 : vector<16x16x128xbf16> to vector<256x128xbf16>
    %c0_80 = arith.constant 0 : index
    %c2_81 = arith.constant 2 : index
    %c0_82 = arith.constant 0 : index
    %c0_83 = arith.constant 0 : index
    %110 = vector.load %arg4[%c0_80, %c2_81, %c0_82, %c0_83] : memref<3x3x128x128xbf16, #tpu.memory_space<vmem>>, vector<1x1x128x128xbf16>
    %111 = vector.shape_cast %110 : vector<1x1x128x128xbf16> to vector<128x128xbf16>
    %cst_84 = arith.constant dense<0.000000e+00> : vector<256x128xf32>
    %112 = tpu.matmul %109, %111, %cst_84 {dimension_numbers = #tpu.dot_dimension_numbers<[1], [0], [0], [1], [0, 0, 1, 1], [], []>} : vector<256x128xbf16>, vector<128x128xbf16>, vector<256x128xf32> -> vector<256x128xf32>
    %c0_85 = arith.constant 0 : index
    %c0_86 = arith.constant 0 : index
    %113 = vector.load %arg8[%c0_85, %c0_86] : memref<256x128xf32, #tpu.memory_space<vmem>>, vector<256x128xf32>
    %114 = arith.addf %113, %112 : vector<256x128xf32>
    %c0_87 = arith.constant 0 : index
    %c0_88 = arith.constant 0 : index
    %115 = vector.load %arg8[%c0_87, %c0_88] : memref<256x128xf32, #tpu.memory_space<vmem>>, vector<256x128xf32>
    tpu.vector_store %arg8[%c0_87, %c0_88], %114 {strides = array<i32>} : memref<256x128xf32, #tpu.memory_space<vmem>>, vector<256x128xf32>,
    %c0_89 = arith.constant 0 : index
    %c1_90 = arith.constant 1 : index
    %c0_91 = arith.constant 0 : index
    %c0_92 = arith.constant 0 : index
    %116 = vector.load %arg7[%c0_89, %c1_90, %c0_91, %c0_92] : memref<3x18x16x128xbf16, #tpu.memory_space<vmem>>, vector<1x16x16x128xbf16>
    %117 = vector.shape_cast %116 : vector<1x16x16x128xbf16> to vector<16x16x128xbf16>
    %118 = vector.shape_cast %117 : vector<16x16x128xbf16> to vector<256x128xbf16>
    %c1_93 = arith.constant 1 : index
    %c0_94 = arith.constant 0 : index
    %c0_95 = arith.constant 0 : index
    %c0_96 = arith.constant 0 : index
    %119 = vector.load %arg4[%c1_93, %c0_94, %c0_95, %c0_96] : memref<3x3x128x128xbf16, #tpu.memory_space<vmem>>, vector<1x1x128x128xbf16>
    %120 = vector.shape_cast %119 : vector<1x1x128x128xbf16> to vector<128x128xbf16>
    %cst_97 = arith.constant dense<0.000000e+00> : vector<256x128xf32>
    %121 = tpu.matmul %118, %120, %cst_97 {dimension_numbers = #tpu.dot_dimension_numbers<[1], [0], [0], [1], [0, 0, 1, 1], [], []>} : vector<256x128xbf16>, vector<128x128xbf16>, vector<256x128xf32> -> vector<256x128xf32>
    %c0_98 = arith.constant 0 : index
    %c0_99 = arith.constant 0 : index
    %122 = vector.load %arg8[%c0_98, %c0_99] : memref<256x128xf32, #tpu.memory_space<vmem>>, vector<256x128xf32>
    %123 = arith.addf %122, %121 : vector<256x128xf32>
    %c0_100 = arith.constant 0 : index
    %c0_101 = arith.constant 0 : index
    %124 = vector.load %arg8[%c0_100, %c0_101] : memref<256x128xf32, #tpu.memory_space<vmem>>, vector<256x128xf32>
    tpu.vector_store %arg8[%c0_100, %c0_101], %123 {strides = array<i32>} : memref<256x128xf32, #tpu.memory_space<vmem>>, vector<256x128xf32>,
    %c1_102 = arith.constant 1 : index
    %c1_103 = arith.constant 1 : index
    %c0_104 = arith.constant 0 : index
    %c0_105 = arith.constant 0 : index
    %125 = vector.load %arg7[%c1_102, %c1_103, %c0_104, %c0_105] : memref<3x18x16x128xbf16, #tpu.memory_space<vmem>>, vector<1x16x16x128xbf16>
    %126 = vector.shape_cast %125 : vector<1x16x16x128xbf16> to vector<16x16x128xbf16>
    %127 = vector.shape_cast %126 : vector<16x16x128xbf16> to vector<256x128xbf16>
    %c1_106 = arith.constant 1 : index
    %c1_107 = arith.constant 1 : index
    %c0_108 = arith.constant 0 : index
    %c0_109 = arith.constant 0 : index
    %128 = vector.load %arg4[%c1_106, %c1_107, %c0_108, %c0_109] : memref<3x3x128x128xbf16, #tpu.memory_space<vmem>>, vector<1x1x128x128xbf16>
    %129 = vector.shape_cast %128 : vector<1x1x128x128xbf16> to vector<128x128xbf16>
    %cst_110 = arith.constant dense<0.000000e+00> : vector<256x128xf32>
    %130 = tpu.matmul %127, %129, %cst_110 {dimension_numbers = #tpu.dot_dimension_numbers<[1], [0], [0], [1], [0, 0, 1, 1], [], []>} : vector<256x128xbf16>, vector<128x128xbf16>, vector<256x128xf32> -> vector<256x128xf32>
    %c0_111 = arith.constant 0 : index
    %c0_112 = arith.constant 0 : index
    %131 = vector.load %arg8[%c0_111, %c0_112] : memref<256x128xf32, #tpu.memory_space<vmem>>, vector<256x128xf32>
    %132 = arith.addf %131, %130 : vector<256x128xf32>
    %c0_113 = arith.constant 0 : index
    %c0_114 = arith.constant 0 : index
    %133 = vector.load %arg8[%c0_113, %c0_114] : memref<256x128xf32, #tpu.memory_space<vmem>>, vector<256x128xf32>
    tpu.vector_store %arg8[%c0_113, %c0_114], %132 {strides = array<i32>} : memref<256x128xf32, #tpu.memory_space<vmem>>, vector<256x128xf32>,
    %c2_115 = arith.constant 2 : index
    %c1_116 = arith.constant 1 : index
    %c0_117 = arith.constant 0 : index
    %c0_118 = arith.constant 0 : index
    %134 = vector.load %arg7[%c2_115, %c1_116, %c0_117, %c0_118] : memref<3x18x16x128xbf16, #tpu.memory_space<vmem>>, vector<1x16x16x128xbf16>
    %135 = vector.shape_cast %134 : vector<1x16x16x128xbf16> to vector<16x16x128xbf16>
    %136 = vector.shape_cast %135 : vector<16x16x128xbf16> to vector<256x128xbf16>
    %c1_119 = arith.constant 1 : index
    %c2_120 = arith.constant 2 : index
    %c0_121 = arith.constant 0 : index
    %c0_122 = arith.constant 0 : index
    %137 = vector.load %arg4[%c1_119, %c2_120, %c0_121, %c0_122] : memref<3x3x128x128xbf16, #tpu.memory_space<vmem>>, vector<1x1x128x128xbf16>
    %138 = vector.shape_cast %137 : vector<1x1x128x128xbf16> to vector<128x128xbf16>
    %cst_123 = arith.constant dense<0.000000e+00> : vector<256x128xf32>
    %139 = tpu.matmul %136, %138, %cst_123 {dimension_numbers = #tpu.dot_dimension_numbers<[1], [0], [0], [1], [0, 0, 1, 1], [], []>} : vector<256x128xbf16>, vector<128x128xbf16>, vector<256x128xf32> -> vector<256x128xf32>
    %c0_124 = arith.constant 0 : index
    %c0_125 = arith.constant 0 : index
    %140 = vector.load %arg8[%c0_124, %c0_125] : memref<256x128xf32, #tpu.memory_space<vmem>>, vector<256x128xf32>
    %141 = arith.addf %140, %139 : vector<256x128xf32>
    %c0_126 = arith.constant 0 : index
    %c0_127 = arith.constant 0 : index
    %142 = vector.load %arg8[%c0_126, %c0_127] : memref<256x128xf32, #tpu.memory_space<vmem>>, vector<256x128xf32>
    tpu.vector_store %arg8[%c0_126, %c0_127], %141 {strides = array<i32>} : memref<256x128xf32, #tpu.memory_space<vmem>>, vector<256x128xf32>,
    %c0_128 = arith.constant 0 : index
    %c2_129 = arith.constant 2 : index
    %c0_130 = arith.constant 0 : index
    %c0_131 = arith.constant 0 : index
    %143 = vector.load %arg7[%c0_128, %c2_129, %c0_130, %c0_131] : memref<3x18x16x128xbf16, #tpu.memory_space<vmem>>, vector<1x16x16x128xbf16>
    %144 = vector.shape_cast %143 : vector<1x16x16x128xbf16> to vector<16x16x128xbf16>
    %145 = vector.shape_cast %144 : vector<16x16x128xbf16> to vector<256x128xbf16>
    %c2_132 = arith.constant 2 : index
    %c0_133 = arith.constant 0 : index
    %c0_134 = arith.constant 0 : index
    %c0_135 = arith.constant 0 : index
    %146 = vector.load %arg4[%c2_132, %c0_133, %c0_134, %c0_135] : memref<3x3x128x128xbf16, #tpu.memory_space<vmem>>, vector<1x1x128x128xbf16>
    %147 = vector.shape_cast %146 : vector<1x1x128x128xbf16> to vector<128x128xbf16>
    %cst_136 = arith.constant dense<0.000000e+00> : vector<256x128xf32>
    %148 = tpu.matmul %145, %147, %cst_136 {dimension_numbers = #tpu.dot_dimension_numbers<[1], [0], [0], [1], [0, 0, 1, 1], [], []>} : vector<256x128xbf16>, vector<128x128xbf16>, vector<256x128xf32> -> vector<256x128xf32>
    %c0_137 = arith.constant 0 : index
    %c0_138 = arith.constant 0 : index
    %149 = vector.load %arg8[%c0_137, %c0_138] : memref<256x128xf32, #tpu.memory_space<vmem>>, vector<256x128xf32>
    %150 = arith.addf %149, %148 : vector<256x128xf32>
    %c0_139 = arith.constant 0 : index
    %c0_140 = arith.constant 0 : index
    %151 = vector.load %arg8[%c0_139, %c0_140] : memref<256x128xf32, #tpu.memory_space<vmem>>, vector<256x128xf32>
    tpu.vector_store %arg8[%c0_139, %c0_140], %150 {strides = array<i32>} : memref<256x128xf32, #tpu.memory_space<vmem>>, vector<256x128xf32>,
    %c1_141 = arith.constant 1 : index
    %c2_142 = arith.constant 2 : index
    %c0_143 = arith.constant 0 : index
    %c0_144 = arith.constant 0 : index
    %152 = vector.load %arg7[%c1_141, %c2_142, %c0_143, %c0_144] : memref<3x18x16x128xbf16, #tpu.memory_space<vmem>>, vector<1x16x16x128xbf16>
    %153 = vector.shape_cast %152 : vector<1x16x16x128xbf16> to vector<16x16x128xbf16>
    %154 = vector.shape_cast %153 : vector<16x16x128xbf16> to vector<256x128xbf16>
    %c2_145 = arith.constant 2 : index
    %c1_146 = arith.constant 1 : index
    %c0_147 = arith.constant 0 : index
    %c0_148 = arith.constant 0 : index
    %155 = vector.load %arg4[%c2_145, %c1_146, %c0_147, %c0_148] : memref<3x3x128x128xbf16, #tpu.memory_space<vmem>>, vector<1x1x128x128xbf16>
    %156 = vector.shape_cast %155 : vector<1x1x128x128xbf16> to vector<128x128xbf16>
    %cst_149 = arith.constant dense<0.000000e+00> : vector<256x128xf32>
    %157 = tpu.matmul %154, %156, %cst_149 {dimension_numbers = #tpu.dot_dimension_numbers<[1], [0], [0], [1], [0, 0, 1, 1], [], []>} : vector<256x128xbf16>, vector<128x128xbf16>, vector<256x128xf32> -> vector<256x128xf32>
    %c0_150 = arith.constant 0 : index
    %c0_151 = arith.constant 0 : index
    %158 = vector.load %arg8[%c0_150, %c0_151] : memref<256x128xf32, #tpu.memory_space<vmem>>, vector<256x128xf32>
    %159 = arith.addf %158, %157 : vector<256x128xf32>
    %c0_152 = arith.constant 0 : index
    %c0_153 = arith.constant 0 : index
    %160 = vector.load %arg8[%c0_152, %c0_153] : memref<256x128xf32, #tpu.memory_space<vmem>>, vector<256x128xf32>
    tpu.vector_store %arg8[%c0_152, %c0_153], %159 {strides = array<i32>} : memref<256x128xf32, #tpu.memory_space<vmem>>, vector<256x128xf32>,
    %c2_154 = arith.constant 2 : index
    %c2_155 = arith.constant 2 : index
    %c0_156 = arith.constant 0 : index
    %c0_157 = arith.constant 0 : index
    %161 = vector.load %arg7[%c2_154, %c2_155, %c0_156, %c0_157] : memref<3x18x16x128xbf16, #tpu.memory_space<vmem>>, vector<1x16x16x128xbf16>
    %162 = vector.shape_cast %161 : vector<1x16x16x128xbf16> to vector<16x16x128xbf16>
    %163 = vector.shape_cast %162 : vector<16x16x128xbf16> to vector<256x128xbf16>
    %c2_158 = arith.constant 2 : index
    %c2_159 = arith.constant 2 : index
    %c0_160 = arith.constant 0 : index
    %c0_161 = arith.constant 0 : index
    %164 = vector.load %arg4[%c2_158, %c2_159, %c0_160, %c0_161] : memref<3x3x128x128xbf16, #tpu.memory_space<vmem>>, vector<1x1x128x128xbf16>
    %165 = vector.shape_cast %164 : vector<1x1x128x128xbf16> to vector<128x128xbf16>
    %cst_162 = arith.constant dense<0.000000e+00> : vector<256x128xf32>
    %166 = tpu.matmul %163, %165, %cst_162 {dimension_numbers = #tpu.dot_dimension_numbers<[1], [0], [0], [1], [0, 0, 1, 1], [], []>} : vector<256x128xbf16>, vector<128x128xbf16>, vector<256x128xf32> -> vector<256x128xf32>
    %c0_163 = arith.constant 0 : index
    %c0_164 = arith.constant 0 : index
    %167 = vector.load %arg8[%c0_163, %c0_164] : memref<256x128xf32, #tpu.memory_space<vmem>>, vector<256x128xf32>
    %168 = arith.addf %167, %166 : vector<256x128xf32>
    %c0_165 = arith.constant 0 : index
    %c0_166 = arith.constant 0 : index
    %169 = vector.load %arg8[%c0_165, %c0_166] : memref<256x128xf32, #tpu.memory_space<vmem>>, vector<256x128xf32>
    tpu.vector_store %arg8[%c0_165, %c0_166], %168 {strides = array<i32>} : memref<256x128xf32, #tpu.memory_space<vmem>>, vector<256x128xf32>,
    %c0_167 = arith.constant 0 : index
    %c0_168 = arith.constant 0 : index
    %170 = vector.load %arg8[%c0_167, %c0_168] : memref<256x128xf32, #tpu.memory_space<vmem>>, vector<256x128xf32>
    %c0_169 = arith.constant 0 : index
    %c0_170 = arith.constant 0 : index
    %171 = vector.load %arg5[%c0_169, %c0_170] : memref<1x128xf32, #tpu.memory_space<vmem>>, vector<1x128xf32>
    %172 = vector.broadcast %171 : vector<1x128xf32> to vector<256x128xf32>
    %173 = arith.addf %170, %172 : vector<256x128xf32>
    %cst_171 = arith.constant 2.000000e+01 : f32
    %174 = vector.broadcast %cst_171 : f32 to vector<256x128xf32>
    %175 = arith.minimumf %173, %174 : vector<256x128xf32>
    %176 = math.exp %175 : vector<256x128xf32>
    %177 = arith.mulf %176, %176 : vector<256x128xf32>
    %cst_172 = arith.constant 2.000000e+00 : f32
    %178 = vector.broadcast %cst_172 : f32 to vector<256x128xf32>
    %179 = arith.mulf %178, %176 : vector<256x128xf32>
    %180 = arith.addf %177, %179 : vector<256x128xf32>
    %cst_173 = arith.constant 2.000000e+00 : f32
    %181 = vector.broadcast %cst_173 : f32 to vector<256x128xf32>
    %182 = arith.addf %180, %181 : vector<256x128xf32>
    %183 = tpu.reciprocal %182 {approx = true} : vector<256x128xf32> -> vector<256x128xf32>
    %184 = arith.mulf %180, %183 : vector<256x128xf32>
    %cst_174 = arith.constant 2.000000e+01 : f32
    %185 = vector.broadcast %cst_174 : f32 to vector<256x128xf32>
    %186 = arith.cmpf ogt, %173, %185 : vector<256x128xf32>
    %187 = arith.mulf %173, %184 : vector<256x128xf32>
    %188 = arith.select %186, %173, %187 : vector<256x128xi1>, vector<256x128xf32>
    %c0_175 = arith.constant 0 : index
    %c0_176 = arith.constant 0 : index
    %c0_177 = arith.constant 0 : index
    %c0_178 = arith.constant 0 : index
    %189 = vector.load %arg1[%c0_175, %c0_176, %c0_177, %c0_178] : memref<1x16x16x128xf32, #tpu.memory_space<vmem>>, vector<1x16x16x128xf32>
    %190 = vector.shape_cast %189 : vector<1x16x16x128xf32> to vector<256x128xf32>
    %191 = arith.addf %188, %190 : vector<256x128xf32>
    %192 = vector.shape_cast %191 : vector<256x128xf32> to vector<1x16x16x128xf32>
    %c0_179 = arith.constant 0 : index
    %c0_180 = arith.constant 0 : index
    %c0_181 = arith.constant 0 : index
    %c0_182 = arith.constant 0 : index
    %193 = vector.load %arg6[%c0_179, %c0_180, %c0_181, %c0_182] : memref<1x16x16x128xf32, #tpu.memory_space<vmem>>, vector<1x16x16x128xf32>
    tpu.vector_store %arg6[%c0_179, %c0_180, %c0_181, %c0_182], %192 {strides = array<i32>} : memref<1x16x16x128xf32, #tpu.memory_space<vmem>>, vector<1x16x16x128xf32>,
    return
  }
  func.func @transform_0(%arg0: i32) -> (i32, i32, i32, i32) {
    %c0_i32 = arith.constant 0 : i32
    %c0_i32_0 = arith.constant 0 : i32
    %c0_i32_1 = arith.constant 0 : i32
    %c0_i32_2 = arith.constant 0 : i32
    return %arg0, %c0_i32, %c0_i32_0, %c0_i32_1 : i32, i32, i32, i32
  }
  func.func @transform_1(%arg0: i32) -> (i32, i32) {
    %c0_i32 = arith.constant 0 : i32
    %c0_i32_0 = arith.constant 0 : i32
    %c0_i32_1 = arith.constant 0 : i32
    return %c0_i32, %c0_i32_0 : i32, i32
  }
  func.func @transform_2(%arg0: i32) -> (i32, i32) {
    %c0_i32 = arith.constant 0 : i32
    %c0_i32_0 = arith.constant 0 : i32
    %c0_i32_1 = arith.constant 0 : i32
    return %c0_i32, %c0_i32_0 : i32, i32
  }
  func.func @transform_3(%arg0: i32) -> (i32, i32, i32, i32) {
    %c0_i32 = arith.constant 0 : i32
    %c0_i32_0 = arith.constant 0 : i32
    %c0_i32_1 = arith.constant 0 : i32
    %c0_i32_2 = arith.constant 0 : i32
    %c0_i32_3 = arith.constant 0 : i32
    return %c0_i32, %c0_i32_0, %c0_i32_1, %c0_i32_2 : i32, i32, i32, i32
  }
  func.func @transform_4(%arg0: i32) -> (i32, i32) {
    %c0_i32 = arith.constant 0 : i32
    %c0_i32_0 = arith.constant 0 : i32
    %c0_i32_1 = arith.constant 0 : i32
    return %c0_i32, %c0_i32_0 : i32, i32
  }
  func.func @transform_5(%arg0: i32) -> (i32, i32, i32, i32) {
    %c0_i32 = arith.constant 0 : i32
    %c0_i32_0 = arith.constant 0 : i32
    %c0_i32_1 = arith.constant 0 : i32
    %c0_i32_2 = arith.constant 0 : i32
    return %arg0, %c0_i32, %c0_i32_0, %c0_i32_1 : i32, i32, i32, i32
  }
}

</mosaic_0001>

<bundles_post_ra>
// kernel: tpu_custom_call.1
= control target key start
LH: loop header
LB: loop body
LE: loop exit
PB: predicated region body
PF: predicated region fallthrough
CT: control target
= control target key end

     0   :  { %10 = vsyncpa [#allocation5], 0  ;;  %s9870_s0 = inlined_call_operand.hbm [shape: f32[2,16,16,128], index: 0, kind: input, shape index: {}]   ;;  %s9871_s1 = inlined_call_operand.hbm [shape: bf16[128,128], index: 1, kind: input, shape index: {}]   ;;  %s9872_s2 = inlined_call_operand.vmem [shape: f32[1,128], index: 2, kind: input, shape index: {}]   ;;  %s9873_s3 = inlined_call_operand.hbm [shape: bf16[3,3,128,128], index: 3, kind: input, shape index: {}]   ;;  %s9874_s4 = inlined_call_operand.vmem [shape: f32[1,128], index: 4, kind: input, shape index: {}]   ;;  %s9875_s5 = inlined_call_operand.hbm [shape: f32[2,16,16,128], index: 5, kind: output, shape index: {}]  }
   0x1   :  { %12 = vsyncpa [#allocation5 + $0x1], 0 }
   0x2   :  { %13 = vsyncpa [#allocation8], 0 }
   0x3   :  { %14 = vsyncpa [#allocation6], 0 }
   0x4   :  { %16 = vsyncpa [#allocation6 + $0x1], 0  ;;  %s7951_s18 = smov 0   ;;  %s7953_s19 = smov 0  }
   0x5   :  { %s7955_s20 = smov 0   ;;  %s7957_s21 = smov 0  }
   0x6 LB: > { %s7972_s22 = sadd.s32 4294967295, %s7910_s21   ;;  %s5975_s23 = sadd.s32 4294967294, %s7910_s21   ;;  %s7910_s21 = sphi %s7957_s21, %s10051_s21   ;;  %s7906_s20 = sphi %s7955_s20, %s10050_s20   ;;  %s7902_s19 = sphi %s7953_s19, %s10049_s19   ;;  %s7898_s18 = sphi %s7951_s18, %s10048_s18  }
   0x7   : > { %p42_p0 = scmp.ne.s32.totalorder %s7902_s19, %s7898_s18  ;;  %p43_p1 = scmp.eq.s32.totalorder %s7972_s22, 0 }
   0x8   : > { %p150_p2 = scmp.eq.s32.totalorder %s7972_s22, 1  ;;  %p156_p3 = scmp.eq.s32.totalorder %s5975_s23, 1 }
   0x9   : > { %p7981_p4 = por %p43_p1, %p42_p0  ;;  %p5976_p5 = scmp.ge.s32.totalorder %s7910_s21, 1 }
   0xa   : > { %p7986_p6 = por %p156_p3, %p42_p0  ;;  %p163_p7 = scmp.lt.s32.totalorder %s7910_s21, 3 }
   0xb   : > { %s174_s28 = sshll.u32 %s9871_s1, 4  ;;  %s7912_s30 = smov [#allocation7]   ;;  %s175_s28 = int_to_ptr.hbm [resolvable:$true] %s174_s28 }
   0xc   : > { %p7994_p8 = pnand %p5976_p5, %p163_p7  ;;  %s176_s6 = sshll.u32 %s7912_s30, 4  ;;  %s177_s6 = int_to_ptr.vmem [resolvable:$true] %s176_s6 }
   0xd   : > { %s191_s9 = sshll.u32 %s9873_s3, 4  ;;  %s7913_s10 = smov 64   ;;  %s192_s9 = int_to_ptr.hbm [resolvable:$true] %s191_s9 }
   0xe   : > { %p7428_p9 = pneg %p7994_p8  ;;  %s7914_s11 = smov 4  }
   0xf   : > { %s7915_s12 = smov [#allocation9]   ;;  %s8007_s14 = sadd.s32 1, %s7910_s21  }
  0x10   : > { %p7429_p10 = pnand %p7428_p9, %p43_p1  ;;  %s193_s13 = sshll.u32 %s7915_s12, 4  ;;  %s194_s13 = int_to_ptr.vmem [resolvable:$true] %s193_s13 }
  0x11   : > { %s29_s15 = sadd.s32 1, %s7906_s20  ;;  %s26_s16 = ssub.s32 %s7910_s21, %s8007_s14 }
  0x12   : > { %7431 = dma.hbm_to_vmem [thread:$0]  (!%p7429_p10), %s175_s28, 1024, %s177_s6, [#allocation8], %s7913_s10, %s7913_s10, %s7914_s11  }
  0x13   : > { %7434 = dma.hbm_to_vmem [thread:$0]  (!%p7429_p10), %s192_s9, 9216, %s194_s13, [#allocation8], %s7913_s10, %s7913_s10, %s7914_s11  }
  0x14   : > { %p36_p12 = scmp.ne.s32.totalorder %s7906_s20, %s7902_s19  ;;  %p27_p13 = scmp.eq.s32.totalorder %s26_s16, 0 }
  0x15   : > { %p37_p0 = scmp.eq.s32.totalorder %s7910_s21, 0  ;;  %p7445_p5 = scmp.lt.s32.totalorder %s7910_s21, 2 }
  0x16   : > { %p8017_p3 = por %p150_p2, %p36_p12  ;;  %s210_s26 = sand.u32 1, %s7906_s20  }
  0x17   : > { %s8023_s23 = scalar_select %p27_p13, %s7906_s20, %s29_s15  }
  0x18   : > { %p38_p7 = por %p37_p0, %p36_p12  ;;  %s5980_s27 = sshll.u32 %s210_s26, 8 }
  0x19   : > { %s6889_s28 = sshll.u32 %s7910_s21, 8  ;;  %s214_s8 = scalar_lea.vmem [#allocation4], %s5980_s27 }
  0x1a   : > { %s219_s7 = scalar_lea.hbm %s9870_s0, %s6889_s28  ;;  %s222_s9 = sshll.u32 %s214_s8, 4  ;;  %s223_s9 = int_to_ptr.vmem [resolvable:$true] %s222_s9 }
  0x1b   : > { %s220_s10 = sshll.u32 %s219_s7, 4  ;;  %p8030_p2 = pnand %p7445_p5, %p38_p7  ;;  %s221_s10 = int_to_ptr.hbm [resolvable:$true] %s220_s10 }
  0x1c   : > { %s211_s12 = scalar_lea.sflag [#allocation5], %s210_s26  ;;  %s7810_s13 = sshra.s32 %s221_s10, 4  ;;  %s7811_s13 = int_to_ptr.hbm [resolvable:$true] %s7810_s13 }
  0x1d   : > { %s7812_s15 = scalar_lea.hbm %s7811_s13, 256  ;;  %p7814_p10 = pneg %p8030_p2 }
  0x1e   : > { %p7813_p9 = scmp.ne.s32.totalorder %s7811_s13, %s7812_s15  ;;  %s7817_s28 = scalar_lea.hbm %s9870_s0, 512 }
  0x1f   : > { %p7818_p0 = scmp.lt.s32.totalorder %s7811_s13, %s9870_s0  ;;  %p7819_p5 = scmp.lt.s32.totalorder %s7817_s28, %s7812_s15 }
  0x20   : > { %p7815_p12 = pnand %p7814_p10, %p7813_p9 }
  0x21   : > { %p7820_p7 = por %p7819_p5, %p7818_p0 }
  0x22   : > { %p7816_p13 = pneg %p7815_p12 }
  0x24   : > { %p7821_p11 = pnand %p7820_p7, %p7816_p13 }
  0x26   : > { %7824 = shalt.err (!%p7821_p11)
}
  0x27   : > { %s7916_s26 = smov 128   ;;  %s7917_s7 = smov 8  }
  0x28   : > { %7438 = dma.hbm_to_vmem [thread:$0]  (!%p8030_p2), %s221_s10, 4096, %s223_s9, %s211_s12, %s7916_s26, %s7916_s26, %s7917_s7  }
  0x29   : > { %234 = sbr.rel (%p7994_p8) target bundleno = 1207 (0x4b7), region = 40 }
  0x2e   : > { %s8047_s8 = sand.u32 1, %s7902_s19  }
  0x2f   : > { %s5984_s13 = sshll.u32 %s8047_s8, 8  ;;  %s237_s15 = scalar_lea.sflag [#allocation5], %s8047_s8 }
  0x30   : > { %s8053_s16 = scalar_lea.vmem [#allocation4], %s5984_s13 }
  0x31   : > { %7885 = dma.done.wait (%p7981_p4), %s237_s15, 4096  }
  0x32   : > { %7887 = vsyncadd (%p7981_p4), %s237_s15, 4294963200 }
  0x33   : > { %7889 = dma.done.wait (%p43_p1), [#allocation8], 10240  }
  0x34   : > { %7891 = vsyncadd (%p43_p1), [#allocation8], 4294957056  ;;  %v6897_v0 = vld [vmem:[#allocation7 + $0x38] sm:$0xff]  ;;  %v6896_v1 = vld [vmem:[#allocation7 + $0x30] sm:$0xff]  ;;  %vm1349_vm1 = vcmask 1040384   ;;  %vm1574_vm5 = vcmask 1046528  }
  0x35   : > { %395 = vmatpush.bf16.msra.mxu0 %v6897_v0  ;;  %7400 = vmatpush.bf16.msra.mxu2 %v6897_v0  ;;  %v6895_v2 = vld [vmem:[#allocation7 + $0x28] sm:$0xff]  ;;  %v6894_v3 = vld [vmem:[#allocation7 + $0x20] sm:$0xff]  ;;  %v6893_v4 = vld [vmem:[#allocation7 + $0x18] sm:$0xff]  ;;  %s9370_s27 = scalar_lea.vmem [#allocation10], %s5984_s13  ;;  %s7114_s6 = sshll.u32 %s7972_s22, 8 }
  0x36   : > { %v6892_v5 = vld [vmem:[#allocation7 + $0x10] sm:$0xff]  ;;  %v6891_v6 = vld [vmem:[#allocation7 + $0x8] sm:$0xff]  ;;  %v6890_v7 = vld [vmem:[#allocation7] sm:$0xff]  ;;  %s5879_s13 = scalar_lea.hbm %s9875_s5, %s7114_s6  ;;  %s5880_s15 = sshll.u32 %s9370_s27, 4  ;;  %s5881_s15 = int_to_ptr.vmem [resolvable:$true] %s5880_s15 }
  0x37   : > { %v279_v8 = vld [vmem:[%s8053_s16] sm:$0xff]  ;;  %v280_v9 = vld [vmem:[%s8053_s16 + $0x8] sm:$0xff]  ;;  %v281_v14 = vld [vmem:[%s8053_s16 + $0x10] sm:$0xff]  ;;  %s5882_s24 = sshll.u32 %s5879_s13, 4  ;;  %s5868_s22 = scalar_lea.sflag [#allocation6], %s8047_s8  ;;  %s5883_s24 = int_to_ptr.hbm [resolvable:$true] %s5882_s24 }
  0x38   : > { %v311_v10 = vpack.c.bf16 %v280_v9, %v279_v8  ;;  %v295_v11 = vld [vmem:[%s8053_s16 + $0x80] sm:$0xff]  ;;  %v296_v12 = vld [vmem:[%s8053_s16 + $0x88] sm:$0xff]  ;;  %v282_v15 = vld [vmem:[%s8053_s16 + $0x18] sm:$0xff]  ;;  %s7854_s29 = sshra.s32 %s5883_s24, 4  ;;  %s7860_s12 = scalar_lea.hbm %s9875_s5, 512  ;;  %s7855_s29 = int_to_ptr.hbm [resolvable:$true] %s7854_s29 }
  0x39   : > { %396 = vmatpush.bf16.msra.mxu0 %v6896_v1  ;;  %7401 = vmatpush.bf16.msra.mxu2 %v6896_v1  ;;  %v319_v13 = vpack.c.bf16 %v296_v12, %v295_v11  ;;  %v312_v16 = vpack.c.bf16 %v282_v15, %v281_v14  ;;  %v297_v17 = vld [vmem:[%s8053_s16 + $0x90] sm:$0xff]  ;;  %v298_v18 = vld [vmem:[%s8053_s16 + $0x98] sm:$0xff]  ;;  %v283_v20 = vld [vmem:[%s8053_s16 + $0x20] sm:$0xff]  ;;  %s7856_s9 = scalar_lea.hbm %s7855_s29, 256  ;;  %p7861_p11 = scmp.lt.s32.totalorder %s7855_s29, %s9875_s5 }
  0x3a   : > { %v320_v19 = vpack.c.bf16 %v298_v18, %v297_v17  ;;  %v284_v21 = vld [vmem:[%s8053_s16 + $0x28] sm:$0xff]  ;;  %v299_v23 = vld [vmem:[%s8053_s16 + $0xa0] sm:$0xff]  ;;  %v285_v26 = vld [vmem:[%s8053_s16 + $0x30] sm:$0xff]  ;;  %p7857_p1 = scmp.ne.s32.totalorder %s7855_s29, %s7856_s9  ;;  %p7862_p2 = scmp.lt.s32.totalorder %s7860_s12, %s7856_s9 }
  0x3b   : > { %v313_v22 = vpack.c.bf16 %v284_v21, %v283_v20  ;;  %v300_v24 = vld [vmem:[%s8053_s16 + $0xa8] sm:$0xff]  ;;  %v286_v27 = vld [vmem:[%s8053_s16 + $0x38] sm:$0xff]  ;;  %v301_v29 = vld [vmem:[%s8053_s16 + $0xb0] sm:$0xff] }
  0x3c   : > { %v321_v25 = vpack.c.bf16 %v300_v24, %v299_v23  ;;  %v314_v28 = vpack.c.bf16 %v286_v27, %v285_v26  ;;  %v302_v30 = vld [vmem:[%s8053_s16 + $0xb8] sm:$0xff]  ;;  %v287_v32 = vld [vmem:[%s8053_s16 + $0x40] sm:$0xff]  ;;  %v288_v33 = vld [vmem:[%s8053_s16 + $0x48] sm:$0xff]  ;;  %p7858_p4 = pnand %p7857_p1, %p8017_p3  ;;  %p7863_p9 = por %p7862_p2, %p7861_p11 }
  0x3d   : > { %397 = vmatpush.bf16.msra.mxu0 %v6895_v2  ;;  %7402 = vmatpush.bf16.msra.mxu2 %v6895_v2  ;;  %v322_v31 = vpack.c.bf16 %v302_v30, %v301_v29  ;;  %v315_v34 = vpack.c.bf16 %v288_v33, %v287_v32  ;;  %v303_v35 = vld [vmem:[%s8053_s16 + $0xc0] sm:$0xff]  ;;  %v304_v36 = vld [vmem:[%s8053_s16 + $0xc8] sm:$0xff]  ;;  %v289_v38 = vld [vmem:[%s8053_s16 + $0x50] sm:$0xff] }
  0x3e   : > { %v323_v37 = vpack.c.bf16 %v304_v36, %v303_v35  ;;  %v290_v39 = vld [vmem:[%s8053_s16 + $0x58] sm:$0xff]  ;;  %v305_v41 = vld [vmem:[%s8053_s16 + $0xd0] sm:$0xff]  ;;  %v291_v44 = vld [vmem:[%s8053_s16 + $0x60] sm:$0xff]  ;;  %p7859_p8 = pneg %p7858_p4 }
  0x3f   : > { %v316_v40 = vpack.c.bf16 %v290_v39, %v289_v38  ;;  %v306_v42 = vld [vmem:[%s8053_s16 + $0xd8] sm:$0xff]  ;;  %v292_v45 = vld [vmem:[%s8053_s16 + $0x68] sm:$0xff]  ;;  %v307_v47 = vld [vmem:[%s8053_s16 + $0xe0] sm:$0xff] }
  0x40   : > { %v324_v43 = vpack.c.bf16 %v306_v42, %v305_v41  ;;  %v317_v46 = vpack.c.bf16 %v292_v45, %v291_v44  ;;  %v308_v48 = vld [vmem:[%s8053_s16 + $0xe8] sm:$0xff]  ;;  %v6945_v50 = vld [vmem:[#allocation9 + $0x78] sm:$0xff]  ;;  %v6944_v52 = vld [vmem:[#allocation9 + $0x70] sm:$0xff]  ;;  %p7864_p10 = pnand %p7863_p9, %p7859_p8 }
  0x41   : > { %398 = vmatpush.bf16.msra.mxu0 %v6894_v3  ;;  %7403 = vmatpush.bf16.msra.mxu2 %v6894_v3  ;;  %v325_v49 = vpack.c.bf16 %v308_v48, %v307_v47  ;;  %v6921_v51 = vld [vmem:[#allocation9 + $0x38] sm:$0xff]  ;;  %v6920_v53 = vld [vmem:[#allocation9 + $0x30] sm:$0xff]  ;;  %v6943_v54 = vld [vmem:[#allocation9 + $0x68] sm:$0xff]  ;;  %v868_v47 = vlaneseq }
  0x42   : > { %2171 = vmatpush.bf16.msra.mxu1 %v6921_v51  ;;  %7408 = vmatpush.bf16.msra.mxu3 %v6921_v51  ;;  %v293_v55 = vld [vmem:[%s8053_s16 + $0x70] sm:$0xff]  ;;  %v294_v56 = vld [vmem:[%s8053_s16 + $0x78] sm:$0xff]  ;;  %v6919_v57 = vld [vmem:[#allocation9 + $0x28] sm:$0xff] }
  0x43   : > { %v6942_v58 = vld [vmem:[#allocation9 + $0x60] sm:$0xff]  ;;  %v318_v59 = vpack.c.bf16 %v294_v56, %v293_v55  ;;  %v309_v60 = vld [vmem:[%s8053_s16 + $0xf0] sm:$0xff]  ;;  %v310_v61 = vld [vmem:[%s8053_s16 + $0xf8] sm:$0xff]  ;;  %v8120_v55 = vshrl.u32 %v868_v47, 7 }
  0x44   : > { %v326_v62 = vpack.c.bf16 %v310_v61, %v309_v60  ;;  %v6918_v63 = vld [vmem:[#allocation9 + $0x20] sm:$0xff]  ;;  %v6941_v0 = vld [vmem:[#allocation9 + $0x58] sm:$0xff]  ;;  %v6940_v3 = vld [vmem:[#allocation9 + $0x50] sm:$0xff] }
  0x45   : > { %399 = vmatpush.bf16.msra.mxu0 %v6893_v4  ;;  %7404 = vmatpush.bf16.msra.mxu2 %v6893_v4  ;;  %v6917_v1 = vld [vmem:[#allocation9 + $0x18] sm:$0xff]  ;;  %v6916_v4 = vld [vmem:[#allocation9 + $0x10] sm:$0xff]  ;;  %v6915_v9 = vld [vmem:[#allocation9 + $0x8] sm:$0xff] }
  0x46   : > { %2172 = vmatpush.bf16.msra.mxu1 %v6920_v53  ;;  %7409 = vmatpush.bf16.msra.mxu3 %v6920_v53  ;;  %v6993_v2 = vld [vmem:[#allocation9 + $0xf8] sm:$0xff]  ;;  %v8098_v8 = vld [vmem:[%s9872_s2] ss:$0 sm:$0xff]  ;;  %v6938_v11 = vld [vmem:[#allocation9 + $0x40] sm:$0xff] }
  0x47   : > { %v6914_v14 = vld [vmem:[#allocation9] sm:$0xff]  ;;  %v6989_v20 = vld [vmem:[#allocation9 + $0xd8] sm:$0xff]  ;;  %v6988_v23 = vld [vmem:[#allocation9 + $0xd0] sm:$0xff] }
  0x48   : > { %v6990_v15 = vld [vmem:[#allocation9 + $0xe0] sm:$0xff]  ;;  %v6987_v29 = vld [vmem:[#allocation9 + $0xc8] sm:$0xff] }
  0x49   : > { %400 = vmatpush.bf16.msra.mxu0 %v6892_v5  ;;  %7405 = vmatpush.bf16.msra.mxu2 %v6892_v5  ;;  %v6992_v5 = vld [vmem:[#allocation9 + $0xf0] sm:$0xff]  ;;  %v6986_v36 = vld [vmem:[#allocation9 + $0xc0] sm:$0xff] }
  0x4a   : > { %2173 = vmatpush.bf16.msra.mxu1 %v6919_v57  ;;  %7410 = vmatpush.bf16.msra.mxu3 %v6919_v57 }
  0x4d   : > { %401 = vmatpush.bf16.msra.mxu0 %v6891_v6  ;;  %7406 = vmatpush.bf16.msra.mxu2 %v6891_v6  ;;  %v6939_v6 = vld [vmem:[#allocation9 + $0x48] sm:$0xff] }
  0x4e   : > { %2174 = vmatpush.bf16.msra.mxu1 %v6918_v63  ;;  %7411 = vmatpush.bf16.msra.mxu3 %v6918_v63 }
  0x51   : > { %402 = vmatpush.bf16.msra.mxu0 %v6890_v7  ;;  %7407 = vmatpush.bf16.msra.mxu2 %v6890_v7  ;;  %v7918_v7 = vmov 0  }
  0x52   : > { %2175 = vmatpush.bf16.msra.mxu1 %v6917_v1  ;;  %7412 = vmatpush.bf16.msra.mxu3 %v6917_v1  ;;  %1968 = vst [vmem:[#allocation2 + $0x90] sm:$0xf] %v7918_v7 }
  0x53   : > { %1969 = vst [vmem:[#allocation2 + $0x94] sm:$0xf] %v7918_v7 }
  0x54   : > { %403 = vmatmul.bf16.vlgmr.msra.gmra.mxu0 %v311_v10  ;;  %443 = vmatmul.bf16.vlgmr.msra.gmra.mxu2 %v319_v13  ;;  %1962 = vst [vmem:[#allocation2] sm:$0xf] %v7918_v7  ;;  %v6991_v10 = vld [vmem:[#allocation9 + $0xe8] sm:$0xff] }
  0x55   : > { %2485 = vmatpush.bf16.msrb.mxu2 %v6945_v50  ;;  %3241 = vmatpush.bf16.msrb.mxu0 %v6993_v2  ;;  %1963 = vst [vmem:[#allocation2 + $0x4] sm:$0xf] %v7918_v7 }
  0x56   : > { %2176 = vmatpush.bf16.msra.mxu1 %v6916_v4  ;;  %7413 = vmatpush.bf16.msra.mxu3 %v6916_v4  ;;  %1965 = vst [vmem:[#allocation2 + $0x88] sm:$0xf] %v7918_v7 }
  0x57   : > { %1966 = vst [vmem:[#allocation2 + $0x8c] sm:$0xf] %v7918_v7 }
  0x58   : > { %1971 = vst [vmem:[#allocation2 + $0x118] sm:$0xf] %v7918_v7 }
  0x59   : > { %2486 = vmatpush.bf16.msrb.mxu2 %v6944_v52  ;;  %3242 = vmatpush.bf16.msrb.mxu0 %v6992_v5  ;;  %1972 = vst [vmem:[#allocation2 + $0x11c] sm:$0xf] %v7918_v7 }
  0x5a   : > { %2177 = vmatpush.bf16.msra.mxu1 %v6915_v9  ;;  %7414 = vmatpush.bf16.msra.mxu3 %v6915_v9  ;;  %1974 = vst [vmem:[#allocation2 + $0x120] sm:$0xf] %v7918_v7 }
  0x5b   : > { %1975 = vst [vmem:[#allocation2 + $0x124] sm:$0xf] %v7918_v7 }
  0x5c   : > { %1977 = vst [vmem:[#allocation2 + $0x1a8] sm:$0xf] %v7918_v7  ;;  %v6898_v18 = vld [vmem:[#allocation2] sm:$0xff] }
  0x5d   : > { %2487 = vmatpush.bf16.msrb.mxu2 %v6943_v54  ;;  %3243 = vmatpush.bf16.msrb.mxu0 %v6991_v10  ;;  %1978 = vst [vmem:[#allocation2 + $0x1ac] sm:$0xf] %v7918_v7 }
  0x5e   : > { %2178 = vmatpush.bf16.msra.mxu1 %v6914_v14  ;;  %7415 = vmatpush.bf16.msra.mxu3 %v6914_v14 }
  0x61   : > { %2488 = vmatpush.bf16.msrb.mxu2 %v6942_v58  ;;  %3244 = vmatpush.bf16.msrb.mxu0 %v6990_v15 }
  0x62   : > { %2179 = vmatmul.bf16.vlgmr.msra.gmra.mxu1 %v6898_v18 }
  0x64   : > { %408 = vmatmul.bf16.gmra.mxu0 %v312_v16  ;;  %448 = vmatmul.bf16.gmra.mxu2 %v320_v19  ;;  %v6922_v16 = vld [vmem:[#allocation2 + $0x90] sm:$0xff] }
  0x65   : > { %2489 = vmatpush.bf16.msrb.mxu2 %v6941_v0  ;;  %3245 = vmatpush.bf16.msrb.mxu0 %v6989_v20 }
  0x69   : > { %2490 = vmatpush.bf16.msrb.mxu2 %v6940_v3  ;;  %3246 = vmatpush.bf16.msrb.mxu0 %v6988_v23 }
  0x6d   : > { %2491 = vmatpush.bf16.msrb.mxu2 %v6939_v6  ;;  %3247 = vmatpush.bf16.msrb.mxu0 %v6987_v29  ;;  %v870_v6 = vadd.s32 8, %v8120_v55 }
  0x71   : > { %2492 = vmatpush.bf16.msrb.mxu2 %v6938_v11  ;;  %3248 = vmatpush.bf16.msrb.mxu0 %v6986_v36 }
  0x74   : > { %413 = vmatmul.bf16.gmra.mxu0 %v313_v22  ;;  %453 = vmatmul.bf16.gmra.mxu2 %v321_v25 }
  0x84   : > { %418 = vmatmul.bf16.gmra.mxu0 %v314_v28  ;;  %458 = vmatmul.bf16.gmra.mxu2 %v322_v31 }
  0x94   : > { %423 = vmatmul.bf16.gmra.mxu0 %v315_v34  ;;  %463 = vmatmul.bf16.gmra.mxu2 %v323_v37 }
  0xa4   : > { %428 = vmatmul.bf16.gmra.mxu0 %v316_v40  ;;  %468 = vmatmul.bf16.gmra.mxu2 %v324_v43 }
  0xb4   : > { %433 = vmatmul.bf16.gmra.mxu0 %v317_v46  ;;  %473 = vmatmul.bf16.gmra.mxu2 %v325_v49 }
  0xc4   : > { %438 = vmatmul.bf16.gmra.mxu0 %v318_v59  ;;  %478 = vmatmul.bf16.gmra.mxu2 %v326_v62  ;;  %v905_v62 = vand.u32 15, %v8120_v55 }
  0xc6   : > { %vm8139_vm3 = vcmp.eq.s32.totalorder %v905_v62, 0 }
  0xd1   : > { %v404_v12 = vpop.f32.mrf.mxu0 }
  0xd2   : > { %v8101_v13 = vadd.f32 %v8098_v8, %v404_v12 }
  0xd4   : > { %v484_v17 = vmin.f32 %v8101_v13, 20.0  ;;  %2493 = vmatmul.bf16.vlgmr.msrb.gmra.mxu2 %v6922_v16  ;;  %vm772_vm0 = vcmp.gt.f32.partialorder %v8101_v13, 20.0  ;;  %v871_v16 = vadd.s32 16, %v8120_v55 }
  0xd6   : > { %v516_v19 = vmul.f32 1.442695, %v484_v17 }
  0xd7   : > { %v444_v33 = vpop.f32.mrf.mxu2 }
  0xd8   : > { %7492 = vpow2.f32 %v516_v19  ;;  %v8137_v10 = vadd.f32 %v8098_v8, %v444_v33 }
  0xd9   : > { %v406_v21 = vpop.f32.mrf.mxu0 }
  0xda   : > { %v8105_v22 = vadd.f32 %v8098_v8, %v406_v21  ;;  %v500_v19 = vmin.f32 %v8137_v10, 20.0  ;;  %vm788_vm12 = vcmp.gt.f32.partialorder %v8137_v10, 20.0 }
  0xdc   : > { %v485_v24 = vmin.f32 %v8105_v22, 20.0  ;;  %vm773_vm2 = vcmp.gt.f32.partialorder %v8105_v22, 20.0 }
  0xde   : > { %v7493_v25 = vpop.eup %7492  ;;  %v518_v26 = vmul.f32 1.442695, %v485_v24  ;;  %v912_v24 = vand.u32 15, %v870_v6 }
  0xdf   : > { %v580_v27 = vmul.f32 %v7493_v25, %v7493_v25  ;;  %v612_v28 = vmul.f32 2.0, %v7493_v25  ;;  %v8116_v49 = vpop.f32.mrf.mxu2 }
  0xe0   : > { %7494 = vpow2.f32 %v518_v26  ;;  %vm8171_vm6 = vcmp.eq.s32.totalorder %v912_v24, 15 }
  0xe1   : > { %v644_v30 = vadd.f32 %v612_v28, %v580_v27  ;;  %v409_v31 = vpop.f32.mrf.mxu0  ;;  %v548_v28 = vmul.f32 1.442695, %v500_v19 }
  0xe2   : > { %v8109_v32 = vadd.f32 %v8098_v8, %v409_v31 }
  0xe3   : > { %v676_v34 = vadd.f32 2.0, %v644_v30 }
  0xe4   : > { %v486_v35 = vmin.f32 %v8109_v32, 20.0  ;;  %vm774_vm4 = vcmp.gt.f32.partialorder %v8109_v32, 20.0 }
  0xe5   : > { %7496 = vrcp.f32 %v676_v34 }
  0xe6   : > { %v7495_v37 = vpop.eup %7494  ;;  %v520_v38 = vmul.f32 1.442695, %v486_v35 }
  0xe7   : > { %v581_v39 = vmul.f32 %v7495_v37, %v7495_v37  ;;  %v613_v40 = vmul.f32 2.0, %v7495_v37  ;;  %v8133_v5 = vpop.f32.mrf.mxu2 }
  0xe8   : > { %7498 = vpow2.f32 %v520_v38  ;;  %v8166_v38 = vadd.f32 %v8098_v8, %v8116_v49 }
  0xe9   : > { %v645_v41 = vadd.f32 %v613_v40, %v581_v39  ;;  %v411_v42 = vpop.f32.mrf.mxu0 }
  0xea   : > { %v8113_v43 = vadd.f32 %v8098_v8, %v411_v42  ;;  %vm789_vm14 = vcmp.gt.f32.partialorder %v8166_v38, 20.0 }
  0xeb   : > { %v7497_v44 = vpop.eup %7496  ;;  %v677_v45 = vadd.f32 2.0, %v645_v41 }
  0xec   : > { %v740_v46 = vmul.f32 %v7497_v44, %v644_v30  ;;  %v487_v48 = vmin.f32 %v8113_v43, 20.0  ;;  %v919_v30 = vand.u32 15, %v871_v16  ;;  %vm775_vm8 = vcmp.gt.f32.partialorder %v8113_v43, 20.0 }
  0xed   : > { %7500 = vrcp.f32 %v677_v45 }
  0xee   : > { %v7499_v50 = vpop.eup %7498  ;;  %v804_v51 = vmul.f32 %v740_v46, %v8101_v13  ;;  %v522_v52 = vmul.f32 1.442695, %v487_v48  ;;  %v501_v46 = vmin.f32 %v8166_v38, 20.0  ;;  %vm8180_vm7 = vcmp.eq.s32.totalorder %v919_v30, 0 }
  0xef   : > { %v582_v53 = vmul.f32 %v7499_v50, %v7499_v50  ;;  %v614_v54 = vmul.f32 2.0, %v7499_v50 }
  0xf0   : > { %7502 = vpow2.f32 %v522_v52  ;;  %v8123_v56 = vsel %vm772_vm0, %v8101_v13, %v804_v51 }
  0xf1   : > { %v646_v57 = vadd.f32 %v614_v54, %v582_v53  ;;  %v414_v58 = vpop.f32.mrf.mxu0  ;;  %v1350_v63 = vrot.slane %v8123_v56, 7  ;;  %v1575_v42 = vrot.slane %v8123_v56, 1  ;;  %v550_v54 = vmul.f32 1.442695, %v501_v46 }
  0xf2   : > { %v8126_v59 = vadd.f32 %v8098_v8, %v414_v58 }
  0xf3   : > { %v7501_v60 = vpop.eup %7500  ;;  %v678_v61 = vadd.f32 2.0, %v646_v57  ;;  %v1445_v12 = vsel %vm1349_vm1, 0.0, %v1350_v63 }
  0xf4   : > { %v741_v0 = vmul.f32 %v7501_v60, %v645_v41  ;;  %v488_v1 = vmin.f32 %v8126_v59, 20.0  ;;  %v8175_v41 = vpop.f32.mrf.mxu2  ;;  %vm776_vm9 = vcmp.gt.f32.partialorder %v8126_v59, 20.0 }
  0xf5   : > { %7504 = vrcp.f32 %v678_v61 }
  0xf6   : > { %v7503_v2 = vpop.eup %7502  ;;  %v805_v3 = vmul.f32 %v741_v0, %v8105_v22  ;;  %v524_v4 = vmul.f32 1.442695, %v488_v1 }
  0xf7   : > { %v583_v7 = vmul.f32 %v7503_v2, %v7503_v2  ;;  %v615_v9 = vmul.f32 2.0, %v7503_v2 }
  0xf8   : > { %v8145_v13 = vsel %vm773_vm2, %v8105_v22, %v805_v3  ;;  %7506 = vpow2.f32 %v524_v4  ;;  %v1510_v22 = vsel %vm8139_vm3, 0.0, %v1445_v12 }
  0xf9   : > { %v1351_v14 = vrot.slane %v8145_v13, 7  ;;  %v7198_v15 = vpack.c.bf16 %v8145_v13, %v8123_v56  ;;  %v647_v17 = vadd.f32 %v615_v9, %v583_v7  ;;  %v416_v18 = vpop.f32.mrf.mxu0  ;;  %v1576_v35 = vrot.slane %v8145_v13, 1 }
  0xfa   : > { %v8153_v20 = vadd.f32 %v8098_v8, %v416_v18  ;;  %v872_v7 = vadd.s32 24, %v8120_v55 }
  0xfb   : > { %v7505_v21 = vpop.eup %7504  ;;  %v1352_v23 = vsel %vm1349_vm1, %v1350_v63, %v1351_v14  ;;  %7199 = vst [vmem:[#allocation2 + $0x98] sm:$0xff] %v7198_v15   ;;  %v679_v25 = vadd.f32 2.0, %v647_v17  ;;  %v1577_v51 = vsel %vm1574_vm5, %v1575_v42, %v1576_v35 }
  0xfc   : > { %v7118_v26 = vpack.c.bf16 %v1352_v23, %v1510_v22  ;;  %v742_v27 = vmul.f32 %v7505_v21, %v646_v57  ;;  %v489_v29 = vmin.f32 %v8153_v20, 20.0  ;;  %v873_v21 = vadd.s32 32, %v8120_v55  ;;  %v8213_v24 = vpop.f32.mrf.mxu2 }
  0xfd   : > { %7508 = vrcp.f32 %v679_v25  ;;  %vm777_vm13 = vcmp.gt.f32.partialorder %v8153_v20, 20.0 }
  0xfe   : > { %v7507_v31 = vpop.eup %7506  ;;  %7119 = vst [vmem:[#allocation2 + $0x8] sm:$0xff] %v7118_v26   ;;  %v806_v33 = vmul.f32 %v742_v27, %v8109_v32  ;;  %7510 = vpow2.f32 %v548_v28  ;;  %v526_v34 = vmul.f32 1.442695, %v489_v29 }
  0xff   : > { %v584_v36 = vmul.f32 %v7507_v31, %v7507_v31  ;;  %v616_v37 = vmul.f32 2.0, %v7507_v31  ;;  %v926_v31 = vand.u32 15, %v872_v7 }
 0x100   : > { %v8169_v39 = vsel %vm774_vm4, %v8109_v32, %v806_v33  ;;  %7512 = vpow2.f32 %v526_v34  ;;  %v933_v33 = vand.u32 15, %v873_v21 }
 0x101   : > { %v1578_v44 = vrot.slane %v8169_v39, 1  ;;  %v648_v45 = vadd.f32 %v616_v37, %v584_v36  ;;  %v419_v47 = vpop.f32.mrf.mxu0  ;;  %v1353_v57 = vrot.slane %v8169_v39, 7  ;;  %vm8230_vm10 = vcmp.eq.s32.totalorder %v926_v31, 15 }
 0x102   : > { %v8185_v32 = vadd.f32 %v8098_v8, %v419_v47  ;;  %v6923_v49 = vld [vmem:[#allocation2 + $0x98] sm:$0xff]  ;;  %vm8235_vm11 = vcmp.eq.s32.totalorder %v933_v33, 0 }
 0x103   : > { %v7509_v50 = vpop.eup %7508  ;;  %v1579_v52 = vsel %vm1574_vm5, %v1576_v35, %v1578_v44  ;;  %v680_v53 = vadd.f32 2.0, %v648_v45  ;;  %2498 = vmatmul.bf16.gmra.mxu2 %v6923_v49  ;;  %v1354_v15 = vsel %vm1349_vm1, %v1351_v14, %v1353_v57 }
 0x104   : > { %v7511_v56 = vpop.eup %7510  ;;  %v1736_v58 = vsel %vm8171_vm6, 0.0, %v1579_v52  ;;  %v743_v60 = vmul.f32 %v7509_v50, %v647_v17  ;;  %v490_v61 = vmin.f32 %v8185_v32, 20.0  ;;  %v8206_v17 = vadd.f32 %v8098_v8, %v8133_v5 }
 0x105   : > { %v7278_v62 = vpack.c.bf16 %v1736_v58, %v1577_v51  ;;  %7514 = vrcp.f32 %v680_v53  ;;  %v596_v63 = vmul.f32 %v7511_v56, %v7511_v56  ;;  %v628_v0 = vmul.f32 2.0, %v7511_v56  ;;  %v6899_v1 = vld [vmem:[#allocation2 + $0x8] sm:$0xff] }
 0x106   : > { %v6970_v2 = vld [vmem:[#allocation2 + $0x8] sm:$0xff]  ;;  %v7513_v3 = vpop.eup %7512  ;;  %v807_v4 = vmul.f32 %v743_v60, %v8113_v43  ;;  %7516 = vpow2.f32 %v550_v54  ;;  %v528_v6 = vmul.f32 1.442695, %v490_v61  ;;  %2184 = vmatmul.bf16.gmra.mxu1 %v6899_v1  ;;  %v502_v14 = vmin.f32 %v8206_v17, 20.0 }
 0x107   : > { %7279 = vst [vmem:[#allocation2 + $0x128] sm:$0xff] %v7278_v62   ;;  %v660_v9 = vadd.f32 %v628_v0, %v596_v63  ;;  %v585_v11 = vmul.f32 %v7513_v3, %v7513_v3  ;;  %v617_v12 = vmul.f32 2.0, %v7513_v3  ;;  %3249 = vmatmul.bf16.vlgmr.msrb.gmra.mxu0 %v6970_v2  ;;  %v1512_v25 = vsel %vm8180_vm7, 0.0, %v1354_v15 }
 0x108   : > { %v8202_v16 = vsel %vm775_vm8, %v8113_v43, %v807_v4  ;;  %7518 = vpow2.f32 %v528_v6  ;;  %v552_v30 = vmul.f32 1.442695, %v502_v14  ;;  %v8250_v3 = vadd.s32 40, %v8120_v55  ;;  %v8252_v4 = vpop.f32.mrf.mxu2 }
 0x109   : > { %v1355_v18 = vrot.slane %v8202_v16, 7  ;;  %v7203_v19 = vpack.c.bf16 %v8202_v16, %v8169_v39  ;;  %v692_v22 = vadd.f32 2.0, %v660_v9  ;;  %v421_v23 = vpop.f32.mrf.mxu0  ;;  %v649_v13 = vadd.f32 %v617_v12, %v585_v11 }
 0x10a   : > { %v8223_v40 = vadd.f32 %v8098_v8, %v421_v23  ;;  %vm778_vm15 = vcmp.gt.f32.partialorder %v8185_v32, 20.0  ;;  %vm790_vm2 = vcmp.gt.f32.partialorder %v8206_v17, 20.0 }
 0x10b   : > { %v7515_v43 = vpop.eup %7514  ;;  %v1356_v5 = vsel %vm1349_vm1, %v1353_v57, %v1355_v18  ;;  %7370 = vst [vmem:[#allocation2 + $0xa0] sm:$0xff] %v7203_v19   ;;  %7520 = vrcp.f32 %v692_v22  ;;  %v681_v29 = vadd.f32 2.0, %v649_v13  ;;  %v8258_v19 = vadd.f32 %v8098_v8, %v8175_v41 }
 0x10c   : > { %v7517_v26 = vpop.eup %7516  ;;  %v7123_v27 = vpack.c.bf16 %v1356_v5, %v1512_v25  ;;  %v744_v28 = vmul.f32 %v7515_v43, %v648_v45  ;;  %v1580_v45 = vrot.slane %v8202_v16, 1  ;;  %v491_v49 = vmin.f32 %v8223_v40, 20.0 }
 0x10d   : > { %v597_v34 = vmul.f32 %v7517_v26, %v7517_v26  ;;  %v629_v35 = vmul.f32 2.0, %v7517_v26  ;;  %7522 = vrcp.f32 %v681_v29  ;;  %v503_v41 = vmin.f32 %v8258_v19, 20.0 }
 0x10e   : > { %v7519_v36 = vpop.eup %7518  ;;  %7355 = vst [vmem:[#allocation2 + $0x10] sm:$0xff] %v7123_v27   ;;  %v808_v37 = vmul.f32 %v744_v28, %v8126_v59  ;;  %7524 = vpow2.f32 %v552_v30  ;;  %v1581_v1 = vsel %vm1574_vm5, %v1578_v44, %v1580_v45  ;;  %v940_v25 = vand.u32 15, %v8250_v3 }
 0x10f   : > { %v661_v42 = vadd.f32 %v629_v35, %v597_v34  ;;  %v586_v46 = vmul.f32 %v7519_v36, %v7519_v36  ;;  %v618_v47 = vmul.f32 2.0, %v7519_v36  ;;  %vm779_vm6 = vcmp.gt.f32.partialorder %v8223_v40, 20.0 }
 0x110   : > { %v8227_v48 = vsel %vm776_vm9, %v8126_v59, %v808_v37  ;;  %v530_v59 = vmul.f32 1.442695, %v491_v49  ;;  %vm8318_vm0 = vcmp.eq.s32.totalorder %v940_v25, 15  ;;  %vm791_vm8 = vcmp.gt.f32.partialorder %v8258_v19, 20.0 }
 0x111   : > { %v7521_v50 = vpop.eup %7520  ;;  %v1582_v52 = vrot.slane %v8227_v48, 1  ;;  %v693_v53 = vadd.f32 2.0, %v661_v42  ;;  %v650_v54 = vadd.f32 %v618_v47, %v586_v46  ;;  %v1357_v60 = vrot.slane %v8227_v48, 7  ;;  %v424_v63 = vpop.f32.mrf.mxu0 }
 0x112   : > { %v756_v57 = vmul.f32 %v7521_v50, %v660_v9  ;;  %v6924_v58 = vld [vmem:[#allocation2 + $0xa0] sm:$0xff]  ;;  %v8265_v23 = vadd.f32 %v8098_v8, %v424_v63  ;;  %v886_v63 = vadd.s32 136, %v8120_v55 }
 0x113   : > { %v1583_v61 = vsel %vm1574_vm5, %v1580_v45, %v1582_v52  ;;  %7526 = vrcp.f32 %v693_v53  ;;  %v682_v62 = vadd.f32 2.0, %v650_v54  ;;  %v7523_v0 = vpop.eup %7522  ;;  %2503 = vmatmul.bf16.gmra.mxu2 %v6924_v58  ;;  %v1358_v21 = vsel %vm1349_vm1, %v1355_v18, %v1357_v60  ;;  %v8300_v53 = vpop.f32.mrf.mxu2 }
 0x114   : > { %v1738_v2 = vsel %vm8230_vm10, 0.0, %v1583_v61  ;;  %7528 = vpow2.f32 %v530_v59  ;;  %v7525_v6 = vpop.eup %7524  ;;  %v820_v9 = vmul.f32 %v756_v57, %v8137_v10  ;;  %v745_v11 = vmul.f32 %v7523_v0, %v649_v13 }
 0x115   : > { %v7283_v7 = vpack.c.bf16 %v1738_v2, %v1581_v1  ;;  %7530 = vrcp.f32 %v682_v62  ;;  %v6900_v12 = vld [vmem:[#allocation2 + $0x10] sm:$0xff]  ;;  %v598_v44 = vmul.f32 %v7525_v6, %v7525_v6  ;;  %v630_v15 = vmul.f32 2.0, %v7525_v6 }
 0x116   : > { %v6971_v39 = vld [vmem:[#allocation2 + $0x10] sm:$0xff]  ;;  %v809_v22 = vmul.f32 %v745_v11, %v8153_v20  ;;  %2189 = vmatmul.bf16.gmra.mxu1 %v6900_v12  ;;  %v875_v13 = vadd.s32 48, %v8120_v55  ;;  %v8273_v16 = vsel %vm788_vm12, %v8137_v10, %v820_v9  ;;  %v492_v5 = vmin.f32 %v8265_v23, 20.0 }
 0x117   : > { %7385 = vst [vmem:[#allocation2 + $0x130] sm:$0xff] %v7283_v7   ;;  %3254 = vmatmul.bf16.gmra.mxu0 %v6971_v39  ;;  %v662_v14 = vadd.f32 %v630_v15, %v598_v44  ;;  %v1514_v27 = vsel %vm8235_vm11, 0.0, %v1358_v21  ;;  %v1381_v35 = vrot.slane %v8273_v16, 7  ;;  %v887_v2 = vadd.s32 144, %v8120_v55 }
 0x118   : > { %v8278_v18 = vsel %vm777_vm13, %v8153_v20, %v809_v22  ;;  %v554_v20 = vmul.f32 1.442695, %v503_v41  ;;  %v947_v58 = vand.u32 15, %v875_v13  ;;  %v1024_v15 = vand.u32 15, %v886_v63 }
 0x119   : > { %v7527_v43 = vpop.eup %7526  ;;  %v1359_v28 = vrot.slane %v8278_v18, 7  ;;  %v7208_v29 = vpack.c.bf16 %v8278_v18, %v8227_v48  ;;  %v694_v31 = vadd.f32 2.0, %v662_v14  ;;  %v426_v49 = vpop.f32.mrf.mxu0  ;;  %v1584_v59 = vrot.slane %v8278_v18, 1 }
 0x11a   : > { %v7529_v26 = vpop.eup %7528  ;;  %v757_v10 = vmul.f32 %v7527_v43, %v661_v42  ;;  %v532_v42 = vmul.f32 1.442695, %v492_v5  ;;  %v8334_v3 = vadd.f32 %v8098_v8, %v426_v49  ;;  %vm8342_vm3 = vcmp.eq.s32.totalorder %v947_v58, 0 }
 0x11b   : > { %v7531_v30 = vpop.eup %7530  ;;  %v587_v33 = vmul.f32 %v7529_v26, %v7529_v26  ;;  %v619_v34 = vmul.f32 2.0, %v7529_v26  ;;  %v1360_v36 = vsel %vm1349_vm1, %v1357_v60, %v1359_v28  ;;  %7371 = vst [vmem:[#allocation2 + $0xa8] sm:$0xff] %v7208_v29   ;;  %7532 = vrcp.f32 %v694_v31 }
 0x11c   : > { %v821_v37 = vmul.f32 %v757_v10, %v8166_v38  ;;  %v746_v46 = vmul.f32 %v7531_v30, %v650_v54  ;;  %v7128_v47 = vpack.c.bf16 %v1360_v36, %v1514_v27  ;;  %7534 = vpow2.f32 %v554_v20  ;;  %v8356_v20 = vpop.f32.mrf.mxu2 }
 0x11d   : > { %v8292_v45 = vadd.f32 %v619_v34, %v587_v33  ;;  %7536 = vpow2.f32 %v532_v42  ;;  %v1585_v9 = vsel %vm1574_vm5, %v1582_v52, %v1584_v59  ;;  %v1606_v48 = vrot.slane %v8273_v16, 1 }
 0x11e   : > { %v8297_v50 = vsel %vm789_vm14, %v8166_v38, %v821_v37  ;;  %v810_v51 = vmul.f32 %v746_v46, %v8185_v32  ;;  %7356 = vst [vmem:[#allocation2 + $0x18] sm:$0xff] %v7128_v47   ;;  %v493_v29 = vmin.f32 %v8334_v3, 20.0  ;;  %v1031_v34 = vand.u32 15, %v887_v2 }
 0x11f   : > { %v1383_v56 = vrot.slane %v8297_v50, 7  ;;  %v7238_v54 = vpack.c.bf16 %v8297_v50, %v8273_v16  ;;  %v683_v57 = vadd.f32 2.0, %v8292_v45  ;;  %v1608_v52 = vrot.slane %v8297_v50, 1 }
 0x120   : > { %v8309_v38 = vsel %vm778_vm15, %v8185_v32, %v810_v51  ;;  %v8326_v32 = vadd.f32 %v8098_v8, %v8213_v24  ;;  %vm8358_vm4 = vcmp.eq.s32.totalorder %v1024_v15, 15  ;;  %v534_v49 = vmul.f32 1.442695, %v493_v29 }
 0x121   : > { %v8316_v60 = vsel %vm1349_vm1, %v1381_v35, %v1383_v56  ;;  %7377 = vst [vmem:[#allocation2 + $0xd8] sm:$0xff] %v7238_v54   ;;  %v1586_v62 = vrot.slane %v8309_v38, 1  ;;  %7538 = vrcp.f32 %v683_v57  ;;  %v7533_v0 = vpop.eup %7532  ;;  %v429_v10 = vpop.f32.mrf.mxu0  ;;  %v1361_v31 = vrot.slane %v8309_v38, 7 }
 0x122   : > { %v6925_v6 = vld [vmem:[#allocation2 + $0xa8] sm:$0xff]  ;;  %v7535_v7 = vpop.eup %7534  ;;  %v758_v11 = vmul.f32 %v7533_v0, %v662_v14  ;;  %v504_v12 = vmin.f32 %v8326_v32, 20.0  ;;  %v8368_v51 = vadd.f32 %v8098_v8, %v429_v10  ;;  %v8385_v0 = vadd.f32 %v8098_v8, %v8252_v4 }
 0x123   : > { %v1587_v1 = vsel %vm1574_vm5, %v1584_v59, %v1586_v62  ;;  %v599_v21 = vmul.f32 %v7535_v7, %v7535_v7  ;;  %v631_v22 = vmul.f32 2.0, %v7535_v7  ;;  %2508 = vmatmul.bf16.gmra.mxu2 %v6925_v6  ;;  %v7537_v13 = vpop.eup %7536  ;;  %v876_v6 = vadd.s32 56, %v8120_v55 }
 0x124   : > { %v1740_v24 = vsel %vm8318_vm0, 0.0, %v1587_v1  ;;  %v822_v41 = vmul.f32 %v758_v11, %v8206_v17  ;;  %v556_v43 = vmul.f32 1.442695, %v504_v12  ;;  %v588_v26 = vmul.f32 %v7537_v13, %v7537_v13 }
 0x125   : > { %v7288_v44 = vpack.c.bf16 %v1740_v24, %v1585_v9  ;;  %v6901_v14 = vld [vmem:[#allocation2 + $0x18] sm:$0xff]  ;;  %v663_v5 = vadd.f32 %v631_v22, %v599_v21  ;;  %v620_v27 = vmul.f32 2.0, %v7537_v13  ;;  %v494_v1 = vmin.f32 %v8368_v51, 20.0 }
 0x126   : > { %v6972_v25 = vld [vmem:[#allocation2 + $0x18] sm:$0xff]  ;;  %v8354_v33 = vsel %vm790_vm2, %v8206_v17, %v822_v41  ;;  %7540 = vpow2.f32 %v556_v43  ;;  %2194 = vmatmul.bf16.gmra.mxu1 %v6901_v14  ;;  %v1609_v17 = vsel %vm1574_vm5, %v1606_v48, %v1608_v52  ;;  %vm8392_vm7 = vcmp.eq.s32.totalorder %v1031_v34, 0  ;;  %v8407_v14 = vpop.f32.mrf.mxu2 }
 0x127   : > { %7386 = vst [vmem:[#allocation2 + $0x138] sm:$0xff] %v7288_v44   ;;  %v7539_v30 = vpop.eup %7538  ;;  %3259 = vmatmul.bf16.gmra.mxu0 %v6972_v25  ;;  %v1610_v37 = vrot.slane %v8354_v33, 1  ;;  %v695_v47 = vadd.f32 2.0, %v663_v5  ;;  %v652_v42 = vadd.f32 %v620_v27, %v588_v26  ;;  %v505_v4 = vmin.f32 %v8385_v0, 20.0 }
 0x128   : > { %v747_v46 = vmul.f32 %v7539_v30, %v8292_v45  ;;  %v1362_v45 = vsel %vm1349_vm1, %v1359_v28, %v1361_v31  ;;  %v1385_v11 = vrot.slane %v8354_v33, 7  ;;  %v536_v44 = vmul.f32 1.442695, %v494_v1 }
 0x129   : > { %v1611_v54 = vsel %vm1574_vm5, %v1608_v52, %v1610_v37  ;;  %7542 = vrcp.f32 %v695_v47  ;;  %v684_v58 = vadd.f32 2.0, %v652_v42  ;;  %v1516_v24 = vsel %vm8342_vm3, 0.0, %v1362_v45 }
 0x12a   : > { %v811_v57 = vmul.f32 %v747_v46, %v8223_v40  ;;  %v1752_v59 = vsel %vm8358_vm4, 0.0, %v1611_v54  ;;  %7544 = vpow2.f32 %v534_v49  ;;  %v558_v13 = vmul.f32 1.442695, %v505_v4  ;;  %v431_v46 = vpop.f32.mrf.mxu0 }
 0x12b   : > { %v7318_v61 = vpack.c.bf16 %v1752_v59, %v1609_v17  ;;  %7546 = vrcp.f32 %v684_v58  ;;  %v8405_v43 = vadd.s32 64, %v8120_v55  ;;  %v954_v39 = vand.u32 15, %v876_v6 }
 0x12c   : > { %v8381_v63 = vsel %vm779_vm6, %v8223_v40, %v811_v57  ;;  %v7541_v2 = vpop.eup %7540  ;;  %7548 = vpow2.f32 %v536_v44  ;;  %v1386_v10 = vsel %vm1349_vm1, %v1383_v56, %v1385_v11  ;;  %vm780_vm9 = vcmp.gt.f32.partialorder %v8265_v23, 20.0 }
 0x12d   : > { %v1363_v18 = vrot.slane %v8381_v63, 7  ;;  %v7213_v28 = vpack.c.bf16 %v8381_v63, %v8309_v38  ;;  %7392 = vst [vmem:[#allocation2 + $0x168] sm:$0xff] %v7318_v61   ;;  %v600_v40 = vmul.f32 %v7541_v2, %v7541_v2  ;;  %v632_v9 = vmul.f32 2.0, %v7541_v2 }
 0x12e   : > { %7550 = vpow2.f32 %v558_v13  ;;  %v961_v56 = vand.u32 15, %v8405_v43  ;;  %vm8427_vm10 = vcmp.eq.s32.totalorder %v954_v39, 15  ;;  %v1528_v17 = vsel %vm8392_vm7, 0.0, %v1386_v10 }
 0x12f   : > { %v1364_v12 = vsel %vm1349_vm1, %v1361_v31, %v1363_v18  ;;  %7372 = vst [vmem:[#allocation2 + $0xb0] sm:$0xff] %v7213_v28   ;;  %v7543_v15 = vpop.eup %7542  ;;  %v664_v22 = vadd.f32 %v632_v9, %v600_v40  ;;  %v8416_v31 = vadd.f32 %v8098_v8, %v8300_v53  ;;  %v889_v45 = vadd.s32 160, %v8120_v55 }
 0x130   : > { %v7133_v21 = vpack.c.bf16 %v1364_v12, %v1516_v24  ;;  %v7545_v52 = vpop.eup %7544  ;;  %v759_v41 = vmul.f32 %v7543_v15, %v663_v5  ;;  %v888_v5 = vadd.s32 152, %v8120_v55  ;;  %v1588_v2 = vrot.slane %v8381_v63, 1 }
 0x131   : > { %v696_v25 = vadd.f32 2.0, %v664_v22  ;;  %v589_v26 = vmul.f32 %v7545_v52, %v7545_v52  ;;  %v621_v27 = vmul.f32 2.0, %v7545_v52  ;;  %v7547_v29 = vpop.eup %7546  ;;  %v506_v53 = vmin.f32 %v8416_v31, 20.0 }
 0x132   : > { %7357 = vst [vmem:[#allocation2 + $0x20] sm:$0xff] %v7133_v21   ;;  %v823_v30 = vmul.f32 %v759_v41, %v8258_v19  ;;  %v748_v34 = vmul.f32 %v7547_v29, %v652_v42  ;;  %v7549_v57 = vpop.eup %7548  ;;  %v1038_v59 = vand.u32 15, %v888_v5  ;;  %v8451_v4 = vadd.f32 %v8098_v8, %v431_v46  ;;  %v8458_v41 = vpop.f32.mrf.mxu2 }
 0x133   : > { %7552 = vrcp.f32 %v696_v25  ;;  %v8419_v36 = vadd.f32 %v621_v27, %v589_v26  ;;  %v560_v61 = vmul.f32 1.442695, %v506_v53  ;;  %v590_v7 = vmul.f32 %v7549_v57, %v7549_v57 }
 0x134   : > { %v8424_v50 = vsel %vm791_vm8, %v8258_v19, %v823_v30  ;;  %v812_v54 = vmul.f32 %v748_v34, %v8265_v23  ;;  %v7551_v1 = vpop.eup %7550  ;;  %v622_v21 = vmul.f32 2.0, %v7549_v57  ;;  %vm792_vm11 = vcmp.gt.f32.partialorder %v8326_v32, 20.0  ;;  %v434_v34 = vpop.f32.mrf.mxu0 }
 0x135   : > { %v1387_v42 = vrot.slane %v8424_v50, 7  ;;  %v7243_v49 = vpack.c.bf16 %v8424_v50, %v8354_v33  ;;  %v685_v58 = vadd.f32 2.0, %v8419_v36  ;;  %v601_v15 = vmul.f32 %v7551_v1, %v7551_v1 }
 0x136   : > { %v6926_v19 = vld [vmem:[#allocation2 + $0xb0] sm:$0xff]  ;;  %v8447_v6 = vsel %vm780_vm9, %v8265_v23, %v812_v54  ;;  %v1612_v13 = vrot.slane %v8424_v50, 1  ;;  %v1589_v43 = vsel %vm1574_vm5, %v1586_v62, %v1588_v2  ;;  %v654_v26 = vadd.f32 %v622_v21, %v590_v7 }
 0x137   : > { %v1388_v28 = vsel %vm1349_vm1, %v1385_v11, %v1387_v42  ;;  %7378 = vst [vmem:[#allocation2 + $0xe0] sm:$0xff] %v7243_v49   ;;  %v1590_v9 = vrot.slane %v8447_v6, 1  ;;  %7554 = vrcp.f32 %v685_v58  ;;  %2513 = vmatmul.bf16.gmra.mxu2 %v6926_v19  ;;  %v633_v11 = vmul.f32 2.0, %v7551_v1 }
 0x138   : > { %v7163_v40 = vpack.c.bf16 %v1388_v28, %v1528_v17  ;;  %7556 = vpow2.f32 %v560_v61  ;;  %vm8465_vm12 = vcmp.eq.s32.totalorder %v961_v56, 0  ;;  %v1045_v10 = vand.u32 15, %v889_v45 }
 0x139   : > { %v6902_v24 = vld [vmem:[#allocation2 + $0x20] sm:$0xff]  ;;  %v7553_v44 = vpop.eup %7552  ;;  %v1591_v23 = vsel %vm1574_vm5, %v1588_v2, %v1590_v9  ;;  %v665_v25 = vadd.f32 %v633_v11, %v601_v15  ;;  %vm8470_vm13 = vcmp.eq.s32.totalorder %v1038_v59, 15  ;;  %v686_v62 = vadd.f32 2.0, %v654_v26 }
 0x13a   : > { %v6973_v12 = vld [vmem:[#allocation2 + $0x20] sm:$0xff]  ;;  %7363 = vst [vmem:[#allocation2 + $0x50] sm:$0xff] %v7163_v40   ;;  %v760_v52 = vmul.f32 %v7553_v44, %v664_v22  ;;  %2199 = vmatmul.bf16.gmra.mxu1 %v6902_v24  ;;  %v1742_v39 = vsel %vm8427_vm10, 0.0, %v1591_v23  ;;  %v495_v5 = vmin.f32 %v8451_v4, 20.0  ;;  %v1613_v56 = vsel %vm1574_vm5, %v1610_v37, %v1612_v13  ;;  %v8520_v44 = vpop.f32.mrf.mxu2 }
 0x13b   : > { %3264 = vmatmul.bf16.gmra.mxu0 %v6973_v12  ;;  %v7293_v22 = vpack.c.bf16 %v1742_v39, %v1589_v43  ;;  %v697_v38 = vadd.f32 2.0, %v665_v25  ;;  %vm781_vm14 = vcmp.gt.f32.partialorder %v8334_v3, 20.0  ;;  %v878_v53 = vadd.s32 72, %v8120_v55 }
 0x13c   : > { %v824_v29 = vmul.f32 %v760_v52, %v8326_v32  ;;  %v1365_v49 = vrot.slane %v8447_v6, 7  ;;  %vm793_vm15 = vcmp.gt.f32.partialorder %v8385_v0, 20.0  ;;  %vm8489_vm0 = vcmp.eq.s32.totalorder %v1045_v10, 0 }
 0x13d   : > { %v7555_v46 = vpop.eup %7554  ;;  %7387 = vst [vmem:[#allocation2 + $0x140] sm:$0xff] %v7293_v22   ;;  %7558 = vrcp.f32 %v697_v38  ;;  %v538_v57 = vmul.f32 1.442695, %v495_v5  ;;  %v8502_v58 = vadd.f32 %v8098_v8, %v434_v34  ;;  %vm782_vm2 = vcmp.gt.f32.partialorder %v8368_v51, 20.0 }
 0x13e   : > { %v8481_v47 = vsel %vm792_vm11, %v8326_v32, %v824_v29  ;;  %v7557_v17 = vpop.eup %7556  ;;  %v749_v19 = vmul.f32 %v7555_v46, %v8419_v36  ;;  %7560 = vrcp.f32 %v686_v62  ;;  %v8499_v36 = vadd.f32 %v8098_v8, %v8356_v20  ;;  %v436_v29 = vpop.f32.mrf.mxu0 }
 0x13f   : > { %v1614_v54 = vrot.slane %v8481_v47, 1  ;;  %v602_v32 = vmul.f32 %v7557_v17, %v7557_v17  ;;  %v634_v37 = vmul.f32 2.0, %v7557_v17  ;;  %7562 = vpow2.f32 %v538_v57 }
 0x140   : > { %v813_v59 = vmul.f32 %v749_v19, %v8334_v3  ;;  %v1366_v2 = vsel %vm1349_vm1, %v1363_v18, %v1365_v49  ;;  %v507_v8 = vmin.f32 %v8499_v36, 20.0  ;;  %v1389_v7 = vrot.slane %v8481_v47, 7 }
 0x141   : > { %v1615_v45 = vsel %vm1574_vm5, %v1612_v13, %v1614_v54  ;;  %v666_v1 = vadd.f32 %v634_v37, %v602_v32  ;;  %v8523_v18 = vadd.s32 80, %v8120_v55  ;;  %v968_v15 = vand.u32 15, %v878_v53 }
 0x142   : > { %v1754_v61 = vsel %vm8470_vm13, 0.0, %v1615_v45  ;;  %v8513_v20 = vsel %vm781_vm14, %v8334_v3, %v813_v59  ;;  %v562_v3 = vmul.f32 1.442695, %v507_v8  ;;  %v496_v11 = vmin.f32 %v8502_v58, 20.0 }
 0x143   : > { %v7323_v28 = vpack.c.bf16 %v1754_v61, %v1613_v56  ;;  %v1367_v40 = vrot.slane %v8513_v20, 7  ;;  %v7218_v24 = vpack.c.bf16 %v8513_v20, %v8447_v6  ;;  %v698_v12 = vadd.f32 2.0, %v666_v1  ;;  %v7559_v63 = vpop.eup %7558  ;;  %v8582_v6 = vpop.f32.mrf.mxu2 }
 0x144   : > { %v7561_v21 = vpop.eup %7560  ;;  %v1518_v13 = vsel %vm8465_vm12, 0.0, %v1366_v2  ;;  %v761_v52 = vmul.f32 %v7559_v63, %v665_v25  ;;  %v540_v22 = vmul.f32 1.442695, %v496_v11  ;;  %v1390_v30 = vsel %vm1349_vm1, %v1387_v42, %v1389_v7  ;;  %v8550_v42 = vld [vmem:[%s9872_s2] ss:$0 sm:$0xff] }
 0x145   : > { %7393 = vst [vmem:[#allocation2 + $0x170] sm:$0xff] %v7323_v28   ;;  %v1368_v23 = vsel %vm1349_vm1, %v1365_v49, %v1367_v40  ;;  %7564 = vrcp.f32 %v698_v12  ;;  %v750_v39 = vmul.f32 %v7561_v21, %v654_v26  ;;  %v7563_v10 = vpop.eup %7562  ;;  %v1592_v27 = vrot.slane %v8513_v20, 1 }
 0x146   : > { %7373 = vst [vmem:[#allocation2 + $0xb8] sm:$0xff] %v7218_v24   ;;  %v7138_v43 = vpack.c.bf16 %v1368_v23, %v1518_v13  ;;  %7566 = vpow2.f32 %v562_v3  ;;  %v825_v38 = vmul.f32 %v761_v52, %v8385_v0  ;;  %v890_v62 = vadd.s32 168, %v8120_v55  ;;  %v439_v50 = vpop.f32.mrf.mxu0 }
 0x147   : > { %v814_v25 = vmul.f32 %v750_v39, %v8368_v51  ;;  %v591_v5 = vmul.f32 %v7563_v10, %v7563_v10  ;;  %v623_v34 = vmul.f32 2.0, %v7563_v10  ;;  %7568 = vpow2.f32 %v540_v22 }
 0x148   : > { %7358 = vst [vmem:[#allocation2 + $0x28] sm:$0xff] %v7138_v43   ;;  %v8541_v26 = vsel %vm793_vm15, %v8385_v0, %v825_v38  ;;  %vm8543_vm3 = vcmp.eq.s32.totalorder %v968_v15, 15  ;;  %v8554_v46 = vadd.f32 %v8550_v42, %v8407_v14  ;;  %v8557_v56 = vadd.f32 %v8550_v42, %v436_v29 }
 0x149   : > { %v1530_v0 = vsel %vm8489_vm0, 0.0, %v1390_v30  ;;  %v1391_v53 = vrot.slane %v8541_v26, 7  ;;  %v7248_v17 = vpack.c.bf16 %v8541_v26, %v8481_v47  ;;  %v8567_v49 = vsel %vm782_vm2, %v8368_v51, %v814_v25 }
 0x14a   : > { %v1594_v14 = vrot.slane %v8567_v49, 1  ;;  %vm794_vm4 = vcmp.gt.f32.partialorder %v8416_v31, 20.0  ;;  %v1052_v32 = vand.u32 15, %v890_v62  ;;  %v655_v37 = vadd.f32 %v623_v34, %v591_v5 }
 0x14b   : > { %v7565_v19 = vpop.eup %7564  ;;  %v1593_v33 = vsel %vm1574_vm5, %v1590_v9, %v1592_v27  ;;  %v1392_v45 = vsel %vm1349_vm1, %v1389_v7, %v1391_v53  ;;  %7379 = vst [vmem:[#allocation2 + $0xe8] sm:$0xff] %v7248_v17   ;;  %v508_v51 = vmin.f32 %v8554_v46, 20.0  ;;  %v497_v24 = vmin.f32 %v8557_v56, 20.0 }
 0x14c   : > { %v7567_v57 = vpop.eup %7566  ;;  %v762_v59 = vmul.f32 %v7565_v19, %v666_v1  ;;  %v7168_v2 = vpack.c.bf16 %v1392_v45, %v1530_v0  ;;  %v1595_v28 = vsel %vm1574_vm5, %v1592_v27, %v1594_v14  ;;  %v687_v8 = vadd.f32 2.0, %v655_v37  ;;  %v7017_v0 = vld [vmem:[#allocation9 + $0x138] sm:$0xff]  ;;  %v8612_v19 = vpop.f32.mrf.mxu2 }
 0x14d   : > { %v6927_v61 = vld [vmem:[#allocation2 + $0xb8] sm:$0xff]  ;;  %v7569_v9 = vpop.eup %7568  ;;  %v1616_v12 = vrot.slane %v8541_v26, 1  ;;  %v1744_v7 = vsel %vm8543_vm3, 0.0, %v1595_v28  ;;  %v603_v63 = vmul.f32 %v7567_v57, %v7567_v57  ;;  %v635_v3 = vmul.f32 2.0, %v7567_v57  ;;  %3619 = vmatpush.bf16.msrb.mxu1 %v7017_v0  ;;  %v7016_v28 = vld [vmem:[#allocation9 + $0x130] sm:$0xff]  ;;  %v7014_v0 = vld [vmem:[#allocation9 + $0x120] sm:$0xff] }
 0x14e   : > { %v826_v1 = vmul.f32 %v762_v59, %v8416_v31  ;;  %2518 = vmatmul.bf16.gmra.mxu2 %v6927_v61  ;;  %7364 = vst [vmem:[#allocation2 + $0x58] sm:$0xff] %v7168_v2   ;;  %v7298_v15 = vpack.c.bf16 %v1744_v7, %v1593_v33  ;;  %7570 = vrcp.f32 %v687_v8  ;;  %v592_v11 = vmul.f32 %v7569_v9, %v7569_v9 }
 0x14f   : > { %v6903_v21 = vld [vmem:[#allocation2 + $0x28] sm:$0xff]  ;;  %v891_v52 = vadd.s32 176, %v8120_v55  ;;  %v624_v43 = vmul.f32 2.0, %v7569_v9  ;;  %v564_v39 = vmul.f32 1.442695, %v508_v51  ;;  %v975_v22 = vand.u32 15, %v8523_v18 }
 0x150   : > { %v6974_v13 = vld [vmem:[#allocation2 + $0x28] sm:$0xff]  ;;  %v8591_v23 = vsel %vm794_vm4, %v8416_v31, %v826_v1  ;;  %7388 = vst [vmem:[#allocation2 + $0x148] sm:$0xff] %v7298_v15   ;;  %vm8595_vm6 = vcmp.eq.s32.totalorder %v1052_v32, 15  ;;  %v667_v30 = vadd.f32 %v635_v3, %v603_v63  ;;  %2204 = vmatmul.bf16.gmra.mxu1 %v6903_v21  ;;  %v1617_v31 = vsel %vm1574_vm5, %v1614_v54, %v1616_v12 }
 0x151   : > { %v1618_v10 = vrot.slane %v8591_v23, 1  ;;  %3269 = vmatmul.bf16.gmra.mxu0 %v6974_v13  ;;  %v656_v27 = vadd.f32 %v624_v43, %v592_v11  ;;  %7572 = vpow2.f32 %v564_v39  ;;  %v542_v62 = vmul.f32 1.442695, %v497_v24  ;;  %3620 = vmatpush.bf16.msrb.mxu1 %v7016_v28 }
 0x152   : > { %v699_v38 = vadd.f32 2.0, %v667_v30  ;;  %v1059_v25 = vand.u32 15, %v891_v52  ;;  %vm8608_vm7 = vcmp.eq.s32.totalorder %v975_v22, 0  ;;  %v1369_v32 = vrot.slane %v8567_v49, 7  ;;  %v7015_v52 = vld [vmem:[#allocation9 + $0x128] sm:$0xff] }
 0x153   : > { %v1619_v18 = vsel %vm1574_vm5, %v1616_v12, %v1618_v10  ;;  %v688_v34 = vadd.f32 2.0, %v656_v27  ;;  %v8617_v33 = vadd.f32 %v8550_v42, %v8458_v41  ;;  %vm783_vm8 = vcmp.gt.f32.partialorder %v8451_v4, 20.0 }
 0x154   : > { %v1756_v5 = vsel %vm8595_vm6, 0.0, %v1619_v18  ;;  %v7571_v17 = vpop.eup %7570  ;;  %7574 = vrcp.f32 %v699_v38  ;;  %v880_v45 = vadd.s32 88, %v8120_v55  ;;  %v8622_v59 = vadd.f32 %v8550_v42, %v439_v50  ;;  %v8651_v18 = vpop.f32.mrf.mxu2 }
 0x155   : > { %v7328_v54 = vpack.c.bf16 %v1756_v5, %v1617_v31  ;;  %v751_v57 = vmul.f32 %v7571_v17, %v655_v37  ;;  %7576 = vrcp.f32 %v688_v34  ;;  %vm8624_vm9 = vcmp.eq.s32.totalorder %v1059_v25, 0  ;;  %3621 = vmatpush.bf16.msrb.mxu1 %v7015_v52 }
 0x156   : > { %7578 = vpow2.f32 %v542_v62  ;;  %v1393_v37 = vrot.slane %v8591_v23, 7  ;;  %v509_v2 = vmin.f32 %v8617_v33, 20.0  ;;  %vm795_vm10 = vcmp.gt.f32.partialorder %v8499_v36, 20.0 }
 0x157   : > { %7394 = vst [vmem:[#allocation2 + $0x178] sm:$0xff] %v7328_v54   ;;  %v7573_v51 = vpop.eup %7572  ;;  %v815_v41 = vmul.f32 %v751_v57, %v8451_v4  ;;  %v498_v9 = vmin.f32 %v8622_v59, 20.0  ;;  %v1370_v12 = vsel %vm1349_vm1, %v1367_v40, %v1369_v32  ;;  %vm784_vm11 = vcmp.gt.f32.partialorder %v8502_v58, 20.0 }
 0x158   : > { %v604_v8 = vmul.f32 %v7573_v51, %v7573_v51  ;;  %v636_v24 = vmul.f32 2.0, %v7573_v51  ;;  %v566_v1 = vmul.f32 1.442695, %v509_v2  ;;  %v982_v11 = vand.u32 15, %v880_v45 }
 0x159   : > { %v8637_v7 = vsel %vm783_vm8, %v8451_v4, %v815_v41  ;;  %v1394_v20 = vsel %vm1349_vm1, %v1391_v53, %v1393_v37  ;;  %v544_v4 = vmul.f32 1.442695, %v498_v9  ;;  %v1520_v39 = vsel %vm8608_vm7, 0.0, %v1370_v12  ;;  %3622 = vmatpush.bf16.msrb.mxu1 %v7014_v0 }
 0x15a   : > { %v7575_v63 = vpop.eup %7574  ;;  %v1371_v15 = vrot.slane %v8637_v7, 7  ;;  %v7223_v3 = vpack.c.bf16 %v8637_v7, %v8567_v49  ;;  %v668_v21 = vadd.f32 %v636_v24, %v604_v8  ;;  %7580 = vpow2.f32 %v566_v1  ;;  %v7013_v1 = vld [vmem:[#allocation9 + $0x118] sm:$0xff] }
 0x15b   : > { %v7577_v13 = vpop.eup %7576  ;;  %v763_v40 = vmul.f32 %v7575_v63, %v667_v30  ;;  %v1532_v62 = vsel %vm8624_vm9, 0.0, %v1394_v20  ;;  %vm8657_vm12 = vcmp.eq.s32.totalorder %v982_v11, 15  ;;  %v8670_v50 = vadd.f32 %v8550_v42, %v8520_v44 }
 0x15c   : > { %v7579_v43 = vpop.eup %7578  ;;  %v1372_v22 = vsel %vm1349_vm1, %v1369_v32, %v1371_v15  ;;  %7374 = vst [vmem:[#allocation2 + $0xc0] sm:$0xff] %v7223_v3   ;;  %v752_v29 = vmul.f32 %v7577_v13, %v656_v27  ;;  %v700_v31 = vadd.f32 2.0, %v668_v21  ;;  %v1596_v17 = vrot.slane %v8637_v7, 1  ;;  %v441_v32 = vpop.f32.mrf.mxu0 }
 0x15d   : > { %v7143_v26 = vpack.c.bf16 %v1372_v22, %v1520_v39  ;;  %v827_v53 = vmul.f32 %v763_v40, %v8499_v36  ;;  %v593_v30 = vmul.f32 %v7579_v43, %v7579_v43  ;;  %v625_v38 = vmul.f32 2.0, %v7579_v43  ;;  %v8702_v20 = vpop.f32.mrf.mxu2  ;;  %3623 = vmatpush.bf16.msrb.mxu1 %v7013_v1 }
 0x15e   : > { %v816_v25 = vmul.f32 %v752_v29, %v8502_v58  ;;  %7582 = vrcp.f32 %v700_v31  ;;  %v892_v44 = vadd.s32 184, %v8120_v55  ;;  %v510_v61 = vmin.f32 %v8670_v50, 20.0 }
 0x15f   : > { %7359 = vst [vmem:[#allocation2 + $0x30] sm:$0xff] %v7143_v26   ;;  %v8664_v27 = vsel %vm795_vm10, %v8499_v36, %v827_v53  ;;  %v8666_v34 = vadd.f32 %v625_v38, %v593_v30  ;;  %7584 = vpow2.f32 %v544_v4  ;;  %v8689_v2 = vadd.s32 96, %v8120_v55  ;;  %v7012_v30 = vld [vmem:[#allocation9 + $0x110] sm:$0xff] }
 0x160   : > { %v1395_v47 = vrot.slane %v8664_v27, 7  ;;  %v7253_v54 = vpack.c.bf16 %v8664_v27, %v8591_v23  ;;  %v8679_v36 = vsel %vm784_vm11, %v8502_v58, %v816_v25  ;;  %v7581_v57 = vpop.eup %7580  ;;  %v8695_v9 = vadd.f32 %v8550_v42, %v441_v32 }
 0x161   : > { %v1598_v45 = vrot.slane %v8679_v36, 1  ;;  %v689_v51 = vadd.f32 2.0, %v8666_v34  ;;  %v605_v58 = vmul.f32 %v7581_v57, %v7581_v57  ;;  %v637_v28 = vmul.f32 2.0, %v7581_v57  ;;  %3624 = vmatpush.bf16.msrb.mxu1 %v7012_v30 }
 0x162   : > { %v1396_v41 = vsel %vm1349_vm1, %v1393_v37, %v1395_v47  ;;  %7380 = vst [vmem:[#allocation2 + $0xf0] sm:$0xff] %v7253_v54   ;;  %v1597_v37 = vsel %vm1574_vm5, %v1594_v14, %v1596_v17  ;;  %v568_v13 = vmul.f32 1.442695, %v510_v61  ;;  %vm796_vm13 = vcmp.gt.f32.partialorder %v8554_v46, 20.0 }
 0x163   : > { %v7173_v8 = vpack.c.bf16 %v1396_v41, %v1532_v62  ;;  %v1599_v24 = vsel %vm1574_vm5, %v1596_v17, %v1598_v45  ;;  %7586 = vrcp.f32 %v689_v51  ;;  %v6928_v12 = vld [vmem:[#allocation2 + $0xc0] sm:$0xff]  ;;  %v669_v11 = vadd.f32 %v637_v28, %v605_v58 }
 0x164   : > { %v7583_v63 = vpop.eup %7582  ;;  %v1746_v3 = vsel %vm8657_vm12, 0.0, %v1599_v24  ;;  %v1066_v43 = vand.u32 15, %v892_v44  ;;  %2523 = vmatmul.bf16.gmra.mxu2 %v6928_v12  ;;  %7588 = vpow2.f32 %v568_v13  ;;  %v1620_v31 = vrot.slane %v8664_v27, 1 }
 0x165   : > { %v7585_v40 = vpop.eup %7584  ;;  %7365 = vst [vmem:[#allocation2 + $0x60] sm:$0xff] %v7173_v8   ;;  %v7303_v4 = vpack.c.bf16 %v1746_v3, %v1597_v37  ;;  %v764_v52 = vmul.f32 %v7583_v63, %v668_v21  ;;  %v701_v39 = vadd.f32 2.0, %v669_v11  ;;  %v893_v53 = vadd.s32 192, %v8120_v55  ;;  %v8730_v28 = vpop.f32.mrf.mxu2 }
 0x166   : > { %v594_v49 = vmul.f32 %v7585_v40, %v7585_v40  ;;  %v626_v22 = vmul.f32 2.0, %v7585_v40  ;;  %v6904_v14 = vld [vmem:[#allocation2 + $0x30] sm:$0xff]  ;;  %v499_v21 = vmin.f32 %v8695_v9, 20.0  ;;  %v989_v25 = vand.u32 15, %v8689_v2 }
 0x167   : > { %v6975_v29 = vld [vmem:[#allocation2 + $0x30] sm:$0xff]  ;;  %7389 = vst [vmem:[#allocation2 + $0x150] sm:$0xff] %v7303_v4   ;;  %v828_v26 = vmul.f32 %v764_v52, %v8554_v46  ;;  %7590 = vrcp.f32 %v701_v39  ;;  %2209 = vmatmul.bf16.gmra.mxu1 %v6904_v14  ;;  %vm8715_vm14 = vcmp.eq.s32.totalorder %v1066_v43, 15  ;;  %v1373_v54 = vrot.slane %v8679_v36, 7  ;;  %v8767_v14 = vpop.f32.mrf.mxu1 }
 0x168   : > { %v658_v38 = vadd.f32 %v626_v22, %v594_v49  ;;  %3274 = vmatmul.bf16.gmra.mxu0 %v6975_v29  ;;  %v546_v17 = vmul.f32 1.442695, %v499_v21  ;;  %v1621_v51 = vsel %vm1574_vm5, %v1618_v10, %v1620_v31  ;;  %v1073_v61 = vand.u32 15, %v893_v53  ;;  %v7010_v52 = vld [vmem:[#allocation9 + $0x100] sm:$0xff] }
 0x169   : > { %v7587_v62 = vpop.eup %7586  ;;  %v8713_v5 = vsel %vm796_vm13, %v8554_v46, %v828_v26  ;;  %v7011_v46 = vld [vmem:[#allocation9 + $0x108] sm:$0xff]  ;;  %vm785_vm15 = vcmp.gt.f32.partialorder %v8557_v56, 20.0  ;;  %vm8735_vm0 = vcmp.eq.s32.totalorder %v989_v25, 0  ;;  %v1374_v1 = vsel %vm1349_vm1, %v1371_v15, %v1373_v54 }
 0x16a   : > { %v1622_v32 = vrot.slane %v8713_v5, 1  ;;  %v753_v57 = vmul.f32 %v7587_v62, %v8666_v34  ;;  %v690_v44 = vadd.f32 2.0, %v658_v38  ;;  %7592 = vpow2.f32 %v546_v17  ;;  %v7589_v41 = vpop.eup %7588  ;;  %3625 = vmatpush.bf16.msrb.mxu1 %v7011_v46 }
 0x16b   : > { %v1397_v34 = vrot.slane %v8713_v5, 7  ;;  %v606_v10 = vmul.f32 %v7589_v41, %v7589_v41  ;;  %v638_v8 = vmul.f32 2.0, %v7589_v41  ;;  %v882_v4 = vadd.s32 104, %v8120_v55 }
 0x16c   : > { %v1623_v2 = vsel %vm1574_vm5, %v1620_v31, %v1622_v32  ;;  %v817_v58 = vmul.f32 %v753_v57, %v8557_v56  ;;  %7594 = vrcp.f32 %v690_v44  ;;  %vm8749_vm2 = vcmp.eq.s32.totalorder %v1073_v61, 0 }
 0x16d   : > { %v1758_v23 = vsel %vm8715_vm14, 0.0, %v1623_v2  ;;  %v7591_v24 = vpop.eup %7590  ;;  %vm797_vm3 = vcmp.gt.f32.partialorder %v8617_v33, 20.0  ;;  %v670_v7 = vadd.f32 %v638_v8, %v606_v10  ;;  %v1522_v39 = vsel %vm8735_vm0, 0.0, %v1374_v1  ;;  %v8780_v17 = vpop.f32.mrf.mxu2 }
 0x16e   : > { %v7333_v63 = vpack.c.bf16 %v1758_v23, %v1621_v51  ;;  %v8743_v37 = vsel %vm785_vm15, %v8557_v56, %v817_v58  ;;  %v765_v40 = vmul.f32 %v7591_v24, %v669_v11  ;;  %v8756_v56 = vadd.f32 %v8550_v42, %v8582_v6  ;;  %3626 = vmatpush.bf16.msrb.mxu1 %v7010_v52 }
 0x16f   : > { %v1375_v3 = vrot.slane %v8743_v37, 7  ;;  %v7228_v13 = vpack.c.bf16 %v8743_v37, %v8679_v36  ;;  %v1398_v11 = vsel %vm1349_vm1, %v1395_v47, %v1397_v34  ;;  %v702_v31 = vadd.f32 2.0, %v670_v7  ;;  %v8805_v24 = vpop.f32.mrf.mxu1 }
 0x170   : > { %7395 = vst [vmem:[#allocation2 + $0x180] sm:$0xff] %v7333_v63   ;;  %v7593_v15 = vpop.eup %7592  ;;  %v829_v22 = vmul.f32 %v765_v40, %v8617_v33  ;;  %v996_v21 = vand.u32 15, %v882_v4  ;;  %v511_v30 = vmin.f32 %v8756_v56, 20.0  ;;  %v1534_v62 = vsel %vm8749_vm2, 0.0, %v1398_v11 }
 0x171   : > { %v1376_v49 = vsel %vm1349_vm1, %v1373_v54, %v1375_v3  ;;  %7375 = vst [vmem:[#allocation2 + $0xc8] sm:$0xff] %v7228_v13   ;;  %v595_v26 = vmul.f32 %v7593_v15, %v7593_v15  ;;  %v627_v53 = vmul.f32 2.0, %v7593_v15  ;;  %7596 = vrcp.f32 %v702_v31 }
 0x172   : > { %v7595_v6 = vpop.eup %7594  ;;  %v7148_v29 = vpack.c.bf16 %v1376_v49, %v1522_v39  ;;  %v8772_v27 = vsel %vm797_vm3, %v8617_v33, %v829_v22  ;;  %v570_v57 = vmul.f32 1.442695, %v511_v30  ;;  %v1600_v44 = vrot.slane %v8743_v37, 1 }
 0x173   : > { %v754_v47 = vmul.f32 %v7595_v6, %v658_v38  ;;  %v1399_v25 = vrot.slane %v8772_v27, 7  ;;  %v7258_v0 = vpack.c.bf16 %v8772_v27, %v8713_v5  ;;  %v659_v33 = vadd.f32 %v627_v53, %v595_v26 }
 0x174   : > { %7360 = vst [vmem:[#allocation2 + $0x38] sm:$0xff] %v7148_v29   ;;  %v8785_v38 = vadd.f32 %v8550_v42, %v8612_v19  ;;  %vm786_vm4 = vcmp.gt.f32.partialorder %v8622_v59, 20.0  ;;  %v883_v61 = vadd.s32 112, %v8120_v55  ;;  %7598 = vpow2.f32 %v570_v57 }
 0x175   : > { %v818_v54 = vmul.f32 %v754_v47, %v8622_v59  ;;  %v1400_v51 = vsel %vm1349_vm1, %v1397_v34, %v1399_v25  ;;  %7381 = vst [vmem:[#allocation2 + $0xf8] sm:$0xff] %v7258_v0   ;;  %v691_v2 = vadd.f32 2.0, %v659_v33  ;;  %vm8796_vm6 = vcmp.eq.s32.totalorder %v996_v21, 15  ;;  %v8820_v22 = vpop.f32.mrf.mxu2 }
 0x176   : > { %v7178_v46 = vpack.c.bf16 %v1400_v51, %v1534_v62  ;;  %v894_v23 = vadd.s32 200, %v8120_v55  ;;  %v512_v34 = vmin.f32 %v8785_v38, 20.0  ;;  %v884_v8 = vadd.s32 120, %v8120_v55 }
 0x177   : > { %v8794_v41 = vsel %vm786_vm4, %v8622_v59, %v818_v54  ;;  %7600 = vrcp.f32 %v691_v2  ;;  %v885_v59 = vadd.s32 128, %v8120_v55  ;;  %v7597_v12 = vpop.eup %7596  ;;  %v1003_v1 = vand.u32 15, %v883_v61 }
 0x178   : > { %v1602_v58 = vrot.slane %v8794_v41, 1  ;;  %v6929_v10 = vld [vmem:[#allocation2 + $0xc8] sm:$0xff]  ;;  %7366 = vst [vmem:[#allocation2 + $0x68] sm:$0xff] %v7178_v46   ;;  %v572_v13 = vmul.f32 1.442695, %v512_v34  ;;  %v1601_v40 = vsel %vm1574_vm5, %v1598_v45, %v1600_v44  ;;  %v766_v52 = vmul.f32 %v7597_v12, %v670_v7 }
 0x179   : > { %2528 = vmatmul.bf16.gmra.mxu2 %v6929_v10  ;;  %vm798_vm7 = vcmp.gt.f32.partialorder %v8670_v50, 20.0  ;;  %v1080_v11 = vand.u32 15, %v894_v23  ;;  %v8818_v49 = vadd.f32 %v8550_v42, %v8651_v18  ;;  %v1624_v45 = vrot.slane %v8772_v27, 1  ;;  %v6969_v27 = vld [vmem:[#allocation9 + $0xb8] sm:$0xff] }
 0x17a   : > { %v1603_v63 = vsel %vm1574_vm5, %v1600_v44, %v1602_v58  ;;  %7602 = vpow2.f32 %v572_v13  ;;  %v7599_v36 = vpop.eup %7598  ;;  %v830_v6 = vmul.f32 %v766_v52, %v8670_v50  ;;  %v1010_v29 = vand.u32 15, %v884_v8  ;;  %2863 = vmatpush.bf16.msrb.mxu3 %v6969_v27 }
 0x17b   : > { %v1748_v4 = vsel %vm8796_vm6, 0.0, %v1603_v63  ;;  %v6905_v43 = vld [vmem:[#allocation2 + $0x38] sm:$0xff]  ;;  %v1017_v7 = vand.u32 15, %v885_v59  ;;  %v607_v31 = vmul.f32 %v7599_v36, %v7599_v36  ;;  %v639_v26 = vmul.f32 2.0, %v7599_v36 }
 0x17c   : > { %v6976_v15 = vld [vmem:[#allocation2 + $0x38] sm:$0xff]  ;;  %v7308_v39 = vpack.c.bf16 %v1748_v4, %v1601_v40  ;;  %2214 = vmatmul.bf16.gmra.mxu1 %v6905_v43  ;;  %v513_v53 = vmin.f32 %v8818_v49, 20.0  ;;  %vm8825_vm8 = vcmp.eq.s32.totalorder %v1003_v1, 0  ;;  %v1377_v21 = vrot.slane %v8794_v41, 7 }
 0x17d   : > { %3279 = vmatmul.bf16.gmra.mxu0 %v6976_v15  ;;  %v7601_v47 = vpop.eup %7600  ;;  %v8833_v30 = vsel %vm798_vm7, %v8670_v50, %v830_v6  ;;  %v895_v62 = vadd.s32 208, %v8120_v55  ;;  %vm8836_vm9 = vcmp.eq.s32.totalorder %v1080_v11, 15  ;;  %v671_v44 = vadd.f32 %v639_v26, %v607_v31  ;;  %v6994_v26 = vld [vmem:[#allocation2 + $0x98] sm:$0xff] }
 0x17e   : > { %7390 = vst [vmem:[#allocation2 + $0x158] sm:$0xff] %v7308_v39   ;;  %v1626_v54 = vrot.slane %v8833_v30, 1  ;;  %v755_v57 = vmul.f32 %v7601_v47, %v659_v33  ;;  %v1625_v51 = vsel %vm1574_vm5, %v1622_v32, %v1624_v45  ;;  %vm787_vm10 = vcmp.gt.f32.partialorder %v8695_v9, 20.0 }
 0x17f   : > { %vm8845_vm11 = vcmp.eq.s32.totalorder %v1017_v7, 0  ;;  %vm8849_vm12 = vcmp.eq.s32.totalorder %v1010_v29, 15  ;;  %v703_v19 = vadd.f32 2.0, %v671_v44  ;;  %v574_v32 = vmul.f32 1.442695, %v513_v53 }
 0x180   : > { %v7603_v2 = vpop.eup %7602  ;;  %v1627_v33 = vsel %vm1574_vm5, %v1624_v45, %v1626_v54  ;;  %v819_v5 = vmul.f32 %v755_v57, %v8695_v9  ;;  %v1378_v23 = vsel %vm1349_vm1, %v1375_v3, %v1377_v21  ;;  %v8865_v1 = vadd.f32 %v8550_v42, %v8702_v20 }
 0x181   : > { %v1760_v34 = vsel %vm8836_vm9, 0.0, %v1627_v33  ;;  %v608_v10 = vmul.f32 %v7603_v2, %v7603_v2  ;;  %v640_v8 = vmul.f32 2.0, %v7603_v2  ;;  %7604 = vrcp.f32 %v703_v19 }
 0x182   : > { %v7338_v59 = vpack.c.bf16 %v1760_v34, %v1625_v51  ;;  %v851_v12 = vsel %vm787_vm10, %v8695_v9, %v819_v5  ;;  %v1524_v3 = vsel %vm8825_vm8, 0.0, %v1378_v23  ;;  %v1087_v52 = vand.u32 15, %v895_v62  ;;  %v6968_v34 = vld [vmem:[#allocation9 + $0xb0] sm:$0xff] }
 0x183   : > { %v2185_v46 = vpop.f32.mrf.mxu1  ;;  %v1379_v13 = vrot.slane %v851_v12, 7  ;;  %v1604_v40 = vrot.slane %v851_v12, 1  ;;  %v7233_v37 = vpack.c.bf16 %v851_v12, %v8794_v41  ;;  %v672_v4 = vadd.f32 %v640_v8, %v608_v10  ;;  %2864 = vmatpush.bf16.msrb.mxu3 %v6968_v34 }
 0x184   : > { %7396 = vst [vmem:[#allocation2 + $0x188] sm:$0xff] %v7338_v59   ;;  %7606 = vpow2.f32 %v574_v32  ;;  %v514_v43 = vmin.f32 %v8865_v1, 20.0  ;;  %v1401_v29 = vrot.slane %v8833_v30, 7  ;;  %vm8895_vm13 = vcmp.eq.s32.totalorder %v1087_v52, 0  ;;  %v8915_v2 = vpop.f32.mrf.mxu0 }
 0x185   : > { %v1380_v9 = vsel %vm1349_vm1, %v1377_v21, %v1379_v13  ;;  %v1382_v20 = vsel %vm1349_vm1, %v1379_v13, %v1381_v35  ;;  %v1605_v15 = vsel %vm1574_vm5, %v1602_v58, %v1604_v40  ;;  %v1607_v39 = vsel %vm1574_vm5, %v1604_v40, %v1606_v48  ;;  %7376 = vst [vmem:[#allocation2 + $0xd0] sm:$0xff] %v7233_v37  }
 0x186   : > { %v2499_v63 = vpop.f32.mrf.mxu2  ;;  %v1526_v11 = vsel %vm8845_vm11, 0.0, %v1382_v20  ;;  %v1750_v36 = vsel %vm8849_vm12, 0.0, %v1607_v39  ;;  %v7153_v45 = vpack.c.bf16 %v1380_v9, %v1524_v3  ;;  %v704_v6 = vadd.f32 2.0, %v672_v4  ;;  %v6967_v20 = vld [vmem:[#allocation9 + $0xa8] sm:$0xff] }
 0x187   : > { %v7158_v35 = vpack.c.bf16 %v8316_v60, %v1526_v11  ;;  %v7313_v41 = vpack.c.bf16 %v1750_v36, %v1605_v15  ;;  %v576_v7 = vmul.f32 1.442695, %v514_v43  ;;  %v7605_v16 = vpop.eup %7604  ;;  %v8891_v48 = vadd.f32 %v8550_v42, %v8730_v28  ;;  %2865 = vmatpush.bf16.msrb.mxu3 %v6967_v20  ;;  %v6999_v20 = vld [vmem:[#allocation2 + $0xc0] sm:$0xff] }
 0x188   : > { %7361 = vst [vmem:[#allocation2 + $0x40] sm:$0xff] %v7153_v45   ;;  %7608 = vrcp.f32 %v704_v6  ;;  %v767_v31 = vmul.f32 %v7605_v16, %v671_v44  ;;  %v8893_v53 = vadd.f32 %v2499_v63, %v2185_v46  ;;  %vm799_vm14 = vcmp.gt.f32.partialorder %v8756_v56, 20.0 }
 0x189   : > { %7362 = vst [vmem:[#allocation2 + $0x48] sm:$0xff] %v7158_v35   ;;  %7610 = vpow2.f32 %v576_v7  ;;  %v515_v18 = vmin.f32 %v8891_v48, 20.0  ;;  %v1402_v42 = vsel %vm1349_vm1, %v1399_v25, %v1401_v29  ;;  %v896_v57 = vadd.s32 216, %v8120_v55 }
 0x18a   : > { %v7607_v47 = vpop.eup %7606  ;;  %7391 = vst [vmem:[#allocation2 + $0x160] sm:$0xff] %v7313_v41   ;;  %v831_v28 = vmul.f32 %v767_v31, %v8756_v56  ;;  %v8913_v46 = vadd.f32 %v8780_v17, %v8767_v14  ;;  %v1536_v33 = vsel %vm8895_vm13, 0.0, %v1402_v42  ;;  %vm800_vm15 = vcmp.gt.f32.partialorder %v8785_v38, 20.0 }
 0x18b   : > { %v8887_v58 = vpop.f32.mrf.mxu1  ;;  %v609_v62 = vmul.f32 %v7607_v47, %v7607_v47  ;;  %v641_v0 = vmul.f32 2.0, %v7607_v47  ;;  %v578_v44 = vmul.f32 1.442695, %v515_v18  ;;  %v1094_v59 = vand.u32 15, %v896_v57  ;;  %v6995_v18 = vld [vmem:[#allocation2 + $0xa0] sm:$0xff] }
 0x18c   : > { %3627 = vmatmul.bf16.vlgmr.msrb.gmra.mxu1 %v6994_v26  ;;  %v6930_v51 = vld [vmem:[#allocation2 + $0xd0] sm:$0xff]  ;;  %v8909_v61 = vsel %vm799_vm14, %v8756_v56, %v831_v28  ;;  %v8942_v31 = vpop.f32.mrf.mxu0  ;;  %vm801_vm2 = vcmp.gt.f32.partialorder %v8818_v49, 20.0  ;;  %vm802_vm4 = vcmp.gt.f32.partialorder %v8865_v1, 20.0  ;;  %vm803_vm7 = vcmp.gt.f32.partialorder %v8891_v48, 20.0 }
 0x18d   : > { %v673_v50 = vadd.f32 %v641_v0, %v609_v62  ;;  %v1403_v5 = vrot.slane %v8909_v61, 7  ;;  %v7263_v19 = vpack.c.bf16 %v8909_v61, %v8833_v30  ;;  %7612 = vpow2.f32 %v578_v44  ;;  %2533 = vmatmul.bf16.gmra.mxu2 %v6930_v51 }
 0x18e   : > { %v8901_v21 = vpop.f32.mrf.mxu2  ;;  %v7609_v25 = vpop.eup %7608  ;;  %v1628_v13 = vrot.slane %v8909_v61, 1  ;;  %vm1569_vm0 = vcmp.eq.s32.totalorder %v1094_v59, 15  ;;  %v899_v51 = vadd.s32 240, %v8120_v55  ;;  %v7041_v59 = vld [vmem:[#allocation9 + $0x178] sm:$0xff] }
 0x18f   : > { %v7611_v56 = vpop.eup %7610  ;;  %v768_v32 = vmul.f32 %v7609_v25, %v672_v4  ;;  %v705_v14 = vadd.f32 2.0, %v673_v50  ;;  %v6906_v17 = vld [vmem:[#allocation2 + $0x40] sm:$0xff]  ;;  %v1404_v8 = vsel %vm1349_vm1, %v1401_v29, %v1403_v5  ;;  %7382 = vst [vmem:[#allocation2 + $0x100] sm:$0xff] %v7263_v19   ;;  %v897_v4 = vadd.s32 224, %v8120_v55  ;;  %3997 = vmatpush.bf16.msra.mxu2 %v7041_v59  ;;  %v7083_v59 = vld [vmem:[#allocation9 + $0x1c8] sm:$0xff] }
 0x190   : > { %v6977_v23 = vld [vmem:[#allocation2 + $0x40] sm:$0xff]  ;;  %v610_v12 = vmul.f32 %v7611_v56, %v7611_v56  ;;  %v642_v63 = vmul.f32 2.0, %v7611_v56  ;;  %v7183_v40 = vpack.c.bf16 %v1404_v8, %v1536_v33  ;;  %2219 = vmatmul.bf16.vlgmr.msra.gmra.mxu3 %v6906_v17  ;;  %v1629_v36 = vsel %vm1574_vm5, %v1626_v54, %v1628_v13  ;;  %v6978_v17 = vld [vmem:[#allocation2 + $0x48] sm:$0xff] }
 0x191   : > { %v832_v37 = vmul.f32 %v768_v32, %v8785_v38  ;;  %7614 = vrcp.f32 %v705_v14  ;;  %3284 = vmatmul.bf16.gmra.mxu0 %v6977_v23  ;;  %v1101_v29 = vand.u32 15, %v897_v4  ;;  %v898_v54 = vadd.s32 232, %v8120_v55  ;;  %v6907_v14 = vld [vmem:[#allocation2 + $0x48] sm:$0xff] }
 0x192   : > { %v674_v3 = vadd.f32 %v642_v63, %v610_v12  ;;  %7367 = vst [vmem:[#allocation2 + $0x70] sm:$0xff] %v7183_v40   ;;  %v900_v19 = vadd.s32 248, %v8120_v55  ;;  %v1115_v34 = vand.u32 15, %v899_v51  ;;  %v6966_v12 = vld [vmem:[#allocation9 + $0xa0] sm:$0xff] }
 0x193   : > { %v2190_v10 = vpop.f32.mrf.mxu1  ;;  %v8930_v43 = vsel %vm800_vm15, %v8785_v38, %v832_v37  ;;  %v7613_v15 = vpop.eup %7612  ;;  %vm8948_vm3 = vcmp.eq.s32.totalorder %v1101_v29, 0  ;;  %v1108_v61 = vand.u32 15, %v898_v54  ;;  %2866 = vmatpush.bf16.msrb.mxu3 %v6966_v12  ;;  %v6910_v12 = vld [vmem:[#allocation2 + $0x60] sm:$0xff] }
 0x194   : > { %v1630_v39 = vrot.slane %v8930_v43, 1  ;;  %v706_v11 = vadd.f32 2.0, %v674_v3  ;;  %v611_v45 = vmul.f32 %v7613_v15, %v7613_v15  ;;  %v643_v6 = vmul.f32 2.0, %v7613_v15  ;;  %v8970_v55 = vpop.f32.mrf.mxu0 }
 0x195   : > { %v1405_v35 = vrot.slane %v8930_v43, 7  ;;  %vm8966_vm6 = vcmp.eq.s32.totalorder %v1108_v61, 15  ;;  %v1122_v37 = vand.u32 15, %v900_v19  ;;  %vm8978_vm8 = vcmp.eq.s32.totalorder %v1115_v34, 0  ;;  %v6980_v19 = vld [vmem:[#allocation2 + $0x58] sm:$0xff]  ;;  %v6934_v34 = vld [vmem:[#allocation2 + $0xf0] sm:$0xff] }
 0x196   : > { %v2504_v52 = vpop.f32.mrf.mxu2  ;;  %v1631_v38 = vsel %vm1574_vm5, %v1628_v13, %v1630_v39  ;;  %7616 = vrcp.f32 %v706_v11  ;;  %v675_v16 = vadd.f32 %v643_v6, %v611_v45 }
 0x197   : > { %v8932_v9 = vadd.f32 %v2504_v52, %v2190_v10  ;;  %v7615_v41 = vpop.eup %7614  ;;  %v1762_v7 = vsel %vm1569_vm0, 0.0, %v1631_v38  ;;  %v1406_v28 = vsel %vm1349_vm1, %v1403_v5, %v1405_v35  ;;  %vm1573_vm9 = vcmp.eq.s32.totalorder %v1122_v37, 15  ;;  %v7040_v37 = vld [vmem:[#allocation9 + $0x170] sm:$0xff] }
 0x198   : > { %v7343_v26 = vpack.c.bf16 %v1762_v7, %v1629_v36  ;;  %v769_v30 = vmul.f32 %v7615_v41, %v673_v50  ;;  %v707_v60 = vadd.f32 2.0, %v675_v16  ;;  %v6931_v50 = vld [vmem:[#allocation2 + $0xd8] sm:$0xff]  ;;  %v1538_v27 = vsel %vm8948_vm3, 0.0, %v1406_v28  ;;  %3998 = vmatpush.bf16.msra.mxu2 %v7040_v37 }
 0x19a   : > { %7397 = vst [vmem:[#allocation2 + $0x190] sm:$0xff] %v7343_v26   ;;  %v833_v62 = vmul.f32 %v769_v30, %v8818_v49  ;;  %7618 = vrcp.f32 %v707_v60  ;;  %v6996_v26 = vld [vmem:[#allocation2 + $0xa8] sm:$0xff] }
 0x19b   : > { %v8945_v47 = vpop.f32.mrf.mxu1 }
 0x19c   : > { %3632 = vmatmul.bf16.gmra.mxu1 %v6995_v18  ;;  %v7617_v57 = vpop.eup %7616  ;;  %v865_v44 = vsel %vm801_vm2, %v8818_v49, %v833_v62  ;;  %v8993_v18 = vpop.f32.mrf.mxu0  ;;  %v6908_v62 = vld [vmem:[#allocation2 + $0x50] sm:$0xff] }
 0x19d   : > { %v1407_v25 = vrot.slane %v865_v44, 7  ;;  %v7268_v33 = vpack.c.bf16 %v865_v44, %v8930_v43  ;;  %v770_v5 = vmul.f32 %v7617_v57, %v674_v3  ;;  %2538 = vmatmul.bf16.gmra.mxu2 %v6931_v50  ;;  %v1632_v32 = vrot.slane %v865_v44, 1  ;;  %v6979_v57 = vld [vmem:[#allocation2 + $0x50] sm:$0xff]  ;;  %v6965_v44 = vld [vmem:[#allocation9 + $0x98] sm:$0xff] }
 0x19e   : > { %v8954_v0 = vpop.f32.mrf.mxu2  ;;  %2867 = vmatpush.bf16.msrb.mxu3 %v6965_v44  ;;  %v7086_v44 = vld [vmem:[#allocation9 + $0x1e0] sm:$0xff] }
 0x19f   : > { %v1408_v56 = vsel %vm1349_vm1, %v1405_v35, %v1407_v25  ;;  %7383 = vst [vmem:[#allocation2 + $0x108] sm:$0xff] %v7268_v33   ;;  %v834_v49 = vmul.f32 %v770_v5, %v8865_v1  ;;  %v6933_v33 = vld [vmem:[#allocation2 + $0xe8] sm:$0xff]  ;;  %v6909_v5 = vld [vmem:[#allocation2 + $0x58] sm:$0xff] }
 0x1a0   : > { %v7188_v23 = vpack.c.bf16 %v1408_v56, %v1538_v27  ;;  %v7619_v10 = vpop.eup %7618  ;;  %2224 = vmatmul.bf16.gmra.mxu3 %v6907_v14 }
 0x1a1   : > { %v866_v8 = vsel %vm802_vm4, %v8865_v1, %v834_v49  ;;  %3289 = vmatmul.bf16.gmra.mxu0 %v6978_v17  ;;  %v771_v40 = vmul.f32 %v7619_v10, %v675_v16  ;;  %v1633_v1 = vsel %vm1574_vm5, %v1630_v39, %v1632_v32  ;;  %v6998_v17 = vld [vmem:[#allocation2 + $0xb8] sm:$0xff] }
 0x1a2   : > { %7368 = vst [vmem:[#allocation2 + $0x78] sm:$0xff] %v7188_v23   ;;  %v1409_v63 = vrot.slane %v866_v8, 7  ;;  %v1634_v13 = vrot.slane %v866_v8, 1 }
 0x1a3   : > { %v2195_v4 = vpop.f32.mrf.mxu1  ;;  %v835_v36 = vmul.f32 %v771_v40, %v8891_v48  ;;  %v6963_v40 = vld [vmem:[#allocation9 + $0x88] sm:$0xff] }
 0x1a4   : > { %v1410_v15 = vsel %vm1349_vm1, %v1407_v25, %v1409_v63  ;;  %v1635_v11 = vsel %vm1574_vm5, %v1632_v32, %v1634_v13  ;;  %v8999_v51 = vpop.f32.mrf.mxu0  ;;  %v6997_v25 = vld [vmem:[#allocation2 + $0xb0] sm:$0xff]  ;;  %v6964_v32 = vld [vmem:[#allocation9 + $0x90] sm:$0xff] }
 0x1a5   : > { %v1764_v43 = vsel %vm8966_vm6, 0.0, %v1635_v11  ;;  %v867_v39 = vsel %vm803_vm7, %v8891_v48, %v835_v36  ;;  %v1540_v6 = vsel %vm8978_vm8, 0.0, %v1410_v15  ;;  %v6932_v48 = vld [vmem:[#allocation2 + $0xe0] sm:$0xff]  ;;  %2868 = vmatpush.bf16.msrb.mxu3 %v6964_v32  ;;  %v6935_v11 = vld [vmem:[#allocation2 + $0xf8] sm:$0xff]  ;;  %v7085_v32 = vld [vmem:[#allocation9 + $0x1d8] sm:$0xff] }
 0x1a6   : > { %v2509_v3 = vpop.f32.mrf.mxu2  ;;  %v7348_v45 = vpack.c.bf16 %v1764_v43, %v1633_v1  ;;  %v1411_v29 = vrot.slane %v867_v39, 7  ;;  %v1636_v35 = vrot.slane %v867_v39, 1  ;;  %v7273_v38 = vpack.c.bf16 %v867_v39, %v866_v8  ;;  %v7038_v1 = vld [vmem:[#allocation9 + $0x160] sm:$0xff]  ;;  %v7037_v43 = vld [vmem:[#allocation9 + $0x158] sm:$0xff] }
 0x1a7   : > { %v8976_v52 = vadd.f32 %v2509_v3, %v2195_v4  ;;  %v7039_v4 = vld [vmem:[#allocation9 + $0x168] sm:$0xff]  ;;  %v6911_v39 = vld [vmem:[#allocation2 + $0x68] sm:$0xff] }
 0x1a8   : > { %7398 = vst [vmem:[#allocation2 + $0x198] sm:$0xff] %v7348_v45   ;;  %v1412_v41 = vsel %vm1349_vm1, %v1409_v63, %v1411_v29  ;;  %v1637_v7 = vsel %vm1574_vm5, %v1634_v13, %v1636_v35  ;;  %v1670_v16 = vsel %vm1574_vm5, %v1636_v35, 0.0  ;;  %v6981_v63 = vld [vmem:[#allocation2 + $0x60] sm:$0xff]  ;;  %3999 = vmatpush.bf16.msra.mxu2 %v7039_v4  ;;  %v6962_v29 = vld [vmem:[#allocation9 + $0x80] sm:$0xff]  ;;  %v7089_v35 = vld [vmem:[#allocation9 + $0x1f8] sm:$0xff] }
 0x1a9   : > { %7384 = vst [vmem:[#allocation2 + $0x110] sm:$0xff] %v7273_v38   ;;  %v1766_v30 = vsel %vm1573_vm9, 0.0, %v1670_v16  ;;  %v7193_v54 = vpack.c.bf16 %v1412_v41, %v1540_v6  ;;  %2869 = vmatpush.bf16.msrb.mxu3 %v6963_v40  ;;  %v6982_v6 = vld [vmem:[#allocation2 + $0x68] sm:$0xff]  ;;  %v7036_v38 = vld [vmem:[#allocation9 + $0x150] sm:$0xff]  ;;  %4755 = vmatpush.bf16.msra.mxu0 %v7089_v35  ;;  %v7035_v16 = vld [vmem:[#allocation9 + $0x148] sm:$0xff] }
 0x1aa   : > { %v7353_v60 = vpack.c.bf16 %v1766_v30, %v1637_v7  ;;  %v7088_v41 = vld [vmem:[#allocation9 + $0x1f0] sm:$0xff]  ;;  %v6937_v40 = vld [vmem:[#allocation2 + $0x108] sm:$0xff] }
 0x1ab   : > { %7369 = vst [vmem:[#allocation2 + $0x80] sm:$0xff] %v7193_v54   ;;  %v8995_v42 = vpop.f32.mrf.mxu1  ;;  %v7087_v54 = vld [vmem:[#allocation9 + $0x1e8] sm:$0xff] }
 0x1ac   : > { %3637 = vmatmul.bf16.gmra.mxu1 %v6996_v26  ;;  %7399 = vst [vmem:[#allocation2 + $0x1a0] sm:$0xff] %v7353_v60   ;;  %v9003_v56 = vpop.f32.mrf.mxu0  ;;  %4000 = vmatpush.bf16.msra.mxu2 %v7038_v1  ;;  %v7034_v60 = vld [vmem:[#allocation9 + $0x140] sm:$0xff] }
 0x1ad   : > { %2543 = vmatmul.bf16.gmra.mxu2 %v6932_v48  ;;  %2870 = vmatpush.bf16.msrb.mxu3 %v6962_v29  ;;  %v7082_v1 = vld [vmem:[#allocation9 + $0x1c0] sm:$0xff] }
 0x1ae   : > { %v8997_v28 = vpop.f32.mrf.mxu2  ;;  %4756 = vmatpush.bf16.msra.mxu0 %v7088_v41  ;;  %v7018_v41 = vld [vmem:[#allocation2 + $0x128] sm:$0xff] }
 0x1b0   : > { %2229 = vmatmul.bf16.gmra.mxu3 %v6908_v62  ;;  %4001 = vmatpush.bf16.msra.mxu2 %v7037_v43  ;;  %v7000_v62 = vld [vmem:[#allocation2 + $0xc8] sm:$0xff] }
 0x1b1   : > { %3294 = vmatmul.bf16.gmra.mxu0 %v6979_v57  ;;  %v6936_v57 = vld [vmem:[#allocation2 + $0x100] sm:$0xff] }
 0x1b2   : > { %4757 = vmatpush.bf16.msra.mxu0 %v7087_v54 }
 0x1b4   : > { %4002 = vmatpush.bf16.msra.mxu2 %v7036_v38  ;;  %v7002_v38 = vld [vmem:[#allocation2 + $0xd8] sm:$0xff] }
 0x1b6   : > { %4758 = vmatpush.bf16.msra.mxu0 %v7086_v44 }
 0x1b7   : > { %v2200_v61 = vpop.f32.mrf.mxu1 }
 0x1b8   : > { %v9009_v23 = vpop.f32.mrf.mxu0  ;;  %4003 = vmatpush.bf16.msra.mxu2 %v7035_v16  ;;  %v6985_v16 = vld [vmem:[#allocation2 + $0x80] sm:$0xff] }
 0x1ba   : > { %v2514_v50 = vpop.f32.mrf.mxu2  ;;  %4759 = vmatpush.bf16.msra.mxu0 %v7085_v32 }
 0x1bb   : > { %v9001_v27 = vadd.f32 %v2514_v50, %v2200_v61 }
 0x1bc   : > { %3642 = vmatmul.bf16.gmra.mxu1 %v6997_v25  ;;  %4004 = vmatpush.bf16.msra.mxu2 %v7034_v60  ;;  %v6912_v25 = vld [vmem:[#allocation2 + $0x70] sm:$0xff] }
 0x1bd   : > { %2548 = vmatmul.bf16.gmra.mxu2 %v6933_v33  ;;  %v6983_v33 = vld [vmem:[#allocation2 + $0x70] sm:$0xff] }
 0x1bf   : > { %v9005_v49 = vpop.f32.mrf.mxu1 }
 0x1c0   : > { %2234 = vmatmul.bf16.gmra.mxu3 %v6909_v5  ;;  %9941 = vst [vmem:[#allocation14_spill] sm:$0xff] %v9005_v49  ;;  %v9013_v3 = vpop.f32.mrf.mxu0 }
 0x1c1   : > { %3299 = vmatmul.bf16.gmra.mxu0 %v6980_v19  ;;  %v7065_v19 = vld [vmem:[#allocation9 + $0x1b8] sm:$0xff] }
 0x1c2   : > { %v9007_v14 = vpop.f32.mrf.mxu2  ;;  %4376 = vmatpush.bf16.msra.mxu3 %v7065_v19 }
 0x1c3   : > { %9942 = vst [vmem:[#allocation15_spill] sm:$0xff] %v9007_v14  ;;  %v6954_v14 = vld [vmem:[#allocation2 + $0x160] sm:$0xff] }
 0x1cc   : > { %3647 = vmatmul.bf16.gmra.mxu1 %v6998_v17 }
 0x1cd   : > { %2553 = vmatmul.bf16.gmra.mxu2 %v6934_v34  ;;  %v2205_v10 = vpop.f32.mrf.mxu1  ;;  %v7084_v34 = vld [vmem:[#allocation9 + $0x1d0] sm:$0xff] }
 0x1ce   : > { %v9019_v45 = vpop.f32.mrf.mxu0  ;;  %4760 = vmatpush.bf16.msra.mxu0 %v7084_v34  ;;  %v7019_v34 = vld [vmem:[#allocation2 + $0x130] sm:$0xff] }
 0x1cf   : > { %9945 = vst [vmem:[#allocation18_spill] sm:$0xff] %v9019_v45 }
 0x1d0   : > { %2239 = vmatmul.bf16.gmra.mxu3 %v6910_v12  ;;  %v7113_v12 = vld [vmem:[#allocation9 + $0x238] sm:$0xff] }
 0x1d1   : > { %v2519_v8 = vpop.f32.mrf.mxu2  ;;  %3304 = vmatmul.bf16.gmra.mxu0 %v6981_v63  ;;  %5134 = vmatpush.bf16.msra.mxu1 %v7113_v12 }
 0x1d2   : > { %v9011_v13 = vadd.f32 %v2519_v8, %v2205_v10  ;;  %v7001_v8 = vld [vmem:[#allocation2 + $0xd0] sm:$0xff]  ;;  %4761 = vmatpush.bf16.msra.mxu0 %v7083_v59  ;;  %v7066_v59 = vld [vmem:[#allocation2 + $0xa0] sm:$0xff] }
 0x1d5   : > { %v9015_v15 = vpop.f32.mrf.mxu1 }
 0x1d6   : > { %9943 = vst [vmem:[#allocation16_spill] sm:$0xff] %v9015_v15  ;;  %v9023_v48 = vpop.f32.mrf.mxu0  ;;  %4762 = vmatpush.bf16.msra.mxu0 %v7082_v1 }
 0x1d7   : > { %9946 = vst [vmem:[#allocation19_spill] sm:$0xff] %v9023_v48  ;;  %v7025_v48 = vld [vmem:[#allocation2 + $0x160] sm:$0xff] }
 0x1d9   : > { %v9017_v36 = vpop.f32.mrf.mxu2 }
 0x1da   : > { %9944 = vst [vmem:[#allocation17_spill] sm:$0xff] %v9017_v36  ;;  %v7070_v36 = vld [vmem:[#allocation2 + $0xc0] sm:$0xff] }
 0x1dc   : > { %3652 = vmatmul.bf16.gmra.mxu1 %v6999_v20  ;;  %v6913_v20 = vld [vmem:[#allocation2 + $0x78] sm:$0xff] }
 0x1dd   : > { %2558 = vmatmul.bf16.gmra.mxu2 %v6935_v11  ;;  %v6984_v11 = vld [vmem:[#allocation2 + $0x78] sm:$0xff] }
 0x1e0   : > { %2244 = vmatmul.bf16.gmra.mxu3 %v6911_v39 }
 0x1e1   : > { %3309 = vmatmul.bf16.gmra.mxu0 %v6982_v6 }
 0x1e4   : > { %v2210_v7 = vpop.f32.mrf.mxu1 }
 0x1e5   : > { %v9027_v17 = vpop.f32.mrf.mxu0 }
 0x1e6   : > { %9947 = vst [vmem:[#allocation20_spill] sm:$0xff] %v9027_v17 }
 0x1e7   : > { %v2524_v26 = vpop.f32.mrf.mxu2 }
 0x1e8   : > { %v9021_v30 = vadd.f32 %v2524_v26, %v2210_v7  ;;  %v6946_v7 = vld [vmem:[#allocation2 + $0x120] sm:$0xff] }
 0x1ec   : > { %3657 = vmatmul.bf16.gmra.mxu1 %v7000_v62  ;;  %v2212_v61 = vpop.f32.mrf.mxu1  ;;  %v7064_v62 = vld [vmem:[#allocation9 + $0x1b0] sm:$0xff] }
 0x1ed   : > { %2563 = vmatmul.bf16.gmra.mxu2 %v6936_v57  ;;  %v9031_v4 = vpop.f32.mrf.mxu0  ;;  %4377 = vmatpush.bf16.msra.mxu3 %v7064_v62  ;;  %v7067_v62 = vld [vmem:[#allocation2 + $0xa8] sm:$0xff] }
 0x1ee   : > { %9948 = vst [vmem:[#allocation21_spill] sm:$0xff] %v9031_v4  ;;  %v7007_v4 = vld [vmem:[#allocation2 + $0x100] sm:$0xff] }
 0x1ef   : > { %v2526_v50 = vpop.f32.mrf.mxu2 }
 0x1f0   : > { %v9025_v5 = vadd.f32 %v2526_v50, %v2212_v61  ;;  %2249 = vmatmul.bf16.gmra.mxu3 %v6912_v25  ;;  %v7003_v25 = vld [vmem:[#allocation2 + $0xe0] sm:$0xff] }
 0x1f1   : > { %3314 = vmatmul.bf16.gmra.mxu0 %v6983_v33  ;;  %v7112_v33 = vld [vmem:[#allocation9 + $0x230] sm:$0xff] }
 0x1f2   : > { %5135 = vmatpush.bf16.msra.mxu1 %v7112_v33 }
 0x1f9   : > { %v2215_v10 = vpop.f32.mrf.mxu1 }
 0x1fa   : > { %v9035_v29 = vpop.f32.mrf.mxu0 }
 0x1fb   : > { %9949 = vst [vmem:[#allocation22_spill] sm:$0xff] %v9035_v29 }
 0x1fc   : > { %v2529_v63 = vpop.f32.mrf.mxu2  ;;  %3662 = vmatmul.bf16.gmra.mxu1 %v7001_v8  ;;  %v6947_v8 = vld [vmem:[#allocation2 + $0x128] sm:$0xff] }
 0x1fd   : > { %v9029_v37 = vadd.f32 %v2529_v63, %v2215_v10  ;;  %2568 = vmatmul.bf16.gmra.mxu2 %v6937_v40 }
 0x200   : > { %2254 = vmatmul.bf16.gmra.mxu3 %v6913_v20 }
 0x201   : > { %v2217_v43 = vpop.f32.mrf.mxu1  ;;  %3319 = vmatmul.bf16.gmra.mxu0 %v6984_v11 }
 0x202   : > { %v9041_v54 = vpop.f32.mrf.mxu0 }
 0x203   : > { %9950 = vst [vmem:[#allocation23_spill] sm:$0xff] %v9041_v54 }
 0x204   : > { %v2531_v39 = vpop.f32.mrf.mxu2 }
 0x205   : > { %v9033_v6 = vadd.f32 %v2531_v39, %v2217_v43  ;;  %v7004_v39 = vld [vmem:[#allocation2 + $0xe8] sm:$0xff] }
 0x209   : > { %v9037_v35 = vpop.f32.mrf.mxu1 }
 0x20c   : > { %3667 = vmatmul.bf16.gmra.mxu1 %v7002_v38 }
 0x20d   : > { %4005 = vmatmul.bf16.vlgmr.msra.gmra.mxu2 %v7018_v41  ;;  %v7020_v41 = vld [vmem:[#allocation2 + $0x138] sm:$0xff] }
 0x20e   : > { %v9047_v19 = vpop.f32.mrf.mxu0 }
 0x20f   : > { %9951 = vst [vmem:[#allocation24_spill] sm:$0xff] %v9047_v19  ;;  %v6950_v19 = vld [vmem:[#allocation2 + $0x140] sm:$0xff] }
 0x210   : > { %v2534_v60 = vpop.f32.mrf.mxu2  ;;  %2871 = vmatmul.bf16.vlgmr.msrb.gmra.mxu3 %v6946_v7 }
 0x211   : > { %v9039_v26 = vpop.f32.mrf.mxu1  ;;  %3324 = vmatmul.bf16.gmra.mxu0 %v6985_v16 }
 0x213   : > { %v2220_v57 = vpop.f32.mrf.mxu3 }
 0x214   : > { %v9043_v44 = vadd.f32 %v2534_v60, %v2220_v57  ;;  %v6948_v60 = vld [vmem:[#allocation2 + $0x130] sm:$0xff] }
 0x216   : > { %v9053_v1 = vpop.f32.mrf.mxu0 }
 0x217   : > { %9952 = vst [vmem:[#allocation25_spill] sm:$0xff] %v9053_v1  ;;  %v7006_v1 = vld [vmem:[#allocation2 + $0xf8] sm:$0xff] }
 0x218   : > { %v2536_v50 = vpop.f32.mrf.mxu2 }
 0x219   : > { %v9045_v61 = vpop.f32.mrf.mxu1 }
 0x21b   : > { %v2222_v32 = vpop.f32.mrf.mxu3 }
 0x21c   : > { %3672 = vmatmul.bf16.gmra.mxu1 %v7003_v25  ;;  %v9049_v10 = vadd.f32 %v2536_v50, %v2222_v32  ;;  %v7063_v25 = vld [vmem:[#allocation9 + $0x1a8] sm:$0xff] }
 0x21d   : > { %4010 = vmatmul.bf16.gmra.mxu2 %v7019_v34  ;;  %4378 = vmatpush.bf16.msra.mxu3 %v7063_v25 }
 0x21e   : > { %v9061_v16 = vpop.f32.mrf.mxu0 }
 0x21f   : > { %9953 = vst [vmem:[#allocation26_spill] sm:$0xff] %v9061_v16 }
 0x220   : > { %v2539_v63 = vpop.f32.mrf.mxu2  ;;  %2876 = vmatmul.bf16.gmra.mxu3 %v6947_v8 }
 0x221   : > { %v9051_v12 = vpop.f32.mrf.mxu1  ;;  %4763 = vmatmul.bf16.vlgmr.msra.gmra.mxu0 %v7066_v59 }
 0x223   : > { %v2225_v40 = vpop.f32.mrf.mxu3 }
 0x224   : > { %v9055_v20 = vadd.f32 %v2539_v63, %v2225_v40  ;;  %v7005_v63 = vld [vmem:[#allocation2 + $0xf0] sm:$0xff]  ;;  %v7111_v40 = vld [vmem:[#allocation9 + $0x228] sm:$0xff] }
 0x225   : > { %5136 = vmatpush.bf16.msra.mxu1 %v7111_v40  ;;  %v7022_v40 = vld [vmem:[#allocation2 + $0x148] sm:$0xff] }
 0x226   : > { %v9069_v8 = vpop.f32.mrf.mxu0 }
 0x227   : > { %9954 = vst [vmem:[#allocation27_spill] sm:$0xff] %v9069_v8 }
 0x228   : > { %v2541_v43 = vpop.f32.mrf.mxu2 }
 0x229   : > { %v9057_v11 = vpop.f32.mrf.mxu1 }
 0x22b   : > { %v2227_v38 = vpop.f32.mrf.mxu3 }
 0x22c   : > { %3677 = vmatmul.bf16.gmra.mxu1 %v7004_v39  ;;  %v9059_v7 = vadd.f32 %v2541_v43, %v2227_v38  ;;  %v7021_v39 = vld [vmem:[#allocation2 + $0x140] sm:$0xff] }
 0x22d   : > { %4015 = vmatmul.bf16.gmra.mxu2 %v7020_v41  ;;  %v6949_v41 = vld [vmem:[#allocation2 + $0x138] sm:$0xff] }
 0x22e   : > { %v9075_v25 = vpop.f32.mrf.mxu0 }
 0x22f   : > { %9955 = vst [vmem:[#allocation28_spill] sm:$0xff] %v9075_v25  ;;  %v7062_v25 = vld [vmem:[#allocation9 + $0x1a0] sm:$0xff] }
 0x230   : > { %v2544_v50 = vpop.f32.mrf.mxu2  ;;  %2881 = vmatmul.bf16.gmra.mxu3 %v6948_v60  ;;  %v7068_v60 = vld [vmem:[#allocation2 + $0xb0] sm:$0xff] }
 0x231   : > { %v9063_v57 = vpop.f32.mrf.mxu1  ;;  %4768 = vmatmul.bf16.gmra.mxu0 %v7067_v62  ;;  %4379 = vmatpush.bf16.msra.mxu3 %v7062_v25 }
 0x233   : > { %v2230_v33 = vpop.f32.mrf.mxu3 }
 0x234   : > { %v9065_v32 = vadd.f32 %v2544_v50, %v2230_v33 }
 0x238   : > { %v2546_v59 = vpop.f32.mrf.mxu2 }
 0x239   : > { %v9067_v34 = vpop.f32.mrf.mxu1 }
 0x23b   : > { %v2232_v43 = vpop.f32.mrf.mxu3 }
 0x23c   : > { %3682 = vmatmul.bf16.gmra.mxu1 %v7005_v63  ;;  %v9071_v38 = vadd.f32 %v2546_v59, %v2232_v43  ;;  %v9081_v43 = vpop.f32.mrf.mxu0 }
 0x23d   : > { %4020 = vmatmul.bf16.gmra.mxu2 %v7021_v39  ;;  %9957 = vst [vmem:[#allocation30_spill] sm:$0xff] %v9081_v43  ;;  %v7110_v43 = vld [vmem:[#allocation9 + $0x220] sm:$0xff] }
 0x23e   : > { %5137 = vmatpush.bf16.msra.mxu1 %v7110_v43  ;;  %v7008_v43 = vld [vmem:[#allocation2 + $0x108] sm:$0xff] }
 0x240   : > { %v2549_v50 = vpop.f32.mrf.mxu2  ;;  %2886 = vmatmul.bf16.gmra.mxu3 %v6949_v41  ;;  %v7069_v41 = vld [vmem:[#allocation2 + $0xb8] sm:$0xff] }
 0x241   : > { %v9073_v62 = vpop.f32.mrf.mxu1  ;;  %4773 = vmatmul.bf16.gmra.mxu0 %v7068_v60 }
 0x243   : > { %v2235_v33 = vpop.f32.mrf.mxu3 }
 0x244   : > { %v9077_v8 = vadd.f32 %v2549_v50, %v2235_v33 }
 0x248   : > { %v2551_v16 = vpop.f32.mrf.mxu2 }
 0x249   : > { %v9079_v63 = vpop.f32.mrf.mxu1 }
 0x24a   : > { %9956 = vst [vmem:[#allocation29_spill] sm:$0xff] %v9079_v63 }
 0x24b   : > { %v2237_v59 = vpop.f32.mrf.mxu3 }
 0x24c   : > { %3687 = vmatmul.bf16.gmra.mxu1 %v7006_v1  ;;  %v9083_v39 = vadd.f32 %v2551_v16, %v2237_v59  ;;  %v9089_v1 = vpop.f32.mrf.mxu0  ;;  %v7023_v59 = vld [vmem:[#allocation2 + $0x150] sm:$0xff] }
 0x24d   : > { %4025 = vmatmul.bf16.gmra.mxu2 %v7022_v40  ;;  %9959 = vst [vmem:[#allocation32_spill] sm:$0xff] %v9089_v1 }
 0x250   : > { %v2554_v60 = vpop.f32.mrf.mxu2  ;;  %2891 = vmatmul.bf16.gmra.mxu3 %v6950_v19 }
 0x251   : > { %4778 = vmatmul.bf16.gmra.mxu0 %v7069_v41  ;;  %v9085_v50 = vpop.f32.mrf.mxu1  ;;  %v6951_v41 = vld [vmem:[#allocation2 + $0x148] sm:$0xff] }
 0x252   : > { %9958 = vst [vmem:[#allocation31_spill] sm:$0xff] %v9085_v50 }
 0x253   : > { %v2240_v33 = vpop.f32.mrf.mxu3 }
 0x254   : > { %v9087_v54 = vadd.f32 %v2554_v60, %v2240_v33  ;;  %v9095_v25 = vpop.f32.mrf.mxu0  ;;  %v7109_v33 = vld [vmem:[#allocation9 + $0x218] sm:$0xff] }
 0x255   : > { %9961 = vst [vmem:[#allocation34_spill] sm:$0xff] %v9095_v25  ;;  %5138 = vmatpush.bf16.msra.mxu1 %v7109_v33  ;;  %v7024_v25 = vld [vmem:[#allocation2 + $0x158] sm:$0xff]  ;;  %v6952_v33 = vld [vmem:[#allocation2 + $0x150] sm:$0xff] }
 0x258   : > { %v2556_v29 = vpop.f32.mrf.mxu2 }
 0x259   : > { %v9093_v19 = vpop.f32.mrf.mxu1 }
 0x25a   : > { %9960 = vst [vmem:[#allocation33_spill] sm:$0xff] %v9093_v19 }
 0x25b   : > { %v2242_v16 = vpop.f32.mrf.mxu3 }
 0x25c   : > { %3692 = vmatmul.bf16.gmra.mxu1 %v7007_v4  ;;  %v9091_v40 = vadd.f32 %v2556_v29, %v2242_v16  ;;  %v7108_v4 = vld [vmem:[#allocation9 + $0x210] sm:$0xff]  ;;  %v7107_v16 = vld [vmem:[#allocation9 + $0x208] sm:$0xff] }
 0x25d   : > { %4030 = vmatmul.bf16.gmra.mxu2 %v7023_v59  ;;  %5139 = vmatpush.bf16.msra.mxu1 %v7108_v4  ;;  %v9101_v59 = vpop.f32.mrf.mxu0  ;;  %v7061_v4 = vld [vmem:[#allocation9 + $0x198] sm:$0xff] }
 0x25e   : > { %9963 = vst [vmem:[#allocation36_spill] sm:$0xff] %v9101_v59  ;;  %4380 = vmatpush.bf16.msra.mxu3 %v7061_v4 }
 0x260   : > { %v2559_v60 = vpop.f32.mrf.mxu2  ;;  %2896 = vmatmul.bf16.gmra.mxu3 %v6951_v41 }
 0x261   : > { %4783 = vmatmul.bf16.gmra.mxu0 %v7070_v36  ;;  %v9099_v17 = vpop.f32.mrf.mxu1  ;;  %5140 = vmatpush.bf16.msra.mxu1 %v7107_v16  ;;  %v7106_v36 = vld [vmem:[#allocation9 + $0x200] sm:$0xff] }
 0x262   : > { %9962 = vst [vmem:[#allocation35_spill] sm:$0xff] %v9099_v17  ;;  %v7009_v16 = vld [vmem:[#allocation2 + $0x110] sm:$0xff] }
 0x263   : > { %v2245_v1 = vpop.f32.mrf.mxu3 }
 0x264   : > { %v9097_v15 = vadd.f32 %v2559_v60, %v2245_v1  ;;  %v7071_v1 = vld [vmem:[#allocation2 + $0xc8] sm:$0xff] }
 0x265   : > { %5141 = vmatpush.bf16.msra.mxu1 %v7106_v36  ;;  %v9107_v59 = vpop.f32.mrf.mxu0 }
 0x266   : > { %9965 = vst [vmem:[#allocation38_spill] sm:$0xff] %v9107_v59 }
 0x268   : > { %v2561_v29 = vpop.f32.mrf.mxu2 }
 0x269   : > { %v9105_v60 = vpop.f32.mrf.mxu1 }
 0x26a   : > { %9964 = vst [vmem:[#allocation37_spill] sm:$0xff] %v9105_v60 }
 0x26b   : > { %v2247_v19 = vpop.f32.mrf.mxu3 }
 0x26c   : > { %3697 = vmatmul.bf16.gmra.mxu1 %v7008_v43  ;;  %v9103_v41 = vadd.f32 %v2561_v29, %v2247_v19 }
 0x26d   : > { %4035 = vmatmul.bf16.gmra.mxu2 %v7024_v25  ;;  %v9115_v60 = vpop.f32.mrf.mxu0 }
 0x26e   : > { %9967 = vst [vmem:[#allocation40_spill] sm:$0xff] %v9115_v60 }
 0x270   : > { %v2564_v17 = vpop.f32.mrf.mxu2  ;;  %2901 = vmatmul.bf16.gmra.mxu3 %v6952_v33  ;;  %v6953_v33 = vld [vmem:[#allocation2 + $0x158] sm:$0xff] }
 0x271   : > { %4788 = vmatmul.bf16.gmra.mxu0 %v7071_v1  ;;  %v9111_v29 = vpop.f32.mrf.mxu1  ;;  %v7072_v1 = vld [vmem:[#allocation2 + $0xd0] sm:$0xff] }
 0x272   : > { %9966 = vst [vmem:[#allocation39_spill] sm:$0xff] %v9111_v29  ;;  %v7090_v29 = vld [vmem:[#allocation2 + $0x130] sm:$0xff] }
 0x273   : > { %v2250_v50 = vpop.f32.mrf.mxu3 }
 0x274   : > { %v9109_v43 = vadd.f32 %v2564_v17, %v2250_v50 }
 0x275   : > { %v9121_v63 = vpop.f32.mrf.mxu0 }
 0x276   : > { %9969 = vst [vmem:[#allocation42_spill] sm:$0xff] %v9121_v63 }
 0x278   : > { %v2566_v19 = vpop.f32.mrf.mxu2 }
 0x279   : > { %v9117_v17 = vpop.f32.mrf.mxu1 }
 0x27a   : > { %9968 = vst [vmem:[#allocation41_spill] sm:$0xff] %v9117_v17  ;;  %v7060_v17 = vld [vmem:[#allocation9 + $0x190] sm:$0xff] }
 0x27b   : > { %v2252_v25 = vpop.f32.mrf.mxu3  ;;  %4381 = vmatpush.bf16.msra.mxu3 %v7060_v17 }
 0x27c   : > { %3702 = vmatmul.bf16.gmra.mxu1 %v7009_v16  ;;  %v9113_v36 = vadd.f32 %v2566_v19, %v2252_v25  ;;  %v7026_v25 = vld [vmem:[#allocation2 + $0x168] sm:$0xff] }
 0x27d   : > { %4040 = vmatmul.bf16.gmra.mxu2 %v7025_v48 }
 0x280   : > { %v2569_v4 = vpop.f32.mrf.mxu2  ;;  %2906 = vmatmul.bf16.gmra.mxu3 %v6953_v33  ;;  %v7073_v33 = vld [vmem:[#allocation2 + $0xd8] sm:$0xff] }
 0x281   : > { %4793 = vmatmul.bf16.gmra.mxu0 %v7072_v1  ;;  %v9125_v60 = vpop.f32.mrf.mxu1 }
 0x282   : > { %9970 = vst [vmem:[#allocation43_spill] sm:$0xff] %v9125_v60 }
 0x283   : > { %v2255_v59 = vpop.f32.mrf.mxu3 }
 0x284   : > { %v9119_v50 = vadd.f32 %v2569_v4, %v2255_v59  ;;  %v9127_v59 = vpop.f32.mrf.mxu0 }
 0x285   : > { %9971 = vst [vmem:[#allocation44_spill] sm:$0xff] %v9127_v59  ;;  %v7027_v59 = vld [vmem:[#allocation2 + $0x170] sm:$0xff] }
 0x288   : > { %v2571_v16 = vpop.f32.mrf.mxu2 }
 0x289   : > { %v9131_v49 = vpop.f32.mrf.mxu1 }
 0x28b   : > { %v2257_v19 = vpop.f32.mrf.mxu3 }
 0x28c   : > { %5142 = vmatmul.bf16.vlgmr.msra.gmra.mxu1 %v7090_v29  ;;  %v9123_v48 = vadd.f32 %v2571_v16, %v2257_v19  ;;  %v7091_v19 = vld [vmem:[#allocation2 + $0x138] sm:$0xff]  ;;  %v9138_v17 = vpop.f32.mrf.mxu0 }
 0x28d   : > { %4045 = vmatmul.bf16.gmra.mxu2 %v7026_v25  ;;  %9972 = vst [vmem:[#allocation45_spill] sm:$0xff] %v9138_v17 }
 0x290   : > { %2911 = vmatmul.bf16.gmra.mxu3 %v6954_v14  ;;  %v4006_v1 = vpop.f32.mrf.mxu2  ;;  %v2607_v14 = vadd.f32 %v8820_v22, %v8805_v24 }
 0x291   : > { %4798 = vmatmul.bf16.gmra.mxu0 %v7073_v33 }
 0x293   : > { %v2872_v4 = vpop.f32.mrf.mxu3 }
 0x294   : > { %v2984_v63 = vadd.f32 %v2872_v4, %v8913_v46 }
 0x296   : > { %v3362_v29 = vadd.f32 %v8915_v2, %v2984_v63  ;;  %v6955_v2 = vld [vmem:[#allocation2 + $0x168] sm:$0xff]  ;;  %v7074_v63 = vld [vmem:[#allocation2 + $0xe0] sm:$0xff] }
 0x298   : > { %v4008_v16 = vpop.f32.mrf.mxu2  ;;  %v3740_v25 = vadd.f32 %v9037_v35, %v3362_v29  ;;  %v9142_v29 = vpop.f32.mrf.mxu1 }
 0x29a   : > { %v9136_v33 = vadd.f32 %v4006_v1, %v3740_v25  ;;  %v2609_v25 = vadd.f32 %v8901_v21, %v8887_v58 }
 0x29b   : > { %v2874_v60 = vpop.f32.mrf.mxu3 }
 0x29c   : > { %5147 = vmatmul.bf16.gmra.mxu1 %v7091_v19  ;;  %v2985_v45 = vadd.f32 %v2874_v60, %v2607_v14  ;;  %v9147_v19 = vpop.f32.mrf.mxu0 }
 0x29d   : > { %4050 = vmatmul.bf16.gmra.mxu2 %v7027_v59  ;;  %9973 = vst [vmem:[#allocation46_spill] sm:$0xff] %v9147_v19  ;;  %v7092_v59 = vld [vmem:[#allocation2 + $0x140] sm:$0xff] }
 0x29e   : > { %v3363_v46 = vadd.f32 %v8942_v31, %v2985_v45 }
 0x2a0   : > { %2916 = vmatmul.bf16.gmra.mxu3 %v6955_v2  ;;  %v4011_v4 = vpop.f32.mrf.mxu2  ;;  %v3741_v35 = vadd.f32 %v9039_v26, %v3363_v46  ;;  %v9155_v46 = vpop.f32.mrf.mxu1 }
 0x2a1   : > { %4803 = vmatmul.bf16.gmra.mxu0 %v7074_v63  ;;  %v6956_v63 = vld [vmem:[#allocation2 + $0x170] sm:$0xff] }
 0x2a2   : > { %v9144_v24 = vadd.f32 %v4008_v16, %v3741_v35  ;;  %v7028_v16 = vld [vmem:[#allocation2 + $0x178] sm:$0xff] }
 0x2a3   : > { %v2877_v22 = vpop.f32.mrf.mxu3 }
 0x2a4   : > { %v2986_v1 = vadd.f32 %v2877_v22, %v8893_v53  ;;  %v9158_v35 = vpop.f32.mrf.mxu0 }
 0x2a5   : > { %9974 = vst [vmem:[#allocation47_spill] sm:$0xff] %v9158_v35 }
 0x2a6   : > { %v3364_v60 = vadd.f32 %v8970_v55, %v2986_v1  ;;  %v7075_v55 = vld [vmem:[#allocation2 + $0xe8] sm:$0xff] }
 0x2a8   : > { %v3742_v31 = vadd.f32 %v9045_v61, %v3364_v60  ;;  %v4013_v45 = vpop.f32.mrf.mxu2  ;;  %v7059_v61 = vld [vmem:[#allocation9 + $0x188] sm:$0xff]  ;;  %v9164_v60 = vpop.f32.mrf.mxu1 }
 0x2a9   : > { %4382 = vmatpush.bf16.msra.mxu3 %v7059_v61 }
 0x2aa   : > { %v9153_v26 = vadd.f32 %v4011_v4, %v3742_v31 }
 0x2ab   : > { %v2879_v14 = vpop.f32.mrf.mxu3 }
 0x2ac   : > { %5152 = vmatmul.bf16.gmra.mxu1 %v7092_v59  ;;  %v2987_v2 = vadd.f32 %v2879_v14, %v2609_v25  ;;  %v7093_v59 = vld [vmem:[#allocation2 + $0x148] sm:$0xff]  ;;  %v2611_v25 = vadd.f32 %v8954_v0, %v8945_v47  ;;  %v9170_v14 = vpop.f32.mrf.mxu0 }
 0x2ad   : > { %4055 = vmatmul.bf16.gmra.mxu2 %v7028_v16  ;;  %9975 = vst [vmem:[#allocation48_spill] sm:$0xff] %v9170_v14  ;;  %v7029_v16 = vld [vmem:[#allocation2 + $0x180] sm:$0xff] }
 0x2ae   : > { %v3365_v53 = vadd.f32 %v8993_v18, %v2987_v2 }
 0x2b0   : > { %2921 = vmatmul.bf16.gmra.mxu3 %v6956_v63  ;;  %v3743_v58 = vadd.f32 %v9051_v12, %v3365_v53  ;;  %v4016_v4 = vpop.f32.mrf.mxu2  ;;  %v6957_v63 = vld [vmem:[#allocation2 + $0x178] sm:$0xff] }
 0x2b1   : > { %4808 = vmatmul.bf16.gmra.mxu0 %v7075_v55  ;;  %v9175_v55 = vpop.f32.mrf.mxu1 }
 0x2b2   : > { %v9161_v21 = vadd.f32 %v4013_v45, %v3743_v58 }
 0x2b3   : > { %v2882_v22 = vpop.f32.mrf.mxu3 }
 0x2b4   : > { %v2988_v1 = vadd.f32 %v2882_v22, %v8932_v9  ;;  %v9180_v61 = vpop.f32.mrf.mxu0 }
 0x2b5   : > { %9976 = vst [vmem:[#allocation49_spill] sm:$0xff] %v9180_v61 }
 0x2b6   : > { %v3366_v18 = vadd.f32 %v8999_v51, %v2988_v1  ;;  %v7076_v51 = vld [vmem:[#allocation2 + $0xf0] sm:$0xff] }
 0x2b7   : > { %v7094_v1 = vld [vmem:[#allocation2 + $0x150] sm:$0xff] }
 0x2b8   : > { %v3744_v31 = vadd.f32 %v9057_v11, %v3366_v18  ;;  %v4018_v53 = vpop.f32.mrf.mxu2  ;;  %v2613_v18 = vadd.f32 %v8997_v28, %v8995_v42 }
 0x2ba   : > { %v9172_v12 = vadd.f32 %v4016_v4, %v3744_v31 }
 0x2bb   : > { %v2884_v45 = vpop.f32.mrf.mxu3 }
 0x2bc   : > { %5157 = vmatmul.bf16.gmra.mxu1 %v7093_v59  ;;  %v2989_v2 = vadd.f32 %v2884_v45, %v2611_v25  ;;  %v9187_v59 = vpop.f32.mrf.mxu1  ;;  %v7030_v25 = vld [vmem:[#allocation2 + $0x188] sm:$0xff] }
 0x2bd   : > { %4060 = vmatmul.bf16.gmra.mxu2 %v7029_v16  ;;  %v9191_v16 = vpop.f32.mrf.mxu0 }
 0x2be   : > { %v3367_v9 = vadd.f32 %v9003_v56, %v2989_v2  ;;  %v7077_v2 = vld [vmem:[#allocation2 + $0xf8] sm:$0xff] }
 0x2c0   : > { %2926 = vmatmul.bf16.gmra.mxu3 %v6957_v63  ;;  %v3745_v47 = vadd.f32 %v9063_v57, %v3367_v9  ;;  %v4021_v22 = vpop.f32.mrf.mxu2 }
 0x2c1   : > { %4813 = vmatmul.bf16.gmra.mxu0 %v7076_v51 }
 0x2c2   : > { %v9178_v0 = vadd.f32 %v4018_v53, %v3745_v47 }
 0x2c3   : > { %v2887_v11 = vpop.f32.mrf.mxu3 }
 0x2c4   : > { %v2990_v58 = vadd.f32 %v2887_v11, %v8976_v52  ;;  %v9197_v63 = vpop.f32.mrf.mxu1 }
 0x2c5   : > { %v9202_v47 = vpop.f32.mrf.mxu0 }
 0x2c6   : > { %v3368_v4 = vadd.f32 %v9009_v23, %v2990_v58  ;;  %v6958_v23 = vld [vmem:[#allocation2 + $0x180] sm:$0xff]  ;;  %v7031_v58 = vld [vmem:[#allocation2 + $0x190] sm:$0xff] }
 0x2c8   : > { %v3746_v56 = vadd.f32 %v9067_v34, %v3368_v4  ;;  %v7058_v34 = vld [vmem:[#allocation9 + $0x180] sm:$0xff]  ;;  %v4023_v28 = vpop.f32.mrf.mxu2 }
 0x2c9   : > { %4383 = vmatpush.bf16.msra.mxu3 %v7058_v34 }
 0x2ca   : > { %v9189_v57 = vadd.f32 %v4021_v22, %v3746_v56  ;;  %v7078_v22 = vld [vmem:[#allocation2 + $0x100] sm:$0xff] }
 0x2cb   : > { %v2889_v31 = vpop.f32.mrf.mxu3 }
 0x2cc   : > { %5162 = vmatmul.bf16.gmra.mxu1 %v7094_v1  ;;  %v2991_v45 = vadd.f32 %v2889_v31, %v2613_v18  ;;  %v9206_v4 = vpop.f32.mrf.mxu1  ;;  %v7096_v31 = vld [vmem:[#allocation2 + $0x160] sm:$0xff] }
 0x2cd   : > { %4065 = vmatmul.bf16.gmra.mxu2 %v7030_v25  ;;  %9977 = vst [vmem:[#allocation50_spill] sm:$0xff] %v9206_v4  ;;  %v9208_v1 = vpop.f32.mrf.mxu0  ;;  %v7054_v4 = vld [vmem:[#allocation2 + $0x70] sm:$0xff] }
 0x2ce   : > { %v3369_v52 = vadd.f32 %v9013_v3, %v2991_v45  ;;  %v7095_v3 = vld [vmem:[#allocation2 + $0x158] sm:$0xff] }
 0x2cf   : > { %v7032_v45 = vld [vmem:[#allocation2 + $0x198] sm:$0xff] }
 0x2d0   : > { %2931 = vmatmul.bf16.gmra.mxu3 %v6958_v23  ;;  %v3747_v42 = vadd.f32 %v9073_v62, %v3369_v52  ;;  %v6959_v62 = vld [vmem:[#allocation2 + $0x188] sm:$0xff]  ;;  %v6960_v23 = vld [vmem:[#allocation2 + $0x190] sm:$0xff] }
 0x2d1   : > { %4818 = vmatmul.bf16.gmra.mxu0 %v7077_v2  ;;  %v7079_v2 = vld [vmem:[#allocation2 + $0x108] sm:$0xff] }
 0x2d2   : > { %v9195_v53 = vadd.f32 %v4023_v28, %v3747_v42 }
 0x2d3   : > { %v2892_v9 = vpop.f32.mrf.mxu3 }
 0x2d4   : > { %v9200_v51 = vadd.f32 %v2892_v9, %v9001_v27  ;;  %v9213_v18 = vpop.f32.mrf.mxu1  ;;  %v7097_v9 = vld [vmem:[#allocation2 + $0x168] sm:$0xff] }
 0x2d5   : > { %9978 = vst [vmem:[#allocation51_spill] sm:$0xff] %v9213_v18  ;;  %v9217_v52 = vpop.f32.mrf.mxu0 }
 0x2db   : > { %v9204_v11 = vpop.f32.mrf.mxu3 }
 0x2dc   : > { %5167 = vmatmul.bf16.gmra.mxu1 %v7095_v3  ;;  %v9219_v34 = vpop.f32.mrf.mxu1 }
 0x2dd   : > { %4070 = vmatmul.bf16.gmra.mxu2 %v7031_v58  ;;  %9979 = vst [vmem:[#allocation52_spill] sm:$0xff] %v9219_v34  ;;  %v9224_v28 = vpop.f32.mrf.mxu0  ;;  %v7033_v58 = vld [vmem:[#allocation2 + $0x1a0] sm:$0xff] }
 0x2e0   : > { %2936 = vmatmul.bf16.gmra.mxu3 %v6959_v62 }
 0x2e1   : > { %4823 = vmatmul.bf16.gmra.mxu0 %v7078_v22 }
 0x2e3   : > { %v2897_v56 = vpop.f32.mrf.mxu3 }
 0x2e4   : > { %v9211_v27 = vadd.f32 %v2897_v56, %v9011_v13  ;;  %v9226_v62 = vpop.f32.mrf.mxu1  ;;  %v6961_v56 = vld [vmem:[#allocation2 + $0x198] sm:$0xff] }
 0x2e5   : > { %9980 = vst [vmem:[#allocation53_spill] sm:$0xff] %v9226_v62 }
 0x2eb   : > { %v9215_v25 = vpop.f32.mrf.mxu3 }
 0x2ec   : > { %5172 = vmatmul.bf16.gmra.mxu1 %v7096_v31  ;;  %v7080_v31 = vld [vmem:[#allocation2 + $0x110] sm:$0xff] }
 0x2ed   : > { %4075 = vmatmul.bf16.gmra.mxu2 %v7032_v45  ;;  %v9231_v45 = vpop.f32.mrf.mxu0 }
 0x2f0   : > { %2941 = vmatmul.bf16.gmra.mxu3 %v6960_v23 }
 0x2f1   : > { %4828 = vmatmul.bf16.gmra.mxu0 %v7079_v2  ;;  %v9236_v2 = vpop.f32.mrf.mxu1 }
 0x2f2   : > { %9981 = vst [vmem:[#allocation54_spill] sm:$0xff] %v9236_v2 }
 0x2f3   : > { %v2902_v42 = vpop.f32.mrf.mxu3 }
 0x2f4   : > { %v9222_v13 = vadd.f32 %v2902_v42, %v9021_v30  ;;  %v7098_v42 = vld [vmem:[#allocation2 + $0x170] sm:$0xff] }
 0x2fb   : > { %v2904_v3 = vpop.f32.mrf.mxu3 }
 0x2fc   : > { %5177 = vmatmul.bf16.gmra.mxu1 %v7097_v9  ;;  %v9229_v22 = vadd.f32 %v2904_v3, %v9025_v5  ;;  %v7042_v5 = vld [vmem:[#allocation2 + $0x10] sm:$0xff]  ;;  %v9241_v3 = vpop.f32.mrf.mxu1 }
 0x2fd   : > { %4080 = vmatmul.bf16.gmra.mxu2 %v7033_v58  ;;  %9982 = vst [vmem:[#allocation55_spill] sm:$0xff] %v9241_v3  ;;  %v7101_v3 = vld [vmem:[#allocation2 + $0x188] sm:$0xff] }
 0x300   : > { %2946 = vmatmul.bf16.gmra.mxu3 %v6961_v56 }
 0x301   : > { %4833 = vmatmul.bf16.gmra.mxu0 %v7080_v31  ;;  %v7099_v31 = vld [vmem:[#allocation2 + $0x178] sm:$0xff] }
 0x303   : > { %v2907_v30 = vpop.f32.mrf.mxu3 }
 0x304   : > { %v9234_v23 = vadd.f32 %v2907_v30, %v9029_v37  ;;  %v9246_v14 = vpop.f32.mrf.mxu1 }
 0x305   : > { %9983 = vst [vmem:[#allocation56_spill] sm:$0xff] %v9246_v14 }
 0x30b   : > { %v2909_v9 = vpop.f32.mrf.mxu3 }
 0x30c   : > { %5182 = vmatmul.bf16.gmra.mxu1 %v7098_v42  ;;  %v9239_v61 = vadd.f32 %v2909_v9, %v9033_v6  ;;  %v7043_v42 = vld [vmem:[#allocation2 + $0x18] sm:$0xff]  ;;  %v9251_v9 = vpop.f32.mrf.mxu1 }
 0x30d   : > { %9984 = vst [vmem:[#allocation57_spill] sm:$0xff] %v9251_v9 }
 0x310   : > { %4384 = vmatmul.bf16.vlgmr.msra.gmra.mxu3 %v7042_v5  ;;  %v7100_v5 = vld [vmem:[#allocation2 + $0x180] sm:$0xff] }
 0x313   : > { %v2912_v58 = vpop.f32.mrf.mxu3 }
 0x314   : > { %v9244_v56 = vadd.f32 %v2912_v58, %v9043_v44  ;;  %v9259_v14 = vpop.f32.mrf.mxu1 }
 0x315   : > { %9985 = vst [vmem:[#allocation58_spill] sm:$0xff] %v9259_v14  ;;  %v7102_v14 = vld [vmem:[#allocation2 + $0x190] sm:$0xff] }
 0x31b   : > { %v2914_v37 = vpop.f32.mrf.mxu3 }
 0x31c   : > { %5187 = vmatmul.bf16.gmra.mxu1 %v7099_v31  ;;  %v9249_v30 = vadd.f32 %v2914_v37, %v9049_v10  ;;  %v7044_v31 = vld [vmem:[#allocation2 + $0x20] sm:$0xff] }
 0x320   : > { %4389 = vmatmul.bf16.gmra.mxu3 %v7043_v42  ;;  %v5143_v42 = vpop.f32.mrf.mxu1 }
 0x323   : > { %v2917_v6 = vpop.f32.mrf.mxu3 }
 0x324   : > { %v9254_v35 = vadd.f32 %v2917_v6, %v9055_v20  ;;  %v7045_v6 = vld [vmem:[#allocation2 + $0x28] sm:$0xff] }
 0x32b   : > { %v2919_v44 = vpop.f32.mrf.mxu3 }
 0x32c   : > { %5192 = vmatmul.bf16.gmra.mxu1 %v7100_v5  ;;  %v9257_v58 = vadd.f32 %v2919_v44, %v9059_v7  ;;  %v5145_v5 = vpop.f32.mrf.mxu1 }
 0x330   : > { %4394 = vmatmul.bf16.gmra.mxu3 %v7044_v31 }
 0x333   : > { %v2922_v10 = vpop.f32.mrf.mxu3 }
 0x334   : > { %v9262_v37 = vadd.f32 %v2922_v10, %v9065_v32  ;;  %v9270_v19 = vpop.f32.mrf.mxu1 }
 0x33b   : > { %v2924_v9 = vpop.f32.mrf.mxu3 }
 0x33c   : > { %5197 = vmatmul.bf16.gmra.mxu1 %v7101_v3  ;;  %v9265_v20 = vadd.f32 %v2924_v9, %v9071_v38  ;;  %v7046_v3 = vld [vmem:[#allocation2 + $0x30] sm:$0xff]  ;;  %v9278_v9 = vpop.f32.mrf.mxu1 }
 0x340   : > { %4399 = vmatmul.bf16.gmra.mxu3 %v7045_v6  ;;  %v7103_v6 = vld [vmem:[#allocation2 + $0x198] sm:$0xff] }
 0x343   : > { %v2927_v7 = vpop.f32.mrf.mxu3 }
 0x344   : > { %v9268_v44 = vadd.f32 %v2927_v7, %v9077_v8  ;;  %v9283_v2 = vpop.f32.mrf.mxu1 }
 0x34b   : > { %v2929_v31 = vpop.f32.mrf.mxu3 }
 0x34c   : > { %5202 = vmatmul.bf16.gmra.mxu1 %v7102_v14  ;;  %v9273_v32 = vadd.f32 %v2929_v31, %v9083_v39  ;;  %v7047_v14 = vld [vmem:[#allocation2 + $0x38] sm:$0xff]  ;;  %v9288_v17 = vpop.f32.mrf.mxu1 }
 0x350   : > { %4404 = vmatmul.bf16.gmra.mxu3 %v7046_v3  ;;  %v7104_v3 = vld [vmem:[#allocation2 + $0x1a0] sm:$0xff] }
 0x353   : > { %v2932_v10 = vpop.f32.mrf.mxu3 }
 0x354   : > { %v9276_v38 = vadd.f32 %v2932_v10, %v9087_v54 }
 0x356   : > { %9986 = vst [vmem:[#allocation59_spill] sm:$0xff] %v9276_v38 }
 0x35b   : > { %v2934_v8 = vpop.f32.mrf.mxu3 }
 0x35c   : > { %5207 = vmatmul.bf16.gmra.mxu1 %v7103_v6  ;;  %v9281_v7 = vadd.f32 %v2934_v8, %v9091_v40  ;;  %v7048_v6 = vld [vmem:[#allocation2 + $0x40] sm:$0xff] }
 0x35e   : > { %9987 = vst [vmem:[#allocation60_spill] sm:$0xff] %v9281_v7 }
 0x360   : > { %4409 = vmatmul.bf16.gmra.mxu3 %v7047_v14 }
 0x363   : > { %v2937_v39 = vpop.f32.mrf.mxu3 }
 0x364   : > { %v9286_v31 = vadd.f32 %v2937_v39, %v9097_v15  ;;  %v7049_v15 = vld [vmem:[#allocation2 + $0x48] sm:$0xff] }
 0x366   : > { %9988 = vst [vmem:[#allocation61_spill] sm:$0xff] %v9286_v31 }
 0x36b   : > { %v2939_v54 = vpop.f32.mrf.mxu3 }
 0x36c   : > { %5212 = vmatmul.bf16.gmra.mxu1 %v7104_v3  ;;  %v9291_v10 = vadd.f32 %v2939_v54, %v9103_v41  ;;  %v7050_v54 = vld [vmem:[#allocation2 + $0x50] sm:$0xff] }
 0x36e   : > { %9989 = vst [vmem:[#allocation62_spill] sm:$0xff] %v9291_v10 }
 0x370   : > { %4414 = vmatmul.bf16.gmra.mxu3 %v7048_v6 }
 0x373   : > { %v2942_v40 = vpop.f32.mrf.mxu3 }
 0x374   : > { %v9294_v8 = vadd.f32 %v2942_v40, %v9109_v43  ;;  %v9306_v40 = vpop.f32.mrf.mxu0 }
 0x376   : > { %9990 = vst [vmem:[#allocation63_spill] sm:$0xff] %v9294_v8 }
 0x37b   : > { %v2944_v62 = vpop.f32.mrf.mxu3 }
 0x37c   : > { %v9297_v14 = vadd.f32 %v2944_v62, %v9113_v36  ;;  %v9312_v62 = vld [vmem:[%s9874_s4] ss:$0 sm:$0xff] }
 0x37e   : > { %9991 = vst [vmem:[#allocation64_spill] sm:$0xff] %v9297_v14 }
 0x380   : > { %4419 = vmatmul.bf16.gmra.mxu3 %v7049_v15 }
 0x383   : > { %v2947_v39 = vpop.f32.mrf.mxu3 }
 0x384   : > { %v9300_v31 = vadd.f32 %v2947_v39, %v9119_v50  ;;  %v9314_v50 = vpop.f32.mrf.mxu1 }
 0x386   : > { %9992 = vst [vmem:[#allocation65_spill] sm:$0xff] %v9300_v31 }
 0x38b   : > { %v2949_v3 = vpop.f32.mrf.mxu3 }
 0x38c   : > { %v9303_v41 = vadd.f32 %v2949_v3, %v9123_v48  ;;  %v9324_v31 = vpop.f32.mrf.mxu1 }
 0x38e   : > { %9993 = vst [vmem:[#allocation66_spill] sm:$0xff] %v9303_v41 }
 0x390   : > { %4424 = vmatmul.bf16.gmra.mxu3 %v7050_v54 }
 0x393   : > { %v4385_v6 = vpop.f32.mrf.mxu3 }
 0x394   : > { %v4497_v43 = vadd.f32 %v4385_v6, %v9136_v33  ;;  %v9340_v8 = vpop.f32.mrf.mxu1 }
 0x396   : > { %v4876_v36 = vadd.f32 %v9191_v16, %v4497_v43  ;;  %v7051_v16 = vld [vmem:[#allocation2 + $0x58] sm:$0xff]  ;;  %v9322_v43 = vpop.f32.mrf.mxu0 }
 0x398   : > { %v5255_v15 = vadd.f32 %v5143_v42, %v4876_v36  ;;  %v9329_v36 = vpop.f32.mrf.mxu2 }
 0x39a   : > { %v9317_v48 = vadd.f32 %v9312_v62, %v5255_v15 }
 0x39b   : > { %v4387_v39 = vpop.f32.mrf.mxu3 }
 0x39c   : > { %v5387_v3 = vmin.f32 %v9317_v48, 20.0  ;;  %v4498_v33 = vadd.f32 %v4387_v39, %v9144_v24  ;;  %vm5675_vm1 = vcmp.gt.f32.partialorder %v9317_v48, 20.0 }
 0x39e   : > { %v5419_v54 = vmul.f32 1.442695, %v5387_v3  ;;  %v4877_v6 = vadd.f32 %v9202_v47, %v4498_v33 }
 0x3a0   : > { %7620 = vpow2.f32 %v5419_v54  ;;  %v5256_v41 = vadd.f32 %v5145_v5, %v4877_v6  ;;  %4429 = vmatmul.bf16.gmra.mxu3 %v7051_v16  ;;  %v9335_v6 = vpop.f32.mrf.mxu0 }
 0x3a2   : > { %v9327_v42 = vadd.f32 %v9312_v62, %v5256_v41 }
 0x3a3   : > { %v4390_v15 = vpop.f32.mrf.mxu3 }
 0x3a4   : > { %v5388_v14 = vmin.f32 %v9327_v42, 20.0  ;;  %v4499_v24 = vadd.f32 %v4390_v15, %v9153_v26  ;;  %vm5676_vm5 = vcmp.gt.f32.partialorder %v9327_v42, 20.0 }
 0x3a6   : > { %v7621_v39 = vpop.eup %7620  ;;  %v5421_v47 = vmul.f32 1.442695, %v5388_v14  ;;  %v4878_v3 = vadd.f32 %v9208_v1, %v4499_v24  ;;  %v9344_v1 = vpop.f32.mrf.mxu2 }
 0x3a7   : > { %v5483_v33 = vmul.f32 %v7621_v39, %v7621_v39  ;;  %v5515_v54 = vmul.f32 2.0, %v7621_v39  ;;  %v7052_v39 = vld [vmem:[#allocation2 + $0x60] sm:$0xff] }
 0x3a8   : > { %7622 = vpow2.f32 %v5421_v47  ;;  %v5257_v5 = vadd.f32 %v9270_v19, %v4878_v3 }
 0x3a9   : > { %v5547_v41 = vadd.f32 %v5515_v54, %v5483_v33 }
 0x3aa   : > { %v9338_v16 = vadd.f32 %v9312_v62, %v5257_v5 }
 0x3ab   : > { %v5579_v10 = vadd.f32 2.0, %v5547_v41  ;;  %v4392_v34 = vpop.f32.mrf.mxu3 }
 0x3ac   : > { %v5389_v26 = vmin.f32 %v9338_v16, 20.0  ;;  %v4500_v14 = vadd.f32 %v4392_v34, %v9161_v21  ;;  %v9351_v34 = vpop.f32.mrf.mxu0  ;;  %vm5677_vm10 = vcmp.gt.f32.partialorder %v9338_v16, 20.0 }
 0x3ad   : > { %7624 = vrcp.f32 %v5579_v10 }
 0x3ae   : > { %v7623_v15 = vpop.eup %7622  ;;  %v5423_v24 = vmul.f32 1.442695, %v5389_v26  ;;  %v4879_v19 = vadd.f32 %v9217_v52, %v4500_v14 }
 0x3af   : > { %v5484_v47 = vmul.f32 %v7623_v15, %v7623_v15  ;;  %v5516_v3 = vmul.f32 2.0, %v7623_v15  ;;  %v9355_v15 = vpop.f32.mrf.mxu1 }
 0x3b0   : > { %7626 = vpow2.f32 %v5423_v24  ;;  %v5258_v33 = vadd.f32 %v9278_v9, %v4879_v19  ;;  %4434 = vmatmul.bf16.gmra.mxu3 %v7052_v39  ;;  %v5771_v19 = vld [vmem:[%s8053_s16] sm:$0xff] }
 0x3b1   : > { %v5548_v54 = vadd.f32 %v5516_v3, %v5484_v47  ;;  %v9360_v3 = vpop.f32.mrf.mxu2 }
 0x3b2   : > { %v9349_v5 = vadd.f32 %v9312_v62, %v5258_v33 }
 0x3b3   : > { %v7625_v21 = vpop.eup %7624  ;;  %v5580_v10 = vadd.f32 2.0, %v5548_v54  ;;  %v4395_v7 = vpop.f32.mrf.mxu3 }
 0x3b4   : > { %v5643_v26 = vmul.f32 %v7625_v21, %v5547_v41  ;;  %v5390_v52 = vmin.f32 %v9349_v5, 20.0  ;;  %v4501_v14 = vadd.f32 %v4395_v7, %v9172_v12  ;;  %vm5678_vm11 = vcmp.gt.f32.partialorder %v9349_v5, 20.0 }
 0x3b5   : > { %7628 = vrcp.f32 %v5580_v10 }
 0x3b6   : > { %v7627_v24 = vpop.eup %7626  ;;  %v5707_v9 = vmul.f32 %v5643_v26, %v9317_v48  ;;  %v5425_v39 = vmul.f32 1.442695, %v5390_v52  ;;  %v4880_v47 = vadd.f32 %v9224_v28, %v4501_v14 }
 0x3b7   : > { %v5485_v41 = vmul.f32 %v7627_v24, %v7627_v24  ;;  %v5517_v33 = vmul.f32 2.0, %v7627_v24 }
 0x3b8   : > { %v5739_v21 = vsel %vm5675_vm1, %v9317_v48, %v5707_v9  ;;  %7630 = vpow2.f32 %v5425_v39  ;;  %v5259_v12 = vadd.f32 %v9283_v2, %v4880_v47  ;;  %v9375_v2 = vpop.f32.mrf.mxu0  ;;  %v5772_v47 = vld [vmem:[%s8053_s16 + $0x8] sm:$0xff] }
 0x3b9   : > { %v5803_v7 = vadd.f32 %v5771_v19, %v5739_v21  ;;  %v5549_v10 = vadd.f32 %v5517_v33, %v5485_v41  ;;  %v7053_v21 = vld [vmem:[#allocation2 + $0x68] sm:$0xff] }
 0x3ba   : > { %v9366_v26 = vadd.f32 %v9312_v62, %v5259_v12  ;;  %v9380_v12 = vpop.f32.mrf.mxu1 }
 0x3bb   : > { %v7629_v52 = vpop.eup %7628  ;;  %5835 = vst [vmem:[%s9370_s27] sm:$0xff] %v5803_v7  ;;  %v5581_v28 = vadd.f32 2.0, %v5549_v10  ;;  %v4397_v14 = vpop.f32.mrf.mxu3 }
 0x3bc   : > { %v5644_v24 = vmul.f32 %v7629_v52, %v5548_v54  ;;  %v5391_v48 = vmin.f32 %v9366_v26, 20.0  ;;  %v4502_v9 = vadd.f32 %v4397_v14, %v9178_v0  ;;  %vm5679_vm12 = vcmp.gt.f32.partialorder %v9366_v26, 20.0 }
 0x3bd   : > { %7632 = vrcp.f32 %v5581_v28  ;;  %v9385_v28 = vpop.f32.mrf.mxu2 }
 0x3be   : > { %v7631_v19 = vpop.eup %7630  ;;  %v5708_v39 = vmul.f32 %v5644_v24, %v9327_v42  ;;  %v5427_v41 = vmul.f32 1.442695, %v5391_v48  ;;  %v4881_v33 = vadd.f32 %v9231_v45, %v4502_v9 }
 0x3bf   : > { %v5486_v54 = vmul.f32 %v7631_v19, %v7631_v19  ;;  %v5518_v7 = vmul.f32 2.0, %v7631_v19 }
 0x3c0   : > { %v5740_v0 = vsel %vm5676_vm5, %v9327_v42, %v5708_v39  ;;  %7634 = vpow2.f32 %v5427_v41  ;;  %v5260_v52 = vadd.f32 %v9288_v17, %v4881_v33  ;;  %4439 = vmatmul.bf16.gmra.mxu3 %v7053_v21  ;;  %v5773_v41 = vld [vmem:[%s8053_s16 + $0x10] sm:$0xff]  ;;  %v9396_v21 = vpop.f32.mrf.mxu0 }
 0x3c1   : > { %v5804_v14 = vadd.f32 %v5772_v47, %v5740_v0  ;;  %v5550_v24 = vadd.f32 %v5518_v7, %v5486_v54 }
 0x3c2   : > { %v9388_v45 = vadd.f32 %v9312_v62, %v5260_v52 }
 0x3c3   : > { %v7633_v48 = vpop.eup %7632  ;;  %5836 = vst [vmem:[%s9370_s27 + $0x8] sm:$0xff] %v5804_v14  ;;  %v5582_v9 = vadd.f32 2.0, %v5550_v24  ;;  %v4400_v18 = vpop.f32.mrf.mxu3 }
 0x3c4   : > { %v5645_v38 = vmul.f32 %v7633_v48, %v5549_v10  ;;  %v5392_v19 = vmin.f32 %v9388_v45, 20.0  ;;  %v4503_v42 = vadd.f32 %v4400_v18, %v9189_v57  ;;  %v9994_v18 = vld [vmem:[#allocation18_spill] sm:$0xff]  ;;  %vm5680_vm13 = vcmp.gt.f32.partialorder %v9388_v45, 20.0 }
 0x3c5   : > { %7636 = vrcp.f32 %v5582_v9  ;;  %v3370_v0 = vadd.f32 %v9994_v18, %v9200_v51  ;;  %v9408_v9 = vpop.f32.mrf.mxu2 }
 0x3c6   : > { %v7635_v17 = vpop.eup %7634  ;;  %v5709_v39 = vmul.f32 %v5645_v38, %v9338_v16  ;;  %v5429_v33 = vmul.f32 1.442695, %v5392_v19  ;;  %v4882_v47 = vadd.f32 %v9306_v40, %v4503_v42  ;;  %v9403_v38 = vpop.f32.mrf.mxu1  ;;  %v9995_v42 = vld [vmem:[#allocation14_spill] sm:$0xff] }
 0x3c7   : > { %v5487_v54 = vmul.f32 %v7635_v17, %v7635_v17  ;;  %v5519_v7 = vmul.f32 2.0, %v7635_v17  ;;  %v9996_v17 = vld [vmem:[#allocation15_spill] sm:$0xff] }
 0x3c8   : > { %v5741_v10 = vsel %vm5677_vm10, %v9338_v16, %v5709_v39  ;;  %7638 = vpow2.f32 %v5429_v33  ;;  %v5261_v57 = vadd.f32 %v9314_v50, %v4882_v47  ;;  %v2615_v50 = vadd.f32 %v9996_v17, %v9995_v42  ;;  %v9998_v42 = vld [vmem:[#allocation19_spill] sm:$0xff] }
 0x3c9   : > { %v5805_v52 = vadd.f32 %v5773_v41, %v5741_v10  ;;  %v5551_v14 = vadd.f32 %v5519_v7, %v5487_v54  ;;  %v9997_v41 = vld [vmem:[#allocation29_spill] sm:$0xff] }
 0x3ca   : > { %v9406_v40 = vadd.f32 %v9312_v62, %v5261_v57  ;;  %v3748_v47 = vadd.f32 %v9997_v41, %v3370_v0  ;;  %v2993_v7 = vadd.f32 %v9204_v11, %v2615_v50  ;;  %v5774_v57 = vld [vmem:[%s8053_s16 + $0x18] sm:$0xff] }
 0x3cb   : > { %v7637_v48 = vpop.eup %7636  ;;  %5837 = vst [vmem:[%s9370_s27 + $0x10] sm:$0xff] %v5805_v52  ;;  %v5583_v19 = vadd.f32 2.0, %v5551_v14  ;;  %v4402_v16 = vpop.f32.mrf.mxu3 }
 0x3cc   : > { %v5646_v39 = vmul.f32 %v7637_v48, %v5550_v24  ;;  %v5393_v51 = vmin.f32 %v9406_v40, 20.0  ;;  %v4504_v33 = vadd.f32 %v4402_v16, %v9195_v53  ;;  %v3371_v17 = vadd.f32 %v9998_v42, %v2993_v7 }
 0x3cd   : > { %7640 = vrcp.f32 %v5583_v19  ;;  %v9423_v19 = vpop.f32.mrf.mxu0  ;;  %v4126_v50 = vadd.f32 %v9329_v36, %v3748_v47  ;;  %v9999_v47 = vld [vmem:[#allocation31_spill] sm:$0xff]  ;;  %vm5681_vm14 = vcmp.gt.f32.partialorder %v9406_v40, 20.0 }
 0x3ce   : > { %v7639_v54 = vpop.eup %7638  ;;  %v5710_v10 = vmul.f32 %v5646_v39, %v9349_v5  ;;  %v5431_v18 = vmul.f32 1.442695, %v5393_v51  ;;  %v4883_v52 = vadd.f32 %v9322_v43, %v4504_v33  ;;  %v9430_v51 = vpop.f32.mrf.mxu1 }
 0x3cf   : > { %v5488_v24 = vmul.f32 %v7639_v54, %v7639_v54  ;;  %v5520_v48 = vmul.f32 2.0, %v7639_v54  ;;  %v9434_v54 = vpop.f32.mrf.mxu2 }
 0x3d0   : > { %v5742_v53 = vsel %vm5678_vm11, %v9349_v5, %v5710_v10  ;;  %7642 = vpow2.f32 %v5431_v18  ;;  %v5262_v0 = vadd.f32 %v9324_v31, %v4883_v52  ;;  %4444 = vmatmul.bf16.gmra.mxu3 %v7054_v4  ;;  %v3749_v52 = vadd.f32 %v9999_v47, %v3371_v17 }
 0x3d1   : > { %v5806_v11 = vadd.f32 %v5774_v57, %v5742_v53  ;;  %v5552_v16 = vadd.f32 %v5520_v48, %v5488_v24  ;;  %v5775_v57 = vld [vmem:[%s8053_s16 + $0x20] sm:$0xff] }
 0x3d2   : > { %v9427_v43 = vadd.f32 %v9312_v62, %v5262_v0  ;;  %v10000_v0 = vld [vmem:[#allocation20_spill] sm:$0xff] }
 0x3d3   : > { %v7641_v39 = vpop.eup %7640  ;;  %5838 = vst [vmem:[%s9370_s27 + $0x18] sm:$0xff] %v5806_v11  ;;  %v5584_v5 = vadd.f32 2.0, %v5552_v16  ;;  %v4405_v33 = vpop.f32.mrf.mxu3  ;;  %v3372_v11 = vadd.f32 %v10000_v0, %v9211_v27 }
 0x3d4   : > { %v5647_v31 = vmul.f32 %v7641_v39, %v5551_v14  ;;  %v5394_v4 = vmin.f32 %v9427_v43, 20.0  ;;  %v4505_v41 = vadd.f32 %v4405_v33, %v4126_v50  ;;  %vm5682_vm15 = vcmp.gt.f32.partialorder %v9427_v43, 20.0 }
 0x3d5   : > { %7644 = vrcp.f32 %v5584_v5  ;;  %v9449_v5 = vpop.f32.mrf.mxu0 }
 0x3d6   : > { %v7643_v10 = vpop.eup %7642  ;;  %v5711_v7 = vmul.f32 %v5647_v31, %v9366_v26  ;;  %v5433_v18 = vmul.f32 1.442695, %v5394_v4  ;;  %v4884_v36 = vadd.f32 %v9335_v6, %v4505_v41  ;;  %v4127_v6 = vadd.f32 %v9344_v1, %v3749_v52  ;;  %v10001_v31 = vld [vmem:[#allocation16_spill] sm:$0xff]  ;;  %v10002_v4 = vld [vmem:[#allocation17_spill] sm:$0xff]  ;;  %v5776_v52 = vld [vmem:[%s8053_s16 + $0x28] sm:$0xff] }
 0x3d7   : > { %v5489_v24 = vmul.f32 %v7643_v10, %v7643_v10  ;;  %v5521_v14 = vmul.f32 2.0, %v7643_v10 }
 0x3d8   : > { %v5743_v48 = vsel %vm5679_vm12, %v9366_v26, %v5711_v7  ;;  %7646 = vpow2.f32 %v5433_v18  ;;  %v5263_v53 = vadd.f32 %v9340_v8, %v4884_v36  ;;  %v2617_v8 = vadd.f32 %v10002_v4, %v10001_v31  ;;  %v9455_v7 = vpop.f32.mrf.mxu1  ;;  %v7105_v4 = vld [vmem:[#allocation2 + $0x1a8] sm:$0xff] }
 0x3d9   : > { %v5807_v42 = vadd.f32 %v5775_v57, %v5743_v48  ;;  %v5553_v50 = vadd.f32 %v5521_v14, %v5489_v24  ;;  %v10003_v57 = vld [vmem:[#allocation33_spill] sm:$0xff]  ;;  %v7055_v48 = vld [vmem:[#allocation2 + $0x78] sm:$0xff]  ;;  %5217 = vmatmul.bf16.gmra.mxu1 %v7105_v4 }
 0x3da   : > { %v9446_v39 = vadd.f32 %v9312_v62, %v5263_v53  ;;  %v3750_v18 = vadd.f32 %v10003_v57, %v3372_v11  ;;  %v2995_v36 = vadd.f32 %v9215_v25, %v2617_v8  ;;  %v9462_v53 = vpop.f32.mrf.mxu2  ;;  %v7081_v25 = vld [vmem:[#allocation2 + $0x118] sm:$0xff] }
 0x3db   : > { %v7645_v17 = vpop.eup %7644  ;;  %5839 = vst [vmem:[%s9370_s27 + $0x20] sm:$0xff] %v5807_v42  ;;  %v5585_v33 = vadd.f32 2.0, %v5553_v50  ;;  %v4407_v26 = vpop.f32.mrf.mxu3  ;;  %4838 = vmatmul.bf16.gmra.mxu0 %v7081_v25 }
 0x3dc   : > { %v5648_v41 = vmul.f32 %v7645_v17, %v5552_v16  ;;  %v5395_v27 = vmin.f32 %v9446_v39, 20.0  ;;  %v4506_v10 = vadd.f32 %v4407_v26, %v4127_v6  ;;  %v4128_v31 = vadd.f32 %v9360_v3, %v3750_v18  ;;  %v10005_v18 = vld [vmem:[#allocation35_spill] sm:$0xff] }
 0x3dd   : > { %7648 = vrcp.f32 %v5585_v33  ;;  %v10004_v33 = vld [vmem:[#allocation21_spill] sm:$0xff]  ;;  %v9474_v57 = vpop.f32.mrf.mxu0  ;;  %vm5683_vm0 = vcmp.gt.f32.partialorder %v9446_v39, 20.0 }
 0x3de   : > { %v7647_v1 = vpop.eup %7646  ;;  %v5712_v47 = vmul.f32 %v5648_v41, %v9388_v45  ;;  %v5435_v24 = vmul.f32 1.442695, %v5395_v27  ;;  %v4885_v14 = vadd.f32 %v9351_v34, %v4506_v10  ;;  %v3373_v26 = vadd.f32 %v10004_v33, %v2995_v36 }
 0x3df   : > { %v5490_v16 = vmul.f32 %v7647_v1, %v7647_v1  ;;  %v5522_v0 = vmul.f32 2.0, %v7647_v1 }
 0x3e0   : > { %v5744_v42 = vsel %vm5680_vm13, %v9388_v45, %v5712_v47  ;;  %7650 = vpow2.f32 %v5435_v24  ;;  %v5264_v11 = vadd.f32 %v9355_v15, %v4885_v14  ;;  %4449 = vmatmul.bf16.gmra.mxu3 %v7055_v48  ;;  %v5777_v47 = vld [vmem:[%s8053_s16 + $0x30] sm:$0xff]  ;;  %v3751_v24 = vadd.f32 %v10005_v18, %v3373_v26  ;;  %v9480_v14 = vpop.f32.mrf.mxu1 }
 0x3e1   : > { %v5808_v6 = vadd.f32 %v5776_v52, %v5744_v42  ;;  %v5554_v17 = vadd.f32 %v5522_v0, %v5490_v16 }
 0x3e2   : > { %v9469_v34 = vadd.f32 %v9312_v62, %v5264_v11  ;;  %v9485_v42 = vpop.f32.mrf.mxu2  ;;  %v4129_v26 = vadd.f32 %v9385_v28, %v3751_v24 }
 0x3e3   : > { %v7649_v8 = vpop.eup %7648  ;;  %5840 = vst [vmem:[%s9370_s27 + $0x28] sm:$0xff] %v5808_v6  ;;  %v5586_v45 = vadd.f32 2.0, %v5554_v17  ;;  %v4410_v41 = vpop.f32.mrf.mxu3 }
 0x3e4   : > { %v5649_v27 = vmul.f32 %v7649_v8, %v5553_v50  ;;  %v5396_v15 = vmin.f32 %v9469_v34, 20.0  ;;  %v4507_v10 = vadd.f32 %v4410_v41, %v4128_v31  ;;  %vm5684_vm2 = vcmp.gt.f32.partialorder %v9469_v34, 20.0 }
 0x3e5   : > { %7652 = vrcp.f32 %v5586_v45  ;;  %v9499_v28 = vpop.f32.mrf.mxu0 }
 0x3e6   : > { %v7651_v1 = vpop.eup %7650  ;;  %v5713_v36 = vmul.f32 %v5649_v27, %v9406_v40  ;;  %v5437_v52 = vmul.f32 1.442695, %v5396_v15  ;;  %v4886_v3 = vadd.f32 %v9375_v2, %v4507_v10  ;;  %v10006_v2 = vld [vmem:[#allocation22_spill] sm:$0xff]  ;;  %v5778_v15 = vld [vmem:[%s8053_s16 + $0x38] sm:$0xff] }
 0x3e7   : > { %v5491_v50 = vmul.f32 %v7651_v1, %v7651_v1  ;;  %v5523_v48 = vmul.f32 2.0, %v7651_v1  ;;  %v3374_v6 = vadd.f32 %v10006_v2, %v9222_v13  ;;  %v7056_v1 = vld [vmem:[#allocation2 + $0x80] sm:$0xff] }
 0x3e8   : > { %v5745_v16 = vsel %vm5681_vm14, %v9406_v40, %v5713_v36  ;;  %7654 = vpow2.f32 %v5437_v52  ;;  %v5265_v0 = vadd.f32 %v9380_v12, %v4886_v3  ;;  %v10007_v36 = vld [vmem:[#allocation37_spill] sm:$0xff]  ;;  %v9504_v24 = vpop.f32.mrf.mxu1 }
 0x3e9   : > { %v5809_v11 = vadd.f32 %v5777_v47, %v5745_v16  ;;  %v5555_v25 = vadd.f32 %v5523_v48, %v5491_v50  ;;  %v3752_v47 = vadd.f32 %v10007_v36, %v3374_v6  ;;  %v10008_v48 = vld [vmem:[#allocation23_spill] sm:$0xff] }
 0x3ea   : > { %v9490_v33 = vadd.f32 %v9312_v62, %v5265_v0  ;;  %v3375_v16 = vadd.f32 %v10008_v48, %v9229_v22  ;;  %v9512_v6 = vpop.f32.mrf.mxu2  ;;  %v5779_v22 = vld [vmem:[%s8053_s16 + $0x40] sm:$0xff] }
 0x3eb   : > { %v7653_v31 = vpop.eup %7652  ;;  %5841 = vst [vmem:[%s9370_s27 + $0x30] sm:$0xff] %v5809_v11  ;;  %v5587_v4 = vadd.f32 2.0, %v5555_v25  ;;  %v4412_v40 = vpop.f32.mrf.mxu3  ;;  %v4130_v11 = vadd.f32 %v9408_v9, %v3752_v47  ;;  %v10010_v47 = vld [vmem:[#allocation24_spill] sm:$0xff] }
 0x3ec   : > { %v5650_v8 = vmul.f32 %v7653_v31, %v5554_v17  ;;  %v5397_v12 = vmin.f32 %v9490_v33, 20.0  ;;  %v4508_v45 = vadd.f32 %v4412_v40, %v4129_v26  ;;  %vm5685_vm3 = vcmp.gt.f32.partialorder %v9490_v33, 20.0 }
 0x3ed   : > { %7656 = vrcp.f32 %v5587_v4 }
 0x3ee   : > { %v7655_v41 = vpop.eup %7654  ;;  %v5714_v27 = vmul.f32 %v5650_v8, %v9427_v43  ;;  %v5439_v10 = vmul.f32 1.442695, %v5397_v12  ;;  %v4887_v13 = vadd.f32 %v9396_v21, %v4508_v45 }
 0x3ef   : > { %v5492_v17 = vmul.f32 %v7655_v41, %v7655_v41  ;;  %v5524_v52 = vmul.f32 2.0, %v7655_v41  ;;  %v10009_v41 = vld [vmem:[#allocation39_spill] sm:$0xff] }
 0x3f0   : > { %v5746_v3 = vsel %vm5682_vm15, %v9427_v43, %v5714_v27  ;;  %7658 = vpow2.f32 %v5439_v10  ;;  %v5266_v18 = vadd.f32 %v9403_v38, %v4887_v13  ;;  %4454 = vmatmul.bf16.gmra.mxu3 %v7056_v1  ;;  %v3753_v9 = vadd.f32 %v10009_v41, %v3375_v16  ;;  %v9523_v13 = vpop.f32.mrf.mxu0  ;;  %v10012_v41 = vld [vmem:[#allocation25_spill] sm:$0xff] }
 0x3f1   : > { %v5810_v50 = vadd.f32 %v5778_v15, %v5746_v3  ;;  %v5556_v21 = vadd.f32 %v5524_v52, %v5492_v17  ;;  %v3376_v17 = vadd.f32 %v10010_v47, %v9234_v23 }
 0x3f2   : > { %v9509_v0 = vadd.f32 %v9312_v62, %v5266_v18  ;;  %v4131_v52 = vadd.f32 %v9434_v54, %v3753_v9  ;;  %v9531_v18 = vpop.f32.mrf.mxu1  ;;  %v3377_v9 = vadd.f32 %v10012_v41, %v9239_v61 }
 0x3f3   : > { %v7657_v2 = vpop.eup %7656  ;;  %5842 = vst [vmem:[%s9370_s27 + $0x38] sm:$0xff] %v5810_v50  ;;  %v5588_v43 = vadd.f32 2.0, %v5556_v21  ;;  %v4415_v38 = vpop.f32.mrf.mxu3 }
 0x3f4   : > { %v5651_v26 = vmul.f32 %v7657_v2, %v5555_v25  ;;  %v5398_v31 = vmin.f32 %v9509_v0, 20.0  ;;  %v4509_v4 = vadd.f32 %v4415_v38, %v4130_v11  ;;  %v7057_v11 = vld [vmem:[#allocation2 + $0x88] sm:$0xff]  ;;  %v9535_v2 = vpop.f32.mrf.mxu2  ;;  %v5780_v38 = vld [vmem:[%s8053_s16 + $0x48] sm:$0xff]  ;;  %vm5686_vm4 = vcmp.gt.f32.partialorder %v9509_v0, 20.0 }
 0x3f5   : > { %7660 = vrcp.f32 %v5588_v43 }
 0x3f6   : > { %v7659_v40 = vpop.eup %7658  ;;  %v5715_v8 = vmul.f32 %v5651_v26, %v9446_v39  ;;  %v5441_v12 = vmul.f32 1.442695, %v5398_v31  ;;  %v4888_v45 = vadd.f32 %v9423_v19, %v4509_v4  ;;  %v10011_v31 = vld [vmem:[#allocation41_spill] sm:$0xff] }
 0x3f7   : > { %v5493_v27 = vmul.f32 %v7659_v40, %v7659_v40  ;;  %v5525_v15 = vmul.f32 2.0, %v7659_v40  ;;  %v3754_v4 = vadd.f32 %v10011_v31, %v3376_v17 }
 0x3f8   : > { %v5747_v25 = vsel %vm5683_vm0, %v9446_v39, %v5715_v8  ;;  %7662 = vpow2.f32 %v5441_v12  ;;  %v5267_v10 = vadd.f32 %v9430_v51, %v4888_v45 }
 0x3f9   : > { %v5811_v1 = vadd.f32 %v5779_v22, %v5747_v25  ;;  %v5557_v36 = vadd.f32 %v5525_v15, %v5493_v27  ;;  %v4132_v27 = vadd.f32 %v9462_v53, %v3754_v4  ;;  %v9550_v25 = vpop.f32.mrf.mxu0 }
 0x3fa   : > { %v9528_v19 = vadd.f32 %v9312_v62, %v5267_v10  ;;  %v9554_v17 = vpop.f32.mrf.mxu1 }
 0x3fb   : > { %v7661_v3 = vpop.eup %7660  ;;  %5843 = vst [vmem:[%s9370_s27 + $0x40] sm:$0xff] %v5811_v1  ;;  %v5589_v39 = vadd.f32 2.0, %v5557_v36  ;;  %v4417_v50 = vpop.f32.mrf.mxu3 }
 0x3fc   : > { %v5652_v51 = vmul.f32 %v7661_v3, %v5556_v21  ;;  %v5399_v48 = vmin.f32 %v9528_v19, 20.0  ;;  %v4510_v16 = vadd.f32 %v4417_v50, %v4131_v52  ;;  %v5781_v3 = vld [vmem:[%s8053_s16 + $0x50] sm:$0xff]  ;;  %v10013_v50 = vld [vmem:[#allocation43_spill] sm:$0xff]  ;;  %vm5687_vm6 = vcmp.gt.f32.partialorder %v9528_v19, 20.0 }
 0x3fd   : > { %7664 = vrcp.f32 %v5589_v39 }
 0x3fe   : > { %v7663_v23 = vpop.eup %7662  ;;  %v5716_v43 = vmul.f32 %v5652_v51, %v9469_v34  ;;  %v5443_v26 = vmul.f32 1.442695, %v5399_v48  ;;  %v4889_v54 = vadd.f32 %v9449_v5, %v4510_v16  ;;  %v3755_v51 = vadd.f32 %v10013_v50, %v3377_v9  ;;  %v9560_v48 = vpop.f32.mrf.mxu2 }
 0x3ff   : > { %v5494_v21 = vmul.f32 %v7663_v23, %v7663_v23  ;;  %v5526_v40 = vmul.f32 2.0, %v7663_v23 }
 0x400   : > { %v5748_v8 = vsel %vm5684_vm2, %v9469_v34, %v5716_v43  ;;  %7666 = vpow2.f32 %v5443_v26  ;;  %v5268_v22 = vadd.f32 %v9455_v7, %v4889_v54  ;;  %4459 = vmatmul.bf16.gmra.mxu3 %v7057_v11  ;;  %v10014_v26 = vld [vmem:[#allocation26_spill] sm:$0xff]  ;;  %v4133_v31 = vadd.f32 %v9485_v42, %v3755_v51 }
 0x401   : > { %v5812_v12 = vadd.f32 %v5780_v38, %v5748_v8  ;;  %v5558_v45 = vadd.f32 %v5526_v40, %v5494_v21  ;;  %v3378_v54 = vadd.f32 %v10014_v26, %v9244_v56  ;;  %v5782_v56 = vld [vmem:[%s8053_s16 + $0x58] sm:$0xff] }
 0x402   : > { %v9547_v5 = vadd.f32 %v9312_v62, %v5268_v22 }
 0x403   : > { %v7665_v15 = vpop.eup %7664  ;;  %5844 = vst [vmem:[%s9370_s27 + $0x48] sm:$0xff] %v5812_v12  ;;  %v5590_v34 = vadd.f32 2.0, %v5558_v45  ;;  %v4420_v10 = vpop.f32.mrf.mxu3  ;;  %v3756_v42 = vadd.f32 %v9131_v49, %v3378_v54 }
 0x404   : > { %v5653_v1 = vmul.f32 %v7665_v15, %v5557_v36  ;;  %v5400_v7 = vmin.f32 %v9547_v5, 20.0  ;;  %v4511_v47 = vadd.f32 %v4420_v10, %v4132_v27  ;;  %v9579_v15 = vpop.f32.mrf.mxu1  ;;  %vm5688_vm7 = vcmp.gt.f32.partialorder %v9547_v5, 20.0 }
 0x405   : > { %7668 = vrcp.f32 %v5590_v34 }
 0x406   : > { %v7667_v52 = vpop.eup %7666  ;;  %v5717_v61 = vmul.f32 %v5653_v1, %v9490_v33  ;;  %v5445_v39 = vmul.f32 1.442695, %v5400_v7  ;;  %v4890_v53 = vadd.f32 %v9474_v57, %v4511_v47  ;;  %v9584_v7 = vpop.f32.mrf.mxu2 }
 0x407   : > { %v5495_v36 = vmul.f32 %v7667_v52, %v7667_v52  ;;  %v5527_v16 = vmul.f32 2.0, %v7667_v52 }
 0x408   : > { %v5749_v11 = vsel %vm5685_vm3, %v9490_v33, %v5717_v61  ;;  %7670 = vpow2.f32 %v5445_v39  ;;  %v5269_v23 = vadd.f32 %v9480_v14, %v4890_v53  ;;  %v9573_v14 = vpop.f32.mrf.mxu0 }
 0x409   : > { %v5813_v43 = vadd.f32 %v5781_v3, %v5749_v11  ;;  %v5559_v38 = vadd.f32 %v5527_v16, %v5495_v36  ;;  %v4134_v3 = vadd.f32 %v9512_v6, %v3756_v42  ;;  %v5783_v11 = vld [vmem:[%s8053_s16 + $0x60] sm:$0xff] }
 0x40a   : > { %v9568_v57 = vadd.f32 %v9312_v62, %v5269_v23 }
 0x40b   : > { %v7669_v4 = vpop.eup %7668  ;;  %5845 = vst [vmem:[%s9370_s27 + $0x50] sm:$0xff] %v5813_v43  ;;  %v5591_v21 = vadd.f32 2.0, %v5559_v38  ;;  %v4422_v40 = vpop.f32.mrf.mxu3 }
 0x40c   : > { %v5654_v8 = vmul.f32 %v7669_v4, %v5558_v45  ;;  %v5401_v33 = vmin.f32 %v9568_v57, 20.0  ;;  %v4512_v22 = vadd.f32 %v4422_v40, %v4133_v31  ;;  %v9603_v4 = vpop.f32.mrf.mxu1  ;;  %vm5689_vm8 = vcmp.gt.f32.partialorder %v9568_v57, 20.0 }
 0x40d   : > { %7672 = vrcp.f32 %v5591_v21 }
 0x40e   : > { %v7671_v12 = vpop.eup %7670  ;;  %v5718_v41 = vmul.f32 %v5654_v8, %v9509_v0  ;;  %v5447_v9 = vmul.f32 1.442695, %v5401_v33  ;;  %v4891_v27 = vadd.f32 %v9499_v28, %v4512_v22  ;;  %v10015_v28 = vld [vmem:[#allocation27_spill] sm:$0xff] }
 0x40f   : > { %v5496_v45 = vmul.f32 %v7671_v12, %v7671_v12  ;;  %v5528_v34 = vmul.f32 2.0, %v7671_v12  ;;  %v3379_v61 = vadd.f32 %v10015_v28, %v9249_v30  ;;  %v9611_v12 = vpop.f32.mrf.mxu2 }
 0x410   : > { %v5750_v10 = vsel %vm5686_vm4, %v9509_v0, %v5718_v41  ;;  %7674 = vpow2.f32 %v5447_v9  ;;  %v5270_v1 = vadd.f32 %v9504_v24, %v4891_v27  ;;  %v9598_v6 = vpop.f32.mrf.mxu0 }
 0x411   : > { %v5814_v47 = vadd.f32 %v5782_v56, %v5750_v10  ;;  %v5560_v52 = vadd.f32 %v5528_v34, %v5496_v45  ;;  %v3757_v43 = vadd.f32 %v9142_v29, %v3379_v61 }
 0x412   : > { %v9589_v49 = vadd.f32 %v9312_v62, %v5270_v1 }
 0x413   : > { %v7673_v39 = vpop.eup %7672  ;;  %5846 = vst [vmem:[%s9370_s27 + $0x58] sm:$0xff] %v5814_v47  ;;  %v5592_v53 = vadd.f32 2.0, %v5560_v52  ;;  %v4425_v0 = vpop.f32.mrf.mxu3  ;;  %v4135_v33 = vadd.f32 %v9535_v2, %v3757_v43 }
 0x414   : > { %v5655_v50 = vmul.f32 %v7673_v39, %v5559_v38  ;;  %v5402_v24 = vmin.f32 %v9589_v49, 20.0  ;;  %v4513_v51 = vadd.f32 %v4425_v0, %v4134_v3  ;;  %v10017_v39 = vld [vmem:[#allocation30_spill] sm:$0xff]  ;;  %vm5690_vm9 = vcmp.gt.f32.partialorder %v9589_v49, 20.0 }
 0x415   : > { %7676 = vrcp.f32 %v5592_v53 }
 0x416   : > { %v7675_v36 = vpop.eup %7674  ;;  %v5719_v16 = vmul.f32 %v5655_v50, %v9528_v19  ;;  %v5449_v23 = vmul.f32 1.442695, %v5402_v24  ;;  %v4892_v30 = vadd.f32 %v9523_v13, %v4513_v51  ;;  %v10016_v13 = vld [vmem:[#allocation28_spill] sm:$0xff]  ;;  %v9630_v50 = vpop.f32.mrf.mxu1 }
 0x417   : > { %v5497_v26 = vmul.f32 %v7675_v36, %v7675_v36  ;;  %v5529_v38 = vmul.f32 2.0, %v7675_v36  ;;  %v3380_v29 = vadd.f32 %v10016_v13, %v9254_v35  ;;  %v5784_v35 = vld [vmem:[%s8053_s16 + $0x68] sm:$0xff]  ;;  %v10018_v13 = vld [vmem:[#allocation32_spill] sm:$0xff] }
 0x418   : > { %v5751_v54 = vsel %vm5687_vm6, %v9528_v19, %v5719_v16  ;;  %7678 = vpow2.f32 %v5449_v23  ;;  %v5271_v31 = vadd.f32 %v9531_v18, %v4892_v30  ;;  %v9622_v28 = vpop.f32.mrf.mxu0  ;;  %v9634_v16 = vpop.f32.mrf.mxu2  ;;  %v5785_v23 = vld [vmem:[%s8053_s16 + $0x70] sm:$0xff] }
 0x419   : > { %v5815_v21 = vadd.f32 %v5783_v11, %v5751_v54  ;;  %v5561_v40 = vadd.f32 %v5529_v38, %v5497_v26  ;;  %v3758_v2 = vadd.f32 %v9155_v46, %v3380_v29  ;;  %v3382_v29 = vadd.f32 %v10018_v13, %v9262_v37 }
 0x41a   : > { %v9608_v8 = vadd.f32 %v9312_v62, %v5271_v31 }
 0x41b   : > { %v7677_v22 = vpop.eup %7676  ;;  %5847 = vst [vmem:[%s9370_s27 + $0x60] sm:$0xff] %v5815_v21  ;;  %v5593_v19 = vadd.f32 2.0, %v5561_v40  ;;  %v4427_v41 = vpop.f32.mrf.mxu3  ;;  %v4136_v46 = vadd.f32 %v9560_v48, %v3758_v2 }
 0x41c   : > { %v5656_v18 = vmul.f32 %v7677_v22, %v5560_v52  ;;  %v5403_v56 = vmin.f32 %v9608_v8, 20.0  ;;  %v4514_v9 = vadd.f32 %v4427_v41, %v4135_v33  ;;  %vm5691_vm1 = vcmp.gt.f32.partialorder %v9608_v8, 20.0 }
 0x41d   : > { %7680 = vrcp.f32 %v5593_v19 }
 0x41e   : > { %v7679_v27 = vpop.eup %7678  ;;  %v5720_v42 = vmul.f32 %v5656_v18, %v9547_v5  ;;  %v5451_v45 = vmul.f32 1.442695, %v5403_v56  ;;  %v4893_v34 = vadd.f32 %v9550_v25, %v4514_v9  ;;  %v3381_v25 = vadd.f32 %v10017_v39, %v9257_v58  ;;  %v9653_v56 = vpop.f32.mrf.mxu1 }
 0x41f   : > { %v5498_v10 = vmul.f32 %v7679_v27, %v7679_v27  ;;  %v5530_v1 = vmul.f32 2.0, %v7679_v27  ;;  %v5786_v27 = vld [vmem:[%s8053_s16 + $0x78] sm:$0xff] }
 0x420   : > { %v5752_v47 = vsel %vm5688_vm7, %v9547_v5, %v5720_v42  ;;  %7682 = vpow2.f32 %v5451_v45  ;;  %v5272_v52 = vadd.f32 %v9554_v17, %v4893_v34  ;;  %v3759_v43 = vadd.f32 %v9164_v60, %v3381_v25  ;;  %v9649_v22 = vpop.f32.mrf.mxu0  ;;  %v9659_v45 = vpop.f32.mrf.mxu2 }
 0x421   : > { %v5816_v61 = vadd.f32 %v5784_v35, %v5752_v47  ;;  %v5562_v3 = vadd.f32 %v5530_v1, %v5498_v10  ;;  %v3760_v35 = vadd.f32 %v9175_v55, %v3382_v29 }
 0x422   : > { %v9627_v53 = vadd.f32 %v9312_v62, %v5272_v52  ;;  %v4137_v60 = vadd.f32 %v9584_v7, %v3759_v43 }
 0x423   : > { %v7681_v0 = vpop.eup %7680  ;;  %5848 = vst [vmem:[%s9370_s27 + $0x68] sm:$0xff] %v5816_v61  ;;  %v5594_v5 = vadd.f32 2.0, %v5562_v3  ;;  %v4430_v24 = vpop.f32.mrf.mxu3  ;;  %v10019_v61 = vld [vmem:[#allocation34_spill] sm:$0xff]  ;;  %v4138_v55 = vadd.f32 %v9611_v12, %v3760_v35 }
 0x424   : > { %v5657_v17 = vmul.f32 %v7681_v0, %v5561_v40  ;;  %v5404_v51 = vmin.f32 %v9627_v53, 20.0  ;;  %v4515_v36 = vadd.f32 %v4430_v24, %v4136_v46  ;;  %vm5692_vm5 = vcmp.gt.f32.partialorder %v9627_v53, 20.0  ;;  %v10021_v35 = vld [vmem:[#allocation38_spill] sm:$0xff] }
 0x425   : > { %7684 = vrcp.f32 %v5594_v5 }
 0x426   : > { %v7683_v11 = vpop.eup %7682  ;;  %v5721_v58 = vmul.f32 %v5657_v17, %v9568_v57  ;;  %v5453_v30 = vmul.f32 1.442695, %v5404_v51  ;;  %v4894_v48 = vadd.f32 %v9573_v14, %v4515_v36  ;;  %v5787_v51 = vld [vmem:[%s8053_s16 + $0x80] sm:$0xff]  ;;  %v5198_v12 = vpop.f32.mrf.mxu1 }
 0x427   : > { %v5499_v26 = vmul.f32 %v7683_v11, %v7683_v11  ;;  %v5531_v38 = vmul.f32 2.0, %v7683_v11 }
 0x428   : > { %v5753_v54 = vsel %vm5689_vm8, %v9568_v57, %v5721_v58  ;;  %7686 = vpow2.f32 %v5453_v30  ;;  %v5273_v31 = vadd.f32 %v9579_v15, %v4894_v48  ;;  %v4063_v48 = vpop.f32.mrf.mxu2 }
 0x429   : > { %v5817_v21 = vadd.f32 %v5785_v23, %v5753_v54  ;;  %v5563_v40 = vadd.f32 %v5531_v38, %v5499_v26  ;;  %v10020_v38 = vld [vmem:[#allocation36_spill] sm:$0xff] }
 0x42a   : > { %v9646_v33 = vadd.f32 %v9312_v62, %v5273_v31 }
 0x42b   : > { %v7685_v14 = vpop.eup %7684  ;;  %5849 = vst [vmem:[%s9370_s27 + $0x70] sm:$0xff] %v5817_v21  ;;  %v5595_v19 = vadd.f32 2.0, %v5563_v40  ;;  %v4432_v57 = vpop.f32.mrf.mxu3 }
 0x42c   : > { %v5658_v41 = vmul.f32 %v7685_v14, %v5562_v3  ;;  %v5405_v15 = vmin.f32 %v9646_v33, 20.0  ;;  %v4516_v18 = vadd.f32 %v4432_v57, %v4137_v60  ;;  %v3383_v3 = vadd.f32 %v10019_v61, %v9265_v20  ;;  %v5788_v14 = vld [vmem:[%s8053_s16 + $0x88] sm:$0xff] }
 0x42d   : > { %7688 = vrcp.f32 %v5595_v19  ;;  %vm5693_vm10 = vcmp.gt.f32.partialorder %v9646_v33, 20.0 }
 0x42e   : > { %v7687_v9 = vpop.eup %7686  ;;  %v5722_v37 = vmul.f32 %v5658_v41, %v9589_v49  ;;  %v5455_v42 = vmul.f32 1.442695, %v5405_v15  ;;  %v4895_v7 = vadd.f32 %v9598_v6, %v4516_v18  ;;  %v3761_v36 = vadd.f32 %v9187_v59, %v3383_v3  ;;  %v9684_v59 = vld [vmem:[%s9874_s4] ss:$0 sm:$0xff] }
 0x42f   : > { %v5500_v34 = vmul.f32 %v7687_v9, %v7687_v9  ;;  %v5532_v2 = vmul.f32 2.0, %v7687_v9 }
 0x430   : > { %v5754_v10 = vsel %vm5690_vm9, %v9589_v49, %v5722_v37  ;;  %7690 = vpow2.f32 %v5455_v42  ;;  %v5274_v1 = vadd.f32 %v9603_v4, %v4895_v7  ;;  %v4819_v4 = vpop.f32.mrf.mxu0 }
 0x431   : > { %v5818_v47 = vadd.f32 %v5786_v27, %v5754_v10  ;;  %v5564_v52 = vadd.f32 %v5532_v2, %v5500_v34  ;;  %v5200_v27 = vpop.f32.mrf.mxu1  ;;  %v4066_v10 = vpop.f32.mrf.mxu2 }
 0x432   : > { %v9667_v6 = vadd.f32 %v9312_v62, %v5274_v1 }
 0x433   : > { %v7689_v39 = vpop.eup %7688  ;;  %5850 = vst [vmem:[%s9370_s27 + $0x78] sm:$0xff] %v5818_v47  ;;  %v5596_v25 = vadd.f32 2.0, %v5564_v52  ;;  %v4435_v46 = vpop.f32.mrf.mxu3 }
 0x434   : > { %v5659_v0 = vmul.f32 %v7689_v39, %v5563_v40  ;;  %v5406_v49 = vmin.f32 %v9667_v6, 20.0  ;;  %v4517_v5 = vadd.f32 %v4435_v46, %v4138_v55  ;;  %v5789_v55 = vld [vmem:[%s8053_s16 + $0x90] sm:$0xff]  ;;  %vm5694_vm11 = vcmp.gt.f32.partialorder %v9667_v6, 20.0 }
 0x435   : > { %7692 = vrcp.f32 %v5596_v25  ;;  %v10022_v25 = vld [vmem:[#allocation50_spill] sm:$0xff] }
 0x436   : > { %v7691_v24 = vpop.eup %7690  ;;  %v5723_v17 = vmul.f32 %v5659_v0, %v9608_v8  ;;  %v5457_v20 = vmul.f32 1.442695, %v5406_v49  ;;  %v4896_v62 = vadd.f32 %v9622_v28, %v4517_v5  ;;  %v3384_v28 = vadd.f32 %v10020_v38, %v9268_v44 }
 0x437   : > { %v5501_v11 = vmul.f32 %v7691_v24, %v7691_v24  ;;  %v5533_v58 = vmul.f32 2.0, %v7691_v24 }
 0x438   : > { %v5755_v23 = vsel %vm5691_vm1, %v9608_v8, %v5723_v17  ;;  %7694 = vpow2.f32 %v5457_v20  ;;  %v5275_v30 = vadd.f32 %v9630_v50, %v4896_v62  ;;  %v4139_v8 = vadd.f32 %v9634_v16, %v3761_v36  ;;  %v4821_v16 = vpop.f32.mrf.mxu0  ;;  %v10023_v20 = vld [vmem:[#allocation59_spill] sm:$0xff]  ;;  %v10024_v62 = vld [vmem:[#allocation40_spill] sm:$0xff] }
 0x439   : > { %v5819_v43 = vadd.f32 %v5787_v51, %v5755_v23  ;;  %v5565_v26 = vadd.f32 %v5533_v58, %v5501_v11  ;;  %v3762_v41 = vadd.f32 %v9197_v63, %v3384_v28  ;;  %v3386_v36 = vadd.f32 %v10024_v62, %v10023_v20  ;;  %v5203_v23 = vpop.f32.mrf.mxu1  ;;  %v4068_v38 = vpop.f32.mrf.mxu2 }
 0x43a   : > { %v9687_v54 = vadd.f32 %v9684_v59, %v5275_v30 }
 0x43b   : > { %v7693_v31 = vpop.eup %7692  ;;  %5851 = vst [vmem:[%s9370_s27 + $0x80] sm:$0xff] %v5819_v43  ;;  %v5597_v50 = vadd.f32 2.0, %v5565_v26  ;;  %v4437_v21 = vpop.f32.mrf.mxu3  ;;  %v4140_v34 = vadd.f32 %v9659_v45, %v3762_v41  ;;  %v10027_v41 = vld [vmem:[#allocation42_spill] sm:$0xff] }
 0x43c   : > { %v5660_v40 = vmul.f32 %v7693_v31, %v5564_v52  ;;  %v5407_v13 = vmin.f32 %v9687_v54, 20.0  ;;  %v4518_v29 = vadd.f32 %v4437_v21, %v4139_v8  ;;  %v5790_v31 = vld [vmem:[%s8053_s16 + $0x98] sm:$0xff]  ;;  %vm5695_vm12 = vcmp.gt.f32.partialorder %v9687_v54, 20.0 }
 0x43d   : > { %7696 = vrcp.f32 %v5597_v50 }
 0x43e   : > { %v7695_v44 = vpop.eup %7694  ;;  %v5724_v60 = vmul.f32 %v5660_v40, %v9627_v53  ;;  %v5459_v19 = vmul.f32 1.442695, %v5407_v13  ;;  %v4897_v57 = vadd.f32 %v9649_v22, %v4518_v29  ;;  %v3385_v22 = vadd.f32 %v10021_v35, %v9273_v32  ;;  %v10025_v40 = vld [vmem:[#allocation51_spill] sm:$0xff] }
 0x43f   : > { %v5502_v15 = vmul.f32 %v7695_v44, %v7695_v44  ;;  %v5534_v18 = vmul.f32 2.0, %v7695_v44 }
 0x440   : > { %v5756_v9 = vsel %vm5692_vm5, %v9627_v53, %v5724_v60  ;;  %7698 = vpow2.f32 %v5459_v19  ;;  %v5276_v37 = vadd.f32 %v9653_v56, %v4897_v57  ;;  %v3763_v46 = vadd.f32 %v10022_v25, %v3385_v22  ;;  %v4824_v24 = vpop.f32.mrf.mxu0  ;;  %v10026_v57 = vld [vmem:[#allocation60_spill] sm:$0xff] }
 0x441   : > { %v5820_v42 = vadd.f32 %v5788_v14, %v5756_v9  ;;  %v5566_v7 = vadd.f32 %v5534_v18, %v5502_v15  ;;  %v3387_v15 = vadd.f32 %v10027_v41, %v10026_v57 }
 0x442   : > { %v9702_v63 = vadd.f32 %v9684_v59, %v5276_v37  ;;  %v4141_v11 = vadd.f32 %v4063_v48, %v3763_v46  ;;  %v3764_v48 = vadd.f32 %v10025_v40, %v3386_v36  ;;  %v10029_v46 = vld [vmem:[#allocation61_spill] sm:$0xff] }
 0x443   : > { %v7697_v2 = vpop.eup %7696  ;;  %5852 = vst [vmem:[%s9370_s27 + $0x88] sm:$0xff] %v5820_v42  ;;  %v5598_v1 = vadd.f32 2.0, %v5566_v7  ;;  %v4440_v53 = vpop.f32.mrf.mxu3 }
 0x444   : > { %v5661_v47 = vmul.f32 %v7697_v2, %v5565_v26  ;;  %v5408_v56 = vmin.f32 %v9702_v63, 20.0  ;;  %v4519_v52 = vadd.f32 %v4440_v53, %v4140_v34  ;;  %vm5696_vm13 = vcmp.gt.f32.partialorder %v9702_v63, 20.0 }
 0x445   : > { %7700 = vrcp.f32 %v5598_v1  ;;  %v5791_v1 = vld [vmem:[%s8053_s16 + $0xa0] sm:$0xff] }
 0x446   : > { %v7699_v61 = vpop.eup %7698  ;;  %v5725_v3 = vmul.f32 %v5661_v47, %v9646_v33  ;;  %v5461_v32 = vmul.f32 1.442695, %v5408_v56  ;;  %v4898_v39 = vadd.f32 %v4819_v4, %v4519_v52  ;;  %v10028_v56 = vld [vmem:[#allocation52_spill] sm:$0xff]  ;;  %v4071_v52 = vpop.f32.mrf.mxu2 }
 0x447   : > { %v5503_v45 = vmul.f32 %v7699_v61, %v7699_v61  ;;  %v5535_v0 = vmul.f32 2.0, %v7699_v61 }
 0x448   : > { %v5757_v49 = vsel %vm5693_vm10, %v9646_v33, %v5725_v3  ;;  %7702 = vpow2.f32 %v5461_v32  ;;  %v5277_v5 = vadd.f32 %v5198_v12, %v4898_v39  ;;  %v4826_v37 = vpop.f32.mrf.mxu0 }
 0x449   : > { %v5821_v17 = vadd.f32 %v5789_v55, %v5757_v49  ;;  %v5567_v51 = vadd.f32 %v5535_v0, %v5503_v45  ;;  %v10030_v45 = vld [vmem:[#allocation44_spill] sm:$0xff] }
 0x44a   : > { %v9715_v4 = vadd.f32 %v9684_v59, %v5277_v5  ;;  %v3388_v0 = vadd.f32 %v10030_v45, %v10029_v46 }
 0x44b   : > { %v7701_v58 = vpop.eup %7700  ;;  %5853 = vst [vmem:[%s9370_s27 + $0x90] sm:$0xff] %v5821_v17  ;;  %v5599_v30 = vadd.f32 2.0, %v5567_v51  ;;  %v4442_v43 = vpop.f32.mrf.mxu3 }
 0x44c   : > { %v5662_v26 = vmul.f32 %v7701_v58, %v5566_v7  ;;  %v5409_v33 = vmin.f32 %v9715_v4, 20.0  ;;  %v4520_v12 = vadd.f32 %v4442_v43, %v4141_v11  ;;  %vm5697_vm14 = vcmp.gt.f32.partialorder %v9715_v4, 20.0 }
 0x44d   : > { %7704 = vrcp.f32 %v5599_v30 }
 0x44e   : > { %v7703_v28 = vpop.eup %7702  ;;  %v5726_v8 = vmul.f32 %v5662_v26, %v9667_v6  ;;  %v5463_v50 = vmul.f32 1.442695, %v5409_v33  ;;  %v4899_v21 = vadd.f32 %v4821_v16, %v4520_v12  ;;  %v4142_v16 = vadd.f32 %v4066_v10, %v3764_v48  ;;  %v10031_v26 = vld [vmem:[#allocation53_spill] sm:$0xff]  ;;  %v10032_v48 = vld [vmem:[#allocation62_spill] sm:$0xff] }
 0x44f   : > { %v5504_v13 = vmul.f32 %v7703_v28, %v7703_v28  ;;  %v5536_v29 = vmul.f32 2.0, %v7703_v28  ;;  %v3765_v10 = vadd.f32 %v10028_v56, %v3387_v15  ;;  %v3766_v33 = vadd.f32 %v10031_v26, %v3388_v0 }
 0x450   : > { %v5758_v44 = vsel %vm5694_vm11, %v9667_v6, %v5726_v8  ;;  %7706 = vpow2.f32 %v5463_v50  ;;  %v5278_v60 = vadd.f32 %v5200_v27, %v4899_v21  ;;  %v5205_v27 = vpop.f32.mrf.mxu1  ;;  %v4829_v36 = vpop.f32.mrf.mxu0 }
 0x451   : > { %v5822_v14 = vadd.f32 %v5790_v31, %v5758_v44  ;;  %v5568_v19 = vadd.f32 %v5536_v29, %v5504_v13  ;;  %v4143_v5 = vadd.f32 %v4068_v38, %v3765_v10  ;;  %v4073_v50 = vpop.f32.mrf.mxu2  ;;  %v10033_v13 = vld [vmem:[#allocation45_spill] sm:$0xff]  ;;  %v10035_v10 = vld [vmem:[#allocation63_spill] sm:$0xff] }
 0x452   : > { %v9727_v18 = vadd.f32 %v9684_v59, %v5278_v60  ;;  %v3389_v29 = vadd.f32 %v10033_v13, %v10032_v48  ;;  %v4144_v60 = vadd.f32 %v4071_v52, %v3766_v33  ;;  %v10036_v52 = vld [vmem:[#allocation46_spill] sm:$0xff]  ;;  %v10038_v33 = vld [vmem:[#allocation64_spill] sm:$0xff] }
 0x453   : > { %v7705_v9 = vpop.eup %7704  ;;  %5854 = vst [vmem:[%s9370_s27 + $0x98] sm:$0xff] %v5822_v14  ;;  %v5600_v42 = vadd.f32 2.0, %v5568_v19  ;;  %v4445_v7 = vpop.f32.mrf.mxu3 }
 0x454   : > { %v5663_v35 = vmul.f32 %v7705_v9, %v5567_v51  ;;  %v5410_v6 = vmin.f32 %v9727_v18, 20.0  ;;  %v4521_v22 = vadd.f32 %v4445_v7, %v4142_v16  ;;  %vm5698_vm15 = vcmp.gt.f32.partialorder %v9727_v18, 20.0 }
 0x455   : > { %7708 = vrcp.f32 %v5600_v42 }
 0x456   : > { %v7707_v34 = vpop.eup %7706  ;;  %v5727_v2 = vmul.f32 %v5663_v35, %v9687_v54  ;;  %v5465_v53 = vmul.f32 1.442695, %v5410_v6  ;;  %v4900_v47 = vadd.f32 %v4824_v24, %v4521_v22  ;;  %v10034_v35 = vld [vmem:[#allocation54_spill] sm:$0xff] }
 0x457   : > { %v5505_v61 = vmul.f32 %v7707_v34, %v7707_v34  ;;  %v5537_v3 = vmul.f32 2.0, %v7707_v34  ;;  %v3767_v6 = vadd.f32 %v10034_v35, %v3389_v29 }
 0x458   : > { %v5759_v55 = vsel %vm5695_vm12, %v9687_v54, %v5727_v2  ;;  %7710 = vpow2.f32 %v5465_v53  ;;  %v5279_v32 = vadd.f32 %v5203_v23, %v4900_v47  ;;  %v5792_v23 = vld [vmem:[%s8053_s16 + $0xa8] sm:$0xff]  ;;  %v5208_v12 = vpop.f32.mrf.mxu1  ;;  %v4831_v22 = vpop.f32.mrf.mxu0 }
 0x459   : > { %v5823_v39 = vadd.f32 %v5791_v1, %v5759_v55  ;;  %v5569_v25 = vadd.f32 %v5537_v3, %v5505_v61  ;;  %v3390_v61 = vadd.f32 %v10036_v52, %v10035_v10  ;;  %v4145_v55 = vadd.f32 %v4073_v50, %v3767_v6  ;;  %v10041_v6 = vld [vmem:[#allocation65_spill] sm:$0xff] }
 0x45a   : > { %v9739_v49 = vadd.f32 %v9684_v59, %v5279_v32 }
 0x45b   : > { %v7709_v24 = vpop.eup %7708  ;;  %5855 = vst [vmem:[%s9370_s27 + $0xa0] sm:$0xff] %v5823_v39  ;;  %v5601_v17 = vadd.f32 2.0, %v5569_v25  ;;  %v4447_v51 = vpop.f32.mrf.mxu3 }
 0x45c   : > { %v5664_v20 = vmul.f32 %v7709_v24, %v5568_v19  ;;  %v5411_v62 = vmin.f32 %v9739_v49, 20.0  ;;  %v4522_v54 = vadd.f32 %v4447_v51, %v4143_v5  ;;  %v4076_v39 = vpop.f32.mrf.mxu2  ;;  %vm5699_vm0 = vcmp.gt.f32.partialorder %v9739_v49, 20.0 }
 0x45d   : > { %7712 = vrcp.f32 %v5601_v17  ;;  %v5794_v17 = vld [vmem:[%s8053_s16 + $0xb8] sm:$0xff] }
 0x45e   : > { %v7711_v11 = vpop.eup %7710  ;;  %v5728_v58 = vmul.f32 %v5664_v20, %v9702_v63  ;;  %v5467_v30 = vmul.f32 1.442695, %v5411_v62  ;;  %v4901_v43 = vadd.f32 %v4826_v37, %v4522_v54  ;;  %v5793_v37 = vld [vmem:[%s8053_s16 + $0xb0] sm:$0xff]  ;;  %v10037_v62 = vld [vmem:[#allocation55_spill] sm:$0xff] }
 0x45f   : > { %v5506_v38 = vmul.f32 %v7711_v11, %v7711_v11  ;;  %v5538_v28 = vmul.f32 2.0, %v7711_v11  ;;  %v3768_v54 = vadd.f32 %v10037_v62, %v3390_v61 }
 0x460   : > { %v5760_v8 = vsel %vm5696_vm13, %v9702_v63, %v5728_v58  ;;  %7714 = vpow2.f32 %v5467_v30  ;;  %v5280_v31 = vadd.f32 %v5205_v27, %v4901_v43  ;;  %v5210_v53 = vpop.f32.mrf.mxu1  ;;  %v4834_v30 = vpop.f32.mrf.mxu0 }
 0x461   : > { %v5824_v21 = vadd.f32 %v5792_v23, %v5760_v8  ;;  %v5570_v40 = vadd.f32 %v5538_v28, %v5506_v38  ;;  %v4146_v8 = vadd.f32 %v4076_v39, %v3768_v54  ;;  %v5796_v39 = vld [vmem:[%s8053_s16 + $0xc8] sm:$0xff]  ;;  %v10044_v54 = vld [vmem:[#allocation66_spill] sm:$0xff] }
 0x462   : > { %v9751_v44 = vadd.f32 %v9684_v59, %v5280_v31 }
 0x463   : > { %v7713_v14 = vpop.eup %7712  ;;  %5856 = vst [vmem:[%s9370_s27 + $0xa8] sm:$0xff] %v5824_v21  ;;  %v5602_v19 = vadd.f32 2.0, %v5570_v40  ;;  %v4450_v57 = vpop.f32.mrf.mxu3 }
 0x464   : > { %v5665_v41 = vmul.f32 %v7713_v14, %v5569_v25  ;;  %v5412_v63 = vmin.f32 %v9751_v44, 20.0  ;;  %v4523_v15 = vadd.f32 %v4450_v57, %v4144_v60  ;;  %v4078_v29 = vpop.f32.mrf.mxu2  ;;  %vm5700_vm2 = vcmp.gt.f32.partialorder %v9751_v44, 20.0 }
 0x465   : > { %7716 = vrcp.f32 %v5602_v19  ;;  %v5795_v19 = vld [vmem:[%s8053_s16 + $0xc0] sm:$0xff] }
 0x466   : > { %v7715_v16 = vpop.eup %7714  ;;  %v5729_v9 = vmul.f32 %v5665_v41, %v9715_v4  ;;  %v5469_v42 = vmul.f32 1.442695, %v5412_v63  ;;  %v4902_v7 = vadd.f32 %v4829_v36, %v4523_v15  ;;  %v10040_v63 = vld [vmem:[#allocation56_spill] sm:$0xff] }
 0x467   : > { %v5507_v27 = vmul.f32 %v7715_v16, %v7715_v16  ;;  %v5539_v34 = vmul.f32 2.0, %v7715_v16 }
 0x468   : > { %v5761_v2 = vsel %vm5697_vm14, %v9715_v4, %v5729_v9  ;;  %7718 = vpow2.f32 %v5469_v42  ;;  %v5281_v1 = vadd.f32 %v5208_v12, %v4902_v7  ;;  %v10039_v12 = vld [vmem:[#allocation47_spill] sm:$0xff]  ;;  %v5213_v50 = vpop.f32.mrf.mxu1 }
 0x469   : > { %v5825_v47 = vadd.f32 %v5793_v37, %v5761_v2  ;;  %v5571_v56 = vadd.f32 %v5539_v34, %v5507_v27  ;;  %v3391_v38 = vadd.f32 %v10039_v12, %v10038_v33 }
 0x46a   : > { %v9763_v3 = vadd.f32 %v9684_v59, %v5281_v1 }
 0x46b   : > { %v7717_v32 = vpop.eup %7716  ;;  %5857 = vst [vmem:[%s9370_s27 + $0xb0] sm:$0xff] %v5825_v47  ;;  %v5603_v25 = vadd.f32 2.0, %v5571_v56  ;;  %v4452_v46 = vpop.f32.mrf.mxu3  ;;  %v3769_v15 = vadd.f32 %v10040_v63, %v3391_v38 }
 0x46c   : > { %v5666_v45 = vmul.f32 %v7717_v32, %v5570_v40  ;;  %v5413_v4 = vmin.f32 %v9763_v3, 20.0  ;;  %v4524_v0 = vadd.f32 %v4452_v46, %v4145_v55  ;;  %vm5701_vm3 = vcmp.gt.f32.partialorder %v9763_v3, 20.0 }
 0x46d   : > { %7720 = vrcp.f32 %v5603_v25  ;;  %v4147_v2 = vadd.f32 %v4078_v29, %v3769_v15 }
 0x46e   : > { %v7719_v5 = vpop.eup %7718  ;;  %v5730_v24 = vmul.f32 %v5666_v45, %v9727_v18  ;;  %v5471_v51 = vmul.f32 1.442695, %v5413_v4  ;;  %v4903_v20 = vadd.f32 %v4831_v22, %v4524_v0  ;;  %v10042_v22 = vld [vmem:[#allocation48_spill] sm:$0xff]  ;;  %v10043_v45 = vld [vmem:[#allocation57_spill] sm:$0xff]  ;;  %v4081_v0 = vpop.f32.mrf.mxu2 }
 0x46f   : > { %v5508_v36 = vmul.f32 %v7719_v5, %v7719_v5  ;;  %v5540_v11 = vmul.f32 2.0, %v7719_v5  ;;  %v3392_v27 = vadd.f32 %v10042_v22, %v10041_v6 }
 0x470   : > { %v5762_v58 = vsel %vm5698_vm15, %v9727_v18, %v5730_v24  ;;  %7722 = vpow2.f32 %v5471_v51  ;;  %v5282_v23 = vadd.f32 %v5210_v53, %v4903_v20  ;;  %v4836_v53 = vpop.f32.mrf.mxu0  ;;  %v5215_v61 = vpop.f32.mrf.mxu1 }
 0x471   : > { %v5826_v43 = vadd.f32 %v5794_v17, %v5762_v58  ;;  %v5572_v26 = vadd.f32 %v5540_v11, %v5508_v36  ;;  %v3770_v4 = vadd.f32 %v10043_v45, %v3392_v27  ;;  %v10045_v36 = vld [vmem:[#allocation49_spill] sm:$0xff] }
 0x472   : > { %v9775_v28 = vadd.f32 %v9684_v59, %v5282_v23  ;;  %v3393_v11 = vadd.f32 %v10045_v36, %v10044_v54 }
 0x473   : > { %v7721_v31 = vpop.eup %7720  ;;  %5858 = vst [vmem:[%s9370_s27 + $0xb8] sm:$0xff] %v5826_v43  ;;  %v5604_v21 = vadd.f32 2.0, %v5572_v26  ;;  %v4455_v40 = vpop.f32.mrf.mxu3  ;;  %v4148_v23 = vadd.f32 %v4081_v0, %v3770_v4 }
 0x474   : > { %v5667_v48 = vmul.f32 %v7721_v31, %v5571_v56  ;;  %v5414_v18 = vmin.f32 %v9775_v28, 20.0  ;;  %v4525_v13 = vadd.f32 %v4455_v40, %v4146_v8  ;;  %vm5702_vm4 = vcmp.gt.f32.partialorder %v9775_v28, 20.0 }
 0x475   : > { %7724 = vrcp.f32 %v5604_v21  ;;  %v5797_v21 = vld [vmem:[%s8053_s16 + $0xd0] sm:$0xff] }
 0x476   : > { %v7723_v60 = vpop.eup %7722  ;;  %v5731_v14 = vmul.f32 %v5667_v48, %v9739_v49  ;;  %v5473_v57 = vmul.f32 1.442695, %v5414_v18  ;;  %v4904_v41 = vadd.f32 %v4834_v30, %v4525_v13  ;;  %v10046_v18 = vld [vmem:[#allocation58_spill] sm:$0xff] }
 0x477   : > { %v5509_v16 = vmul.f32 %v7723_v60, %v7723_v60  ;;  %v5541_v9 = vmul.f32 2.0, %v7723_v60  ;;  %v3771_v13 = vadd.f32 %v10046_v18, %v3393_v11 }
 0x478   : > { %v5763_v37 = vsel %vm5699_vm0, %v9739_v49, %v5731_v14  ;;  %7726 = vpow2.f32 %v5473_v57  ;;  %v5283_v42 = vadd.f32 %v5213_v50, %v4904_v41  ;;  %v5218_v8 = vpop.f32.mrf.mxu1  ;;  %v4083_v57 = vpop.f32.mrf.mxu2 }
 0x479   : > { %v5827_v7 = vadd.f32 %v5795_v19, %v5763_v37  ;;  %v5573_v35 = vadd.f32 %v5541_v9, %v5509_v16  ;;  %v4149_v16 = vadd.f32 %v4083_v57, %v3771_v13  ;;  %v5802_v13 = vld [vmem:[%s8053_s16 + $0xf8] sm:$0xff] }
 0x47a   : > { %v9787_v34 = vadd.f32 %v9684_v59, %v5283_v42 }
 0x47b   : > { %v7725_v1 = vpop.eup %7724  ;;  %5859 = vst [vmem:[%s9370_s27 + $0xc0] sm:$0xff] %v5827_v7  ;;  %v5605_v47 = vadd.f32 2.0, %v5573_v35  ;;  %v4457_v56 = vpop.f32.mrf.mxu3 }
 0x47c   : > { %v5668_v10 = vmul.f32 %v7725_v1, %v5572_v26  ;;  %v5415_v49 = vmin.f32 %v9787_v34, 20.0  ;;  %v4526_v52 = vadd.f32 %v4457_v56, %v4147_v2  ;;  %v4839_v26 = vpop.f32.mrf.mxu0  ;;  %v5798_v2 = vld [vmem:[%s8053_s16 + $0xd8] sm:$0xff]  ;;  %vm5703_vm6 = vcmp.gt.f32.partialorder %v9787_v34, 20.0 }
 0x47d   : > { %7728 = vrcp.f32 %v5605_v47 }
 0x47e   : > { %v7727_v55 = vpop.eup %7726  ;;  %v5732_v32 = vmul.f32 %v5668_v10, %v9751_v44  ;;  %v5475_v25 = vmul.f32 1.442695, %v5415_v49  ;;  %v4905_v46 = vadd.f32 %v4836_v53, %v4526_v52 }
 0x47f   : > { %v5510_v5 = vmul.f32 %v7727_v55, %v7727_v55  ;;  %v5542_v24 = vmul.f32 2.0, %v7727_v55 }
 0x480   : > { %v5764_v17 = vsel %vm5700_vm2, %v9751_v44, %v5732_v32  ;;  %7730 = vpow2.f32 %v5475_v25  ;;  %v5284_v51 = vadd.f32 %v5215_v61, %v4905_v46  ;;  %v5220_v10 = vpop.f32.mrf.mxu1 }
 0x481   : > { %v5828_v20 = vadd.f32 %v5796_v39, %v5764_v17  ;;  %v5574_v62 = vadd.f32 %v5542_v24, %v5510_v5  ;;  %v5799_v5 = vld [vmem:[%s8053_s16 + $0xe0] sm:$0xff] }
 0x482   : > { %v9799_v58 = vadd.f32 %v9684_v59, %v5284_v51 }
 0x483   : > { %v7729_v30 = vpop.eup %7728  ;;  %5860 = vst [vmem:[%s9370_s27 + $0xc8] sm:$0xff] %v5828_v20  ;;  %v5606_v43 = vadd.f32 2.0, %v5574_v62  ;;  %v4460_v33 = vpop.f32.mrf.mxu3 }
 0x484   : > { %v5669_v12 = vmul.f32 %v7729_v30, %v5573_v35  ;;  %v5416_v44 = vmin.f32 %v9799_v58, 20.0  ;;  %v4527_v38 = vadd.f32 %v4460_v33, %v4148_v23  ;;  %v5800_v30 = vld [vmem:[%s8053_s16 + $0xe8] sm:$0xff]  ;;  %vm5704_vm7 = vcmp.gt.f32.partialorder %v9799_v58, 20.0 }
 0x485   : > { %7732 = vrcp.f32 %v5606_v43 }
 0x486   : > { %v7731_v31 = vpop.eup %7730  ;;  %v5733_v50 = vmul.f32 %v5669_v12, %v9763_v3  ;;  %v5477_v40 = vmul.f32 1.442695, %v5416_v44  ;;  %v4906_v48 = vadd.f32 %v4839_v26, %v4527_v38 }
 0x487   : > { %v5511_v29 = vmul.f32 %v7731_v31, %v7731_v31  ;;  %v5543_v60 = vmul.f32 2.0, %v7731_v31 }
 0x488   : > { %v5765_v14 = vsel %vm5701_vm3, %v9763_v3, %v5733_v50  ;;  %7734 = vpow2.f32 %v5477_v40  ;;  %v5285_v19 = vadd.f32 %v5218_v8, %v4906_v48  ;;  %v4841_v3 = vpop.f32.mrf.mxu0  ;;  %v5801_v50 = vld [vmem:[%s8053_s16 + $0xf0] sm:$0xff] }
 0x489   : > { %v5829_v41 = vadd.f32 %v5797_v21, %v5765_v14  ;;  %v5575_v63 = vadd.f32 %v5543_v60, %v5511_v29 }
 0x48a   : > { %v9809_v15 = vadd.f32 %v9684_v59, %v5285_v19 }
 0x48b   : > { %v7733_v9 = vpop.eup %7732  ;;  %5861 = vst [vmem:[%s9370_s27 + $0xd0] sm:$0xff] %v5829_v41  ;;  %v5607_v37 = vadd.f32 2.0, %v5575_v63  ;;  %v4462_v42 = vpop.f32.mrf.mxu3 }
 0x48c   : > { %v5670_v7 = vmul.f32 %v7733_v9, %v5574_v62  ;;  %v5417_v35 = vmin.f32 %v9809_v15, 20.0  ;;  %v4528_v6 = vadd.f32 %v4462_v42, %v4149_v16  ;;  %vm5705_vm8 = vcmp.gt.f32.partialorder %v9809_v15, 20.0 }
 0x48d   : > { %7736 = vrcp.f32 %v5607_v37 }
 0x48e   : > { %v7735_v22 = vpop.eup %7734  ;;  %v5734_v27 = vmul.f32 %v5670_v7, %v9775_v28  ;;  %v5479_v1 = vmul.f32 1.442695, %v5417_v35  ;;  %v4907_v53 = vadd.f32 %v4841_v3, %v4528_v6 }
 0x48f   : > { %v5512_v47 = vmul.f32 %v7735_v22, %v7735_v22  ;;  %v5544_v56 = vmul.f32 2.0, %v7735_v22 }
 0x490   : > { %v5766_v49 = vsel %vm5702_vm4, %v9775_v28, %v5734_v27  ;;  %7738 = vpow2.f32 %v5479_v1  ;;  %v5286_v52 = vadd.f32 %v5220_v10, %v4907_v53 }
 0x491   : > { %v5830_v61 = vadd.f32 %v5798_v2, %v5766_v49  ;;  %v5576_v55 = vadd.f32 %v5544_v56, %v5512_v47 }
 0x492   : > { %v5386_v32 = vadd.f32 %v9684_v59, %v5286_v52 }
 0x493   : > { %v7737_v39 = vpop.eup %7736  ;;  %5862 = vst [vmem:[%s9370_s27 + $0xd8] sm:$0xff] %v5830_v61  ;;  %v5608_v25 = vadd.f32 2.0, %v5576_v55 }
 0x494   : > { %v5671_v46 = vmul.f32 %v7737_v39, %v5575_v63  ;;  %v5418_v45 = vmin.f32 %v5386_v32, 20.0  ;;  %vm5706_vm9 = vcmp.gt.f32.partialorder %v5386_v32, 20.0 }
 0x495   : > { %7740 = vrcp.f32 %v5608_v25 }
 0x496   : > { %v7739_v4 = vpop.eup %7738  ;;  %v5735_v0 = vmul.f32 %v5671_v46, %v9787_v34  ;;  %v5481_v24 = vmul.f32 1.442695, %v5418_v45 }
 0x497   : > { %v5513_v28 = vmul.f32 %v7739_v4, %v7739_v4  ;;  %v5545_v17 = vmul.f32 2.0, %v7739_v4 }
 0x498   : > { %v5767_v51 = vsel %vm5703_vm6, %v9787_v34, %v5735_v0  ;;  %7742 = vpow2.f32 %v5481_v24 }
 0x499   : > { %v5831_v59 = vadd.f32 %v5799_v5, %v5767_v51  ;;  %v5577_v20 = vadd.f32 %v5545_v17, %v5513_v28 }
 0x49b   : > { %v7741_v62 = vpop.eup %7740  ;;  %5863 = vst [vmem:[%s9370_s27 + $0xe0] sm:$0xff] %v5831_v59  ;;  %v5609_v54 = vadd.f32 2.0, %v5577_v20 }
 0x49c   : > { %v5672_v36 = vmul.f32 %v7741_v62, %v5576_v55 }
 0x49d   : > { %7744 = vrcp.f32 %v5609_v54 }
 0x49e   : > { %v7743_v11 = vpop.eup %7742  ;;  %v5736_v23 = vmul.f32 %v5672_v36, %v9799_v58 }
 0x49f   : > { %v5514_v43 = vmul.f32 %v7743_v11, %v7743_v11  ;;  %v5546_v26 = vmul.f32 2.0, %v7743_v11 }
 0x4a0   : > { %v5768_v34 = vsel %vm5704_vm7, %v9799_v58, %v5736_v23 }
 0x4a1   : > { %v5832_v33 = vadd.f32 %v5800_v30, %v5768_v34  ;;  %v5578_v12 = vadd.f32 %v5546_v26, %v5514_v43 }
 0x4a3   : > { %v7745_v44 = vpop.eup %7744  ;;  %5864 = vst [vmem:[%s9370_s27 + $0xe8] sm:$0xff] %v5832_v33  ;;  %v5610_v38 = vadd.f32 2.0, %v5578_v12 }
 0x4a4   : > { %v5673_v8 = vmul.f32 %v7745_v44, %v5577_v20 }
 0x4a5   : > { %7746 = vrcp.f32 %v5610_v38 }
 0x4a6   : > { %v5737_v31 = vmul.f32 %v5673_v8, %v9809_v15 }
 0x4a8   : > { %v5769_v21 = vsel %vm5705_vm8, %v9809_v15, %v5737_v31 }
 0x4a9   : > { %v5833_v58 = vadd.f32 %v5801_v50, %v5769_v21 }
 0x4ab   : > { %v7747_v40 = vpop.eup %7746  ;;  %5865 = vst [vmem:[%s9370_s27 + $0xf0] sm:$0xff] %v5833_v58 }
 0x4ac   : > { %v5674_v48 = vmul.f32 %v7747_v40, %v5578_v12 }
 0x4ae   : > { %v5738_v18 = vmul.f32 %v5674_v48, %v5386_v32 }
 0x4b0   : > { %v5770_v29 = vsel %vm5706_vm9, %v5386_v32, %v5738_v18 }
 0x4b1   : > { %v5834_v60 = vadd.f32 %v5802_v13, %v5770_v29 }
 0x4b3   : > { %5866 = vst [vmem:[%s9370_s27 + $0xf8] sm:$0xff] %v5834_v60 }
 0x4b4   : > { %7867 = shalt.err (!%p7864_p10)
}
 0x4b5   : > { %s7919_s8 = smov 128   ;;  %s7920_s27 = smov 8  }
 0x4b6   : > { %7426 = dma.vmem_to_hbm [thread:$0]  (%p8017_p3), %s5881_s15, 4096, %s5883_s24, %s5868_s22, %s7919_s8, %s7919_s8, %s7920_s27  }
 0x4b7 PF: > { %s5897_s30 = sand.u32 1, %s7898_s18   ;;  %p10047_p12 = scmp.ge.s32.totalorder %s7910_s21, 2 }
 0x4b8   : > { %s5898_s6 = scalar_lea.sflag [#allocation6], %s5897_s30 }
 0x4b9   : > { %p7440_p13 = pnand %p10047_p12, %p7986_p6 }
 0x4bb   : > { %p7441_p0 = pneg %p7440_p13 }
 0x4bd   : > { %7893 = dma.done.wait (%p7441_p0), %s5898_s6, 4096  }
 0x4be   : > { %7895 = vsyncadd (%p7441_p0), %s5898_s6, 4294963200  ;;  %p19_p5 = scmp.ge.s32.totalorder %s8007_s14, 4   ;;  %s10048_s18 = smov %s7902_s19 }
 0x4bf   : > { %s10049_s19 = smov %s7906_s20  ;;  %s10050_s20 = smov %s8023_s23 }
 0x4c0   : > { %s10051_s21 = smov %s8007_s14  ;;  %21 = sbr.rel (!%p19_p5) target bundleno = 6 (0x6), region = 112 }
 0x4c5   :  { %5904 = vsyncpa [#allocation5], 1 }
 0x4c6   :  { %5906 = vsyncpa [#allocation5 + $0x1], 1 }
 0x4c7   :  { %5907 = vsyncpa [#allocation8], 1 }
 0x4c8   :  { %5908 = vsyncpa [#allocation6], 1 }
 0x4c9   :  { %5910 = vsyncpa [#allocation6 + $0x1], 1 }

</bundles_post_ra>
